<compile_context>
chip_gen: v6e
topology: v6e:2x2x1
jax: 0.10.0
libtpu: 0.0.40
codegen_flags: <defaults>
</compile_context>

<pallas_src>
import functools

import jax
import jax.numpy as jnp
from jax.experimental import pallas as pl
from jax.experimental.pallas import tpu as pltpu

# ---------------------------------------------------------------------------
# Model dimensions (from the PyTorch module)
# ---------------------------------------------------------------------------
IN_CH = 3                      # RGB input, as expected by resnet50
STEM_K = 7                     # 7x7 stem conv
STEM_STRIDE = 2
STEM_PAD = 3
STEM_KDIM = STEM_K * STEM_K * IN_CH   # 147 (kept unpadded; full-dim block)
FEAT_DIM = 2048                # resnet50 fc in_features
HID_DIM = 1024                 # nn.Linear(in_features, 1024)
EMB_DIM = 512                  # nn.Linear(1024, 512)
BN_EPS = 1e-5
NORM_EPS = 1e-12               # F.normalize default eps
SUBLANE = 8

HEAD_TILE = 256                # w1 output-column / w2 input-row tile
STEM_VMEM_TARGET = 20 << 20    # per-core pipeline budget (fits v7x 64 MiB easily)
VMEM_HEADROOM = 8 << 20
VMEM_CAP = 48 << 20


def _round_up(x, m):
    return (x + m - 1) // m * m


# ---------------------------------------------------------------------------
# Pallas kernels
# ---------------------------------------------------------------------------
def stem_pool_kernel(p_ref, w_ref, b_ref, o_ref, acc_ref, *, spatial, tile,
                     need_mask):
    """Fused stem conv-as-matmul + bias + ReLU + global average pool.

    Grid = (batch, spatial_tiles).  The spatial axis is a reduction
    ("arbitrary"): per-tile relu(patches @ W + b) is partially summed into an
    (8, 2048) VMEM accumulator (pure VPU); the single 8->1 cross-sublane reduce
    and the 1/S scale happen only in the last-step epilogue.
    """
    s = pl.program_id(1)

    @pl.when(s == 0)
    def _():
        acc_ref[...] = jnp.zeros_like(acc_ref)

    # bf16 operands, f32 accumulation (MXU); f32 epilogue (v5e-safe).
    h = jnp.dot(p_ref[0], w_ref[...], preferred_element_type=jnp.float32)
    h = jnp.maximum(h + b_ref[...], 0.0)                       # (tile, 2048) f32

    if need_mask:
        # cdiv grid: the last tile may run past S; relu(garbage @ W + b) != 0
        # for those rows, so zero them before pooling.  Cheap VPU work.
        row = jax.lax.broadcasted_iota(jnp.int32, (tile, 1), 0) + s * tile
        h = jnp.where(row < spatial, h, 0.0)

    # Sublane-preserving partial accumulation (VPU adds only; no XLU per step).
    acc_ref[...] += h.reshape(tile // SUBLANE, SUBLANE, FEAT_DIM).sum(axis=0)

    @pl.when(s == pl.num_programs(1) - 1)
    def _():
        pooled = jnp.sum(acc_ref[...], axis=0, keepdims=True) * (1.0 / spatial)
        o_ref[...] = pooled.reshape(o_ref.shape).astype(o_ref.dtype)


def head_kernel(f_ref, w1_ref, b1_ref, w2_ref, b2_ref, o_ref):
    """Fused fc head with eval-mode BatchNorm pre-folded into the linears:
       Linear+BN -> ReLU -> [Dropout=id] -> Linear+BN -> ReLU -> [Dropout=id]
       -> L2 normalize.

    Grid = (HID_DIM // HEAD_TILE,): each step consumes one column tile of w1
    and the matching row tile of w2, accumulating the second matmul in the
    resident f32 output block.  Pipelining the weight tiles hides most of the
    5 MiB weight DMA under the previous tile's compute.
    """
    j = pl.program_id(0)

    @pl.when(j == 0)
    def _():
        o_ref[...] = jnp.zeros_like(o_ref)

    h = jnp.dot(f_ref[...], w1_ref[...], preferred_element_type=jnp.float32)
    h = jnp.maximum(h + b1_ref[...], 0.0)                      # (M, HEAD_TILE) f32
    o_ref[...] += jnp.dot(h.astype(jnp.bfloat16), w2_ref[...],
                          preferred_element_type=jnp.float32)  # (M, 512) f32

    @pl.when(j == pl.num_programs(0) - 1)
    def _():
        z = jnp.maximum(o_ref[...] + b2_ref[...], 0.0)
        # F.normalize(p=2, dim=1): x / max(||x||, eps) == x * rsqrt(max(ss, eps^2))
        sumsq = jnp.sum(z * z, axis=1, keepdims=True)
        o_ref[...] = z * jax.lax.rsqrt(jnp.maximum(sumsq, NORM_EPS * NORM_EPS))


# ---------------------------------------------------------------------------
# VMEM budgeting / tiling helpers
# ---------------------------------------------------------------------------
def _stem_vmem_bytes(ts, kdim):
    """Conservative per-core VMEM requirement for one stem grid step."""
    patch_blk = 2 * ts * kdim * 2            # double-buffered patch tile (bf16)
    weight = 2 * kdim * FEAT_DIM * 2         # resident weight (bf16), 2 buffers
    bias = 2 * FEAT_DIM * 4                  # bias (f32), 2 buffers
    out_blk = 2 * FEAT_DIM * 2               # (1,1,2048) bf16 output, 2 buffers
    acc = SUBLANE * FEAT_DIM * 4             # accumulator scratch
    interm = 2 * ts * FEAT_DIM * 4           # in-kernel f32 h (+ masked copy)
    return patch_blk + weight + bias + out_blk + acc + interm


def _pick_spatial_tile(s_total, kdim):
    """Largest sublane-aligned spatial tile whose FULL footprint (incl. the
    in-kernel f32 intermediate) fits the per-core budget.  Any S is legal:
    the grid is cdiv-based and the kernel masks pad rows (no divisor fallback)."""
    cap = min(2048, _round_up(s_total, SUBLANE))
    for ts in (2048, 1024, 512, 256, 128, 64, 32, 16, 8):
        if ts <= cap and _stem_vmem_bytes(ts, kdim) <= STEM_VMEM_TARGET:
            return ts
    return SUBLANE


def _head_vmem_bytes(m, th):
    return (2 * m * FEAT_DIM * 2             # feature slab (bf16), 2 buffers
            + 2 * FEAT_DIM * th * 2          # w1 tile (bf16), 2 buffers
            + 2 * th * 4                     # b1 tile (f32), 2 buffers
            + 2 * th * EMB_DIM * 2           # w2 tile (bf16), 2 buffers
            + 2 * EMB_DIM * 4                # b2 (f32), 2 buffers
            + 2 * m * EMB_DIM * 4            # resident f32 output block
            + m * th * 4 + m * EMB_DIM * 4)  # in-kernel f32 intermediates


# ---------------------------------------------------------------------------
# pallas_call wrappers
# ---------------------------------------------------------------------------
def stem_pool(patches, w, bias):
    """patches: (B, S, 147) bf16 -> pooled features (B, 2048) bf16."""
    b, s_total, kdim = patches.shape
    ts = _pick_spatial_tile(s_total, kdim)
    grid_s = pl.cdiv(s_total, ts)
    vmem_limit = int(min(_stem_vmem_bytes(ts, kdim) + VMEM_HEADROOM, VMEM_CAP))
    kernel = functools.partial(stem_pool_kernel, spatial=s_total, tile=ts,
                               need_mask=bool(s_total % ts))
    out = pl.pallas_call(
        kernel,
        out_shape=jax.ShapeDtypeStruct((b, 1, FEAT_DIM), jnp.bfloat16),
        grid_spec=pltpu.PrefetchScalarGridSpec(
            num_scalar_prefetch=0,
            grid=(b, grid_s),
            in_specs=[
                pl.BlockSpec((1, ts, kdim), lambda i, j: (i, j, 0)),
                pl.BlockSpec((kdim, FEAT_DIM), lambda i, j: (0, 0)),
                pl.BlockSpec((1, FEAT_DIM), lambda i, j: (0, 0)),
            ],
            out_specs=pl.BlockSpec((1, 1, FEAT_DIM), lambda i, j: (i, 0, 0)),
            scratch_shapes=[pltpu.VMEM((SUBLANE, FEAT_DIM), jnp.float32)],
        ),
        compiler_params=pltpu.CompilerParams(
            # batch axis "parallel": siamese concat makes it 2*B (even), so
            # both v7x TensorCores get work; spatial axis is the reduction.
            dimension_semantics=("parallel", "arbitrary"),
            vmem_limit_bytes=vmem_limit,
        ),
        cost_estimate=pl.CostEstimate(
            flops=2 * b * s_total * kdim * FEAT_DIM,
            transcendentals=0,
            bytes_accessed=(patches.size * 2 + w.size * 2 + bias.size * 4
                            + b * FEAT_DIM * 2),
        ),
    )(patches, w, bias)
    return out.reshape(b, FEAT_DIM)


def head(feat_b16, w1, b1, w2, b2):
    """feat_b16: (M, 2048) bf16 (M a multiple of 16) -> (M, 512) f32 embeddings."""
    m = feat_b16.shape[0]
    th = HEAD_TILE
    vmem_limit = int(min(_head_vmem_bytes(m, th) + VMEM_HEADROOM, VMEM_CAP))
    return pl.pallas_call(
        head_kernel,
        out_shape=jax.ShapeDtypeStruct((m, EMB_DIM), jnp.float32),
        grid_spec=pltpu.PrefetchScalarGridSpec(
            num_scalar_prefetch=0,
            grid=(HID_DIM // th,),
            in_specs=[
                pl.BlockSpec((m, FEAT_DIM), lambda j: (0, 0)),
                pl.BlockSpec((FEAT_DIM, th), lambda j: (0, j)),
                pl.BlockSpec((1, th), lambda j: (0, j)),
                pl.BlockSpec((th, EMB_DIM), lambda j: (j, 0)),
                pl.BlockSpec((1, EMB_DIM), lambda j: (0, 0)),
            ],
            out_specs=pl.BlockSpec((m, EMB_DIM), lambda j: (0, 0)),
        ),
        compiler_params=pltpu.CompilerParams(
            dimension_semantics=("arbitrary",),
            vmem_limit_bytes=vmem_limit,
        ),
        cost_estimate=pl.CostEstimate(
            flops=2 * m * (FEAT_DIM * HID_DIM + HID_DIM * EMB_DIM),
            transcendentals=m,
            bytes_accessed=(m * FEAT_DIM * 2 + FEAT_DIM * HID_DIM * 2 + HID_DIM * 4
                            + HID_DIM * EMB_DIM * 2 + EMB_DIM * 4
                            + m * EMB_DIM * 4),
        ),
    )(feat_b16, w1, b1, w2, b2)


# ---------------------------------------------------------------------------
# Parameter init (deterministic, PyTorch-default-flavoured) with BN folding
# ---------------------------------------------------------------------------
def init_params(key):
    ks = jax.random.split(key, 3)

    def linear_init(kk, fan_in, fan_out):
        bound = 1.0 / jnp.sqrt(fan_in)
        w = jax.random.uniform(kk, (fan_in, fan_out), jnp.float32, -bound, bound)
        b = jnp.zeros((1, fan_out), jnp.float32)
        return w, b

    def bn_defaults(n):
        # PyTorch BatchNorm1d defaults: gamma=1, beta=0, running_mean=0, var=1
        return (jnp.ones((1, n), jnp.float32), jnp.zeros((1, n), jnp.float32),
                jnp.zeros((1, n), jnp.float32), jnp.ones((1, n), jnp.float32))

    def fold_bn(w, b, gamma, beta, mean, var):
        # Eval-mode BN folded into the preceding Linear (zero accuracy cost).
        scale = gamma * jax.lax.rsqrt(var + BN_EPS)        # (1, out)
        return w * scale, (b - mean) * scale + beta

    # Stem conv weight stored directly in im2col layout (147, 2048), unpadded.
    stem_w, stem_b = linear_init(ks[0], STEM_KDIM, FEAT_DIM)

    w1, b1 = linear_init(ks[1], FEAT_DIM, HID_DIM)
    w2, b2 = linear_init(ks[2], HID_DIM, EMB_DIM)
    w1f, b1f = fold_bn(w1, b1, *bn_defaults(HID_DIM))
    w2f, b2f = fold_bn(w2, b2, *bn_defaults(EMB_DIM))

    return dict(
        stem_w=stem_w.astype(jnp.bfloat16), stem_b=stem_b,
        w1f=w1f.astype(jnp.bfloat16), b1f=b1f,
        w2f=w2f.astype(jnp.bfloat16), b2f=b2f,
    )


# ---------------------------------------------------------------------------
# Forward pass
# ---------------------------------------------------------------------------
def _im2col(x_nhwc):
    """7x7 stride-2 pad-3 patch extraction (plain-JAX glue, no compute).
    Returns (B, OH*OW, 147) bf16 -- no 147->256 zero-pad, so the HBM slab is
    ~43% smaller; the contraction dim rides as a full-extent last block."""
    b, h, w, c = x_nhwc.shape
    oh = (h + 2 * STEM_PAD - STEM_K) // STEM_STRIDE + 1
    ow = (w + 2 * STEM_PAD - STEM_K) // STEM_STRIDE + 1
    xp = jnp.pad(x_nhwc, ((0, 0), (STEM_PAD, STEM_PAD), (STEM_PAD, STEM_PAD), (0, 0)))
    cols = []
    for kh in range(STEM_K):
        for kw in range(STEM_K):
            cols.append(xp[:, kh:kh + STEM_STRIDE * oh:STEM_STRIDE,
                           kw:kw + STEM_STRIDE * ow:STEM_STRIDE, :])
    patches = jnp.stack(cols, axis=3).reshape(b, oh * ow, STEM_K * STEM_K * c)
    return patches.astype(jnp.bfloat16), oh, ow


def forward_one(params, x_nchw):
    """resnet-style feature extraction (stub) + custom fc head + L2 normalize."""
    b = x_nchw.shape[0]
    x_nhwc = jnp.transpose(x_nchw, (0, 2, 3, 1)).astype(jnp.float32)

    # --- backbone stub: fused stem conv + global average pool (bf16 out) ---
    patches, _, _ = _im2col(x_nhwc)                                # (B, S, 147) bf16
    feat = stem_pool(patches, params["stem_w"], params["stem_b"])  # (B, 2048) bf16

    # Pad batch rows to a multiple of 16 (bf16 sublane packing) so the head's
    # feature-slab loads are full, unmasked tiles.  This pad touches only the
    # tiny (B, 2048) bf16 slab -- the stem never computes pad rows.
    m_pad = _round_up(b, 2 * SUBLANE)
    feat = jnp.pad(feat, ((0, m_pad - b), (0, 0)))

    # --- custom fc head (BN folded) + F.normalize, fused & weight-tiled ---
    emb = head(feat, params["w1f"], params["b1f"],
               params["w2f"], params["b2f"])                       # (m_pad, 512)
    return emb[:b]


@jax.jit
def siamese_forward(params, input1, input2):
    # Shared weights -> run both branches through one set of kernels (weights
    # DMA'd into VMEM once, kernels launched once), then split the embeddings.
    b = input1.shape[0]
    emb = forward_one(params, jnp.concatenate([input1, input2], axis=0))
    return emb[:b], emb[b:]


# ---------------------------------------------------------------------------
# Main
# ---------------------------------------------------------------------------
if __name__ == "__main__":
    key = jax.random.PRNGKey(0)
    k_params, k_x1, k_x2 = jax.random.split(key, 3)

    params = init_params(k_params)

    B, H, W = 2, 16, 16
    input1 = jax.random.normal(k_x1, (B, IN_CH, H, W), jnp.float32)   # NCHW
    input2 = jax.random.normal(k_x2, (B, IN_CH, H, W), jnp.float32)   # NCHW

    out1, out2 = siamese_forward(params, input1, input2)
    out1, out2 = jax.block_until_ready((out1, out2))

    assert out1.shape == (B, EMB_DIM) and out2.shape == (B, EMB_DIM)
    assert bool(jnp.all(jnp.isfinite(out1))) and bool(jnp.all(jnp.isfinite(out2)))
    # embeddings are L2-normalized along dim=1
    n1 = jnp.linalg.norm(out1, axis=1)
    n2 = jnp.linalg.norm(out2, axis=1)
    assert bool(jnp.all(jnp.abs(n1 - 1.0) < 1e-4))
    assert bool(jnp.all(jnp.abs(n2 - 1.0) < 1e-4))

    print("KERNEL_OK")
</pallas_src>

<mosaic_0001>
module attributes {stable_mosaic.version = 11 : i64} {
  func.func @stem_pool_kernel(%arg0: i32, %arg1: i32, %arg2: memref<1x64x147xbf16, #tpu.memory_space<vmem>>, %arg3: memref<147x2048xbf16, #tpu.memory_space<vmem>>, %arg4: memref<1x2048xf32, #tpu.memory_space<vmem>>, %arg5: memref<1x1x2048xbf16, #tpu.memory_space<vmem>>, %arg6: memref<8x2048xf32, #tpu.memory_space<vmem>>) attributes {dimension_semantics = [#tpu.dimension_semantics<parallel>, #tpu.dimension_semantics<arbitrary>], iteration_bounds = array<i64: 4, 1>, scalar_prefetch = 0 : i64, scratch_operands = 1 : i64, tpu.core_type = #tpu.core_type<tc>, window_params = [{transform_indices = @transform_0, window_bounds = array<i64: 1, 64, 147>}, {pipeline_mode = #tpu.pipeline_mode<synchronous>, transform_indices = @transform_1, window_bounds = array<i64: 147, 2048>}, {pipeline_mode = #tpu.pipeline_mode<synchronous>, transform_indices = @transform_2, window_bounds = array<i64: 1, 2048>}, {transform_indices = @transform_3, window_bounds = array<i64: 1, 1, 2048>}]} {
    %c0_i32 = arith.constant 0 : i32
    %0 = arith.cmpi eq, %arg1, %c0_i32 : i32
    %1 = arith.extui %0 : i1 to i32
    %c0_i32_0 = arith.constant 0 : i32
    %2 = arith.cmpi ne, %1, %c0_i32_0 : i32
    scf.if %2 {
      %cst_15 = arith.constant 0.000000e+00 : f32
      %20 = vector.broadcast %cst_15 : f32 to vector<8x2048xf32>
      %c0_16 = arith.constant 0 : index
      %c0_17 = arith.constant 0 : index
      %21 = vector.load %arg6[%c0_16, %c0_17] : memref<8x2048xf32, #tpu.memory_space<vmem>>, vector<8x2048xf32>
      tpu.vector_store %arg6[%c0_16, %c0_17], %20 {strides = array<i32>} : memref<8x2048xf32, #tpu.memory_space<vmem>>, vector<8x2048xf32>,
    } else {
    }
    %c0 = arith.constant 0 : index
    %c0_1 = arith.constant 0 : index
    %c0_2 = arith.constant 0 : index
    %3 = vector.load %arg2[%c0, %c0_1, %c0_2] : memref<1x64x147xbf16, #tpu.memory_space<vmem>>, vector<1x64x147xbf16>
    %4 = vector.shape_cast %3 : vector<1x64x147xbf16> to vector<64x147xbf16>
    %c0_3 = arith.constant 0 : index
    %c0_4 = arith.constant 0 : index
    %5 = vector.load %arg3[%c0_3, %c0_4] : memref<147x2048xbf16, #tpu.memory_space<vmem>>, vector<147x2048xbf16>
    %cst = arith.constant dense<0.000000e+00> : vector<64x2048xf32>
    %6 = tpu.matmul %4, %5, %cst {dimension_numbers = #tpu.dot_dimension_numbers<[1], [0], [0], [1], [0, 0, 1, 1], [], []>} : vector<64x147xbf16>, vector<147x2048xbf16>, vector<64x2048xf32> -> vector<64x2048xf32>
    %c0_5 = arith.constant 0 : index
    %c0_6 = arith.constant 0 : index
    %7 = vector.load %arg4[%c0_5, %c0_6] : memref<1x2048xf32, #tpu.memory_space<vmem>>, vector<1x2048xf32>
    %8 = vector.broadcast %7 : vector<1x2048xf32> to vector<64x2048xf32>
    %9 = arith.addf %6, %8 : vector<64x2048xf32>
    %cst_7 = arith.constant 0.000000e+00 : f32
    %10 = vector.broadcast %cst_7 : f32 to vector<64x2048xf32>
    %11 = arith.maximumf %9, %10 : vector<64x2048xf32>
    %c0_8 = arith.constant 0 : index
    %c0_9 = arith.constant 0 : index
    %12 = vector.load %arg6[%c0_8, %c0_9] : memref<8x2048xf32, #tpu.memory_space<vmem>>, vector<8x2048xf32>
    %13 = vector.shape_cast %11 : vector<64x2048xf32> to vector<8x8x2048xf32>
    %cst_10 = arith.constant dense<0.000000e+00> : vector<8x2048xf32>
    %14 = vector.multi_reduction <add>, %13, %cst_10 [0] : vector<8x8x2048xf32> to vector<8x2048xf32>
    %15 = arith.addf %12, %14 : vector<8x2048xf32>
    %c0_11 = arith.constant 0 : index
    %c0_12 = arith.constant 0 : index
    %16 = vector.load %arg6[%c0_11, %c0_12] : memref<8x2048xf32, #tpu.memory_space<vmem>>, vector<8x2048xf32>
    tpu.vector_store %arg6[%c0_11, %c0_12], %15 {strides = array<i32>} : memref<8x2048xf32, #tpu.memory_space<vmem>>, vector<8x2048xf32>,
    %c0_i32_13 = arith.constant 0 : i32
    %17 = arith.cmpi eq, %arg1, %c0_i32_13 : i32
    %18 = arith.extui %17 : i1 to i32
    %c0_i32_14 = arith.constant 0 : i32
    %19 = arith.cmpi ne, %18, %c0_i32_14 : i32
    scf.if %19 {
      %c0_15 = arith.constant 0 : index
      %c0_16 = arith.constant 0 : index
      %20 = vector.load %arg6[%c0_15, %c0_16] : memref<8x2048xf32, #tpu.memory_space<vmem>>, vector<8x2048xf32>
      %cst_17 = arith.constant dense<0.000000e+00> : vector<2048xf32>
      %21 = vector.multi_reduction <add>, %20, %cst_17 [0] : vector<8x2048xf32> to vector<2048xf32>
      %22 = vector.shape_cast %21 : vector<2048xf32> to vector<1x2048xf32>
      %cst_18 = arith.constant 1.562500e-02 : f32
      %23 = vector.broadcast %cst_18 : f32 to vector<1x2048xf32>
      %24 = arith.mulf %22, %23 : vector<1x2048xf32>
      %25 = vector.shape_cast %24 : vector<1x2048xf32> to vector<1x1x2048xf32>
      %26 = arith.truncf %25 : vector<1x1x2048xf32> to vector<1x1x2048xbf16>
      %c0_19 = arith.constant 0 : index
      %c0_20 = arith.constant 0 : index
      %c0_21 = arith.constant 0 : index
      %27 = vector.load %arg5[%c0_19, %c0_20, %c0_21] : memref<1x1x2048xbf16, #tpu.memory_space<vmem>>, vector<1x1x2048xbf16>
      tpu.vector_store %arg5[%c0_19, %c0_20, %c0_21], %26 {strides = array<i32>} : memref<1x1x2048xbf16, #tpu.memory_space<vmem>>, vector<1x1x2048xbf16>,
    } else {
    }
    return
  }
  func.func @transform_0(%arg0: i32, %arg1: i32) -> (i32, i32, i32) {
    %c0_i32 = arith.constant 0 : i32
    %c0_i32_0 = arith.constant 0 : i32
    return %arg0, %arg1, %c0_i32 : i32, i32, i32
  }
  func.func @transform_1(%arg0: i32, %arg1: i32) -> (i32, i32) {
    %c0_i32 = arith.constant 0 : i32
    %c0_i32_0 = arith.constant 0 : i32
    %c0_i32_1 = arith.constant 0 : i32
    return %c0_i32, %c0_i32_0 : i32, i32
  }
  func.func @transform_2(%arg0: i32, %arg1: i32) -> (i32, i32) {
    %c0_i32 = arith.constant 0 : i32
    %c0_i32_0 = arith.constant 0 : i32
    %c0_i32_1 = arith.constant 0 : i32
    return %c0_i32, %c0_i32_0 : i32, i32
  }
  func.func @transform_3(%arg0: i32, %arg1: i32) -> (i32, i32, i32) {
    %c0_i32 = arith.constant 0 : i32
    %c0_i32_0 = arith.constant 0 : i32
    %c0_i32_1 = arith.constant 0 : i32
    return %arg0, %c0_i32, %c0_i32_0 : i32, i32, i32
  }
}

module attributes {stable_mosaic.version = 11 : i64} {
  func.func @head_kernel(%arg0: i32, %arg1: memref<16x2048xbf16, #tpu.memory_space<vmem>>, %arg2: memref<2048x256xbf16, #tpu.memory_space<vmem>>, %arg3: memref<1x256xf32, #tpu.memory_space<vmem>>, %arg4: memref<256x512xbf16, #tpu.memory_space<vmem>>, %arg5: memref<1x512xf32, #tpu.memory_space<vmem>>, %arg6: memref<16x512xf32, #tpu.memory_space<vmem>>) attributes {dimension_semantics = [#tpu.dimension_semantics<arbitrary>], iteration_bounds = array<i64: 4>, scalar_prefetch = 0 : i64, scratch_operands = 0 : i64, tpu.core_type = #tpu.core_type<tc>, window_params = [{pipeline_mode = #tpu.pipeline_mode<synchronous>, transform_indices = @transform_0, window_bounds = array<i64: 16, 2048>}, {transform_indices = @transform_1, window_bounds = array<i64: 2048, 256>}, {transform_indices = @transform_2, window_bounds = array<i64: 1, 256>}, {transform_indices = @transform_3, window_bounds = array<i64: 256, 512>}, {pipeline_mode = #tpu.pipeline_mode<synchronous>, transform_indices = @transform_4, window_bounds = array<i64: 1, 512>}, {pipeline_mode = #tpu.pipeline_mode<synchronous>, transform_indices = @transform_5, window_bounds = array<i64: 16, 512>}]} {
    %c0_i32 = arith.constant 0 : i32
    %0 = arith.cmpi eq, %arg0, %c0_i32 : i32
    %1 = arith.extui %0 : i1 to i32
    %c0_i32_0 = arith.constant 0 : i32
    %2 = arith.cmpi ne, %1, %c0_i32_0 : i32
    scf.if %2 {
      %cst_15 = arith.constant 0.000000e+00 : f32
      %20 = vector.broadcast %cst_15 : f32 to vector<16x512xf32>
      %c0_16 = arith.constant 0 : index
      %c0_17 = arith.constant 0 : index
      %21 = vector.load %arg6[%c0_16, %c0_17] : memref<16x512xf32, #tpu.memory_space<vmem>>, vector<16x512xf32>
      tpu.vector_store %arg6[%c0_16, %c0_17], %20 {strides = array<i32>} : memref<16x512xf32, #tpu.memory_space<vmem>>, vector<16x512xf32>,
    } else {
    }
    %c0 = arith.constant 0 : index
    %c0_1 = arith.constant 0 : index
    %3 = vector.load %arg1[%c0, %c0_1] : memref<16x2048xbf16, #tpu.memory_space<vmem>>, vector<16x2048xbf16>
    %c0_2 = arith.constant 0 : index
    %c0_3 = arith.constant 0 : index
    %4 = vector.load %arg2[%c0_2, %c0_3] : memref<2048x256xbf16, #tpu.memory_space<vmem>>, vector<2048x256xbf16>
    %cst = arith.constant dense<0.000000e+00> : vector<16x256xf32>
    %5 = tpu.matmul %3, %4, %cst {dimension_numbers = #tpu.dot_dimension_numbers<[1], [0], [0], [1], [0, 0, 1, 1], [], []>} : vector<16x2048xbf16>, vector<2048x256xbf16>, vector<16x256xf32> -> vector<16x256xf32>
    %c0_4 = arith.constant 0 : index
    %c0_5 = arith.constant 0 : index
    %6 = vector.load %arg3[%c0_4, %c0_5] : memref<1x256xf32, #tpu.memory_space<vmem>>, vector<1x256xf32>
    %7 = vector.broadcast %6 : vector<1x256xf32> to vector<16x256xf32>
    %8 = arith.addf %5, %7 : vector<16x256xf32>
    %cst_6 = arith.constant 0.000000e+00 : f32
    %9 = vector.broadcast %cst_6 : f32 to vector<16x256xf32>
    %10 = arith.maximumf %8, %9 : vector<16x256xf32>
    %c0_7 = arith.constant 0 : index
    %c0_8 = arith.constant 0 : index
    %11 = vector.load %arg6[%c0_7, %c0_8] : memref<16x512xf32, #tpu.memory_space<vmem>>, vector<16x512xf32>
    %12 = arith.truncf %10 : vector<16x256xf32> to vector<16x256xbf16>
    %c0_9 = arith.constant 0 : index
    %c0_10 = arith.constant 0 : index
    %13 = vector.load %arg4[%c0_9, %c0_10] : memref<256x512xbf16, #tpu.memory_space<vmem>>, vector<256x512xbf16>
    %cst_11 = arith.constant dense<0.000000e+00> : vector<16x512xf32>
    %14 = tpu.matmul %12, %13, %cst_11 {dimension_numbers = #tpu.dot_dimension_numbers<[1], [0], [0], [1], [0, 0, 1, 1], [], []>} : vector<16x256xbf16>, vector<256x512xbf16>, vector<16x512xf32> -> vector<16x512xf32>
    %15 = arith.addf %11, %14 : vector<16x512xf32>
    %c0_12 = arith.constant 0 : index
    %c0_13 = arith.constant 0 : index
    %16 = vector.load %arg6[%c0_12, %c0_13] : memref<16x512xf32, #tpu.memory_space<vmem>>, vector<16x512xf32>
    tpu.vector_store %arg6[%c0_12, %c0_13], %15 {strides = array<i32>} : memref<16x512xf32, #tpu.memory_space<vmem>>, vector<16x512xf32>,
    %c3_i32 = arith.constant 3 : i32
    %17 = arith.cmpi eq, %arg0, %c3_i32 : i32
    %18 = arith.extui %17 : i1 to i32
    %c0_i32_14 = arith.constant 0 : i32
    %19 = arith.cmpi ne, %18, %c0_i32_14 : i32
    scf.if %19 {
      %c0_15 = arith.constant 0 : index
      %c0_16 = arith.constant 0 : index
      %20 = vector.load %arg6[%c0_15, %c0_16] : memref<16x512xf32, #tpu.memory_space<vmem>>, vector<16x512xf32>
      %c0_17 = arith.constant 0 : index
      %c0_18 = arith.constant 0 : index
      %21 = vector.load %arg5[%c0_17, %c0_18] : memref<1x512xf32, #tpu.memory_space<vmem>>, vector<1x512xf32>
      %22 = vector.broadcast %21 : vector<1x512xf32> to vector<16x512xf32>
      %23 = arith.addf %20, %22 : vector<16x512xf32>
      %cst_19 = arith.constant 0.000000e+00 : f32
      %24 = vector.broadcast %cst_19 : f32 to vector<16x512xf32>
      %25 = arith.maximumf %23, %24 : vector<16x512xf32>
      %26 = arith.mulf %25, %25 : vector<16x512xf32>
      %cst_20 = arith.constant dense<0.000000e+00> : vector<16xf32>
      %27 = vector.multi_reduction <add>, %26, %cst_20 [1] : vector<16x512xf32> to vector<16xf32>
      %28 = vector.shape_cast %27 : vector<16xf32> to vector<16x1xf32>
      %cst_21 = arith.constant 1.000000e-24 : f32
      %29 = vector.broadcast %cst_21 : f32 to vector<16x1xf32>
      %30 = arith.maximumf %28, %29 : vector<16x1xf32>
      %31 = math.rsqrt %30 : vector<16x1xf32>
      %32 = vector.broadcast %31 : vector<16x1xf32> to vector<16x512xf32>
      %33 = arith.mulf %25, %32 : vector<16x512xf32>
      %c0_22 = arith.constant 0 : index
      %c0_23 = arith.constant 0 : index
      %34 = vector.load %arg6[%c0_22, %c0_23] : memref<16x512xf32, #tpu.memory_space<vmem>>, vector<16x512xf32>
      tpu.vector_store %arg6[%c0_22, %c0_23], %33 {strides = array<i32>} : memref<16x512xf32, #tpu.memory_space<vmem>>, vector<16x512xf32>,
    } else {
    }
    return
  }
  func.func @transform_0(%arg0: i32) -> (i32, i32) {
    %c0_i32 = arith.constant 0 : i32
    %c0_i32_0 = arith.constant 0 : i32
    %c0_i32_1 = arith.constant 0 : i32
    return %c0_i32, %c0_i32_0 : i32, i32
  }
  func.func @transform_1(%arg0: i32) -> (i32, i32) {
    %c0_i32 = arith.constant 0 : i32
    %c0_i32_0 = arith.constant 0 : i32
    return %c0_i32, %arg0 : i32, i32
  }
  func.func @transform_2(%arg0: i32) -> (i32, i32) {
    %c0_i32 = arith.constant 0 : i32
    %c0_i32_0 = arith.constant 0 : i32
    return %c0_i32, %arg0 : i32, i32
  }
  func.func @transform_3(%arg0: i32) -> (i32, i32) {
    %c0_i32 = arith.constant 0 : i32
    %c0_i32_0 = arith.constant 0 : i32
    return %arg0, %c0_i32 : i32, i32
  }
  func.func @transform_4(%arg0: i32) -> (i32, i32) {
    %c0_i32 = arith.constant 0 : i32
    %c0_i32_0 = arith.constant 0 : i32
    %c0_i32_1 = arith.constant 0 : i32
    return %c0_i32, %c0_i32_0 : i32, i32
  }
  func.func @transform_5(%arg0: i32) -> (i32, i32) {
    %c0_i32 = arith.constant 0 : i32
    %c0_i32_0 = arith.constant 0 : i32
    %c0_i32_1 = arith.constant 0 : i32
    return %c0_i32, %c0_i32_0 : i32, i32
  }
}

</mosaic_0001>

<bundles_post_ra>
// kernel: siamese_forward.2
= control target key start
LH: loop header
LB: loop body
LE: loop exit
PB: predicated region body
PF: predicated region fallthrough
CT: control target
= control target key end

     0   :  { %s2887_s12 = smov 0   ;;  %s2889_s13 = smov 0   ;;  %s3905_s0 = inlined_call_operand.vmem [shape: bf16[4,64,147], index: 0, kind: input, shape index: {}]   ;;  %s3906_s1 = inlined_call_operand.vmem [shape: bf16[147,2048], index: 1, kind: input, shape index: {}]   ;;  %s3907_s2 = inlined_call_operand.vmem [shape: f32[1,2048], index: 2, kind: input, shape index: {}]   ;;  %s3908_s3 = inlined_call_operand.vmem [shape: bf16[4,1,2048], index: 3, kind: output, shape index: {}]  }
   0x1   :  { %s2891_s14 = smov 0  }
   0x2 LB: > { %s25_s15 = sadd.s32 1, %s2859_s13  ;;  %p2572_p0 = scmp.ge.s32.totalorder %s2863_s14, 1  ;;  %s2863_s14 = sphi %s2891_s14, %s13_s14   ;;  %s2859_s13 = sphi %s2889_s13, %s3928_s13   ;;  %s2855_s12 = sphi %s2887_s12, %s3927_s12  }
   0x3   : > { %p27_p1 = scmp.ge.s32.totalorder %s25_s15, 4  ;;  %p157_p2 = scmp.lt.s32.totalorder %s2863_s14, 5 }
   0x5   : > { %s3930_s15 = smov (%p27_p1, %s25_s15), 0  ;;  %p158_p3 = pnand %p2572_p0, %p157_p2 }
   0x6   : > { %p186_p4 = scmp.lt.s32.totalorder (!%p158_p3), %s2855_s12, 3 }
   0x7   : > { %161 = sbr.rel (%p158_p3) target bundleno = 431 (0x1af), region = 32 }
   0xc   : > { %v341_v0 = vld [vmem:[%s3906_s1 + $0x380] sm:$0xff]  ;;  %v342_v2 = vld [vmem:[%s3906_s1 + $0x388] sm:$0xff]  ;;  %s3932_s12 = smov (!%p186_p4, %s2855_s12), 3  ;;  %vm1261_vm0 = vcmask 154624   ;;  %vm1274_vm1 = vcmask 1040384   ;;  %vm1275_vm2 = vcmask 1041408  }
   0xd   : > { %v349_v1 = vld [vmem:[%s3906_s1 + $0x3c0] sm:$0xff]  ;;  %v350_v4 = vld [vmem:[%s3906_s1 + $0x3c8] sm:$0xff]  ;;  %s2786_s25 = sshll.u32 %s3932_s12, 6  ;;  %v2865_v60 = vmov 65535   ;;  %vm2462_vm3 = vsmask.f32 256 }
   0xe   : > { %v2697_v3 = vcombine.high %v341_v0, %v349_v1  ;;  %v2696_v5 = vcombine.low %v341_v0, %v349_v1  ;;  %v325_v6 = vld [vmem:[%s3906_s1 + $0x300] sm:$0xff]  ;;  %v2699_v8 = vcombine.high %v342_v2, %v350_v4  ;;  %v2698_v9 = vcombine.low %v342_v2, %v350_v4  ;;  %v326_v11 = vld [vmem:[%s3906_s1 + $0x308] sm:$0xff]  ;;  %s2969_s5 = scalar_lea.vmem %s3905_s0, %s2786_s25  ;;  %vm3646_vm8 = vmand %vm1274_vm1, %vm2462_vm3  ;;  %s2575_s6 = sshll.u32 %s3932_s12, 4 }
   0xf   : > { %v333_v7 = vld [vmem:[%s3906_s1 + $0x340] sm:$0xff]  ;;  %v334_v12 = vld [vmem:[%s3906_s1 + $0x348] sm:$0xff]  ;;  %v1276_v61 = vsel %vm1274_vm1, 4294967295, %v2865_v60  ;;  %v288_v60 = vld [vmem:[%s3906_s1 + $0x1d8] sm:$0xff]  ;;  %vm2464_vm4 = vcmask 1041409   ;;  %vm2468_vm6 = vcmask 1042434   ;;  %s3774_s8 = scalar_lea.vmem %s3908_s3, %s2575_s6 }
  0x10   : > { %v2681_v10 = vcombine.high %v325_v6, %v333_v7  ;;  %v309_v13 = vld [vmem:[%s3906_s1 + $0x280] sm:$0xff]  ;;  %1326 = vmatprep.subr.bf16.mxu0 %v2697_v3  ;;  %v2683_v14 = vcombine.high %v326_v11, %v334_v12  ;;  %v310_v16 = vld [vmem:[%s3906_s1 + $0x288] sm:$0xff]  ;;  %1399 = vmatprep.subr.bf16.mxu1 %v2699_v8  ;;  %v2680_v18 = vcombine.low %v325_v6, %v333_v7  ;;  %v3027_v4 = vsel %vm1275_vm2, %v1276_v61, 0 }
  0x11   : > { %v317_v15 = vld [vmem:[%s3906_s1 + $0x2c0] sm:$0xff]  ;;  %v318_v17 = vld [vmem:[%s3906_s1 + $0x2c8] sm:$0xff]  ;;  %1327 = vmatpush1.bf16.msra.mxu0 %v2696_v5  ;;  %1400 = vmatpush1.bf16.msra.mxu1 %v2698_v9  ;;  %v2682_v19 = vcombine.low %v326_v11, %v334_v12  ;;  %vm2465_vm5 = vsmask.f32 1280  ;;  %vm2469_vm7 = vsmask.f32 2304 }
  0x12   : > { %1328 = vmatprep.subr.bf16.mxu0 %v2681_v10  ;;  %v2665_v20 = vcombine.high %v309_v13, %v317_v15  ;;  %1401 = vmatprep.subr.bf16.mxu1 %v2683_v14  ;;  %v2667_v21 = vcombine.high %v310_v16, %v318_v17  ;;  %v293_v22 = vld [vmem:[%s3906_s1 + $0x200] sm:$0xff]  ;;  %v294_v24 = vld [vmem:[%s3906_s1 + $0x208] sm:$0xff]  ;;  %v2664_v26 = vcombine.low %v309_v13, %v317_v15  ;;  %vm3653_vm9 = vmand %vm2464_vm4, %vm2465_vm5  ;;  %vm2472_vm12 = vcmask 1043459  }
  0x13   : > { %v301_v23 = vld [vmem:[%s3906_s1 + $0x240] sm:$0xff]  ;;  %v302_v25 = vld [vmem:[%s3906_s1 + $0x248] sm:$0xff]  ;;  %v2666_v27 = vcombine.low %v310_v16, %v318_v17  ;;  %vm2467_vm10 = vmor %vm3653_vm9, %vm3646_vm8  ;;  %vm2473_vm13 = vsmask.f32 3328  ;;  %vm2477_vm1 = vsmask.f32 4352 }
  0x14   : > { %v2649_v28 = vcombine.high %v293_v22, %v301_v23  ;;  %v2651_v29 = vcombine.high %v294_v24, %v302_v25  ;;  %v277_v30 = vld [vmem:[%s3906_s1 + $0x180] sm:$0xff]  ;;  %v278_v32 = vld [vmem:[%s3906_s1 + $0x188] sm:$0xff]  ;;  %v2648_v34 = vcombine.low %v293_v22, %v301_v23  ;;  %v2650_v35 = vcombine.low %v294_v24, %v302_v25  ;;  %v344_v22 = vld [vmem:[%s3906_s1 + $0x398] sm:$0xff] }
  0x15   : > { %1329 = vmatpush1.bf16.msra.mxu0 %v2680_v18  ;;  %1402 = vmatpush1.bf16.msra.mxu1 %v2682_v19  ;;  %v285_v31 = vld [vmem:[%s3906_s1 + $0x1c0] sm:$0xff]  ;;  %v286_v33 = vld [vmem:[%s3906_s1 + $0x1c8] sm:$0xff]  ;;  %v352_v23 = vld [vmem:[%s3906_s1 + $0x3d8] sm:$0xff]  ;;  %vm2480_vm4 = vcmask 1045509   ;;  %vm2481_vm5 = vsmask.f32 5376 }
  0x16   : > { %1330 = vmatprep.subr.bf16.mxu0 %v2665_v20  ;;  %1403 = vmatprep.subr.bf16.mxu1 %v2667_v21  ;;  %v2633_v36 = vcombine.high %v277_v30, %v285_v31  ;;  %v2978_v37 = vld [vmem:[%s2969_s5 + $0x4] ss:$8 sps:$4 sm:$0xff]   ;;  %v2635_v38 = vcombine.high %v278_v32, %v286_v33  ;;  %v2632_v43 = vcombine.low %v277_v30, %v285_v31  ;;  %v343_v20 = vld [vmem:[%s3906_s1 + $0x390] sm:$0xff]  ;;  %v3064_v30 = vld [vmem:[%s2969_s5] ss:$8 sps:$4 sm:$0xff]   ;;  %vm2484_vm8 = vcmask 1046534  }
  0x17   : > { %v261_v39 = vld [vmem:[%s3906_s1 + $0x100] sm:$0xff]  ;;  %v262_v41 = vld [vmem:[%s3906_s1 + $0x108] sm:$0xff]  ;;  %2744 = vmatprep.mubr.msk.bf16.mxu0 %vm1261_vm0, %v2978_v37  ;;  %2748 = vmatprep.mubr.msk.bf16.mxu1 %vm1261_vm0, %v2978_v37  ;;  %v2634_v44 = vcombine.low %v278_v32, %v286_v33  ;;  %v351_v21 = vld [vmem:[%s3906_s1 + $0x3d0] sm:$0xff]  ;;  %vm2485_vm9 = vsmask.f32 6400 }
  0x18   : > { %v269_v40 = vld [vmem:[%s3906_s1 + $0x140] sm:$0xff]  ;;  %v270_v42 = vld [vmem:[%s3906_s1 + $0x148] sm:$0xff]  ;;  %v328_v31 = vld [vmem:[%s3906_s1 + $0x318] sm:$0xff]  ;;  %v2700_v33 = vcombine.low %v343_v20, %v351_v21 }
  0x19   : > { %1331 = vmatpush1.bf16.msra.mxu0 %v2664_v26  ;;  %1404 = vmatpush1.bf16.msra.mxu1 %v2666_v27  ;;  %v2617_v45 = vcombine.high %v261_v39, %v269_v40  ;;  %v2619_v46 = vcombine.high %v262_v41, %v270_v42  ;;  %v245_v47 = vld [vmem:[%s3906_s1 + $0x80] sm:$0xff]  ;;  %v246_v49 = vld [vmem:[%s3906_s1 + $0x88] sm:$0xff]  ;;  %v2616_v51 = vcombine.low %v261_v39, %v269_v40  ;;  %v336_v32 = vld [vmem:[%s3906_s1 + $0x358] sm:$0xff] }
  0x1a   : > { %1332 = vmatprep.subr.bf16.mxu0 %v2649_v28  ;;  %1405 = vmatprep.subr.bf16.mxu1 %v2651_v29  ;;  %v253_v48 = vld [vmem:[%s3906_s1 + $0xc0] sm:$0xff]  ;;  %v254_v50 = vld [vmem:[%s3906_s1 + $0xc8] sm:$0xff]  ;;  %v2618_v52 = vcombine.low %v262_v41, %v270_v42  ;;  %v2701_v26 = vcombine.high %v343_v20, %v351_v21  ;;  %v2703_v27 = vcombine.high %v344_v22, %v352_v23  ;;  %v327_v28 = vld [vmem:[%s3906_s1 + $0x310] sm:$0xff] }
  0x1b   : > { %v2601_v53 = vcombine.high %v245_v47, %v253_v48  ;;  %v2603_v54 = vcombine.high %v246_v49, %v254_v50  ;;  %v229_v55 = vld [vmem:[%s3906_s1] sm:$0xff]  ;;  %v230_v58 = vld [vmem:[%s3906_s1 + $0x8] sm:$0xff]  ;;  %v2600_v63 = vcombine.low %v245_v47, %v253_v48  ;;  %v2602_v0 = vcombine.low %v246_v49, %v254_v50  ;;  %v335_v29 = vld [vmem:[%s3906_s1 + $0x350] sm:$0xff] }
  0x1c   : > { %v237_v56 = vld [vmem:[%s3906_s1 + $0x40] sm:$0xff]  ;;  %v238_v59 = vld [vmem:[%s3906_s1 + $0x48] sm:$0xff]  ;;  %v311_v39 = vld [vmem:[%s3906_s1 + $0x290] sm:$0xff] }
  0x1d   : > { %1333 = vmatpush1.bf16.msra.mxu0 %v2648_v34  ;;  %1406 = vmatpush1.bf16.msra.mxu1 %v2650_v35  ;;  %v373_v57 = vld [vmem:[%s3906_s1 + $0x480] sm:$0x33]  ;;  %v374_v62 = vld [vmem:[%s3906_s1 + $0x488] sm:$0x33]  ;;  %v2585_v1 = vcombine.high %v229_v55, %v237_v56  ;;  %v2587_v3 = vcombine.high %v230_v58, %v238_v59  ;;  %v2584_v6 = vcombine.low %v229_v55, %v237_v56  ;;  %v319_v40 = vld [vmem:[%s3906_s1 + $0x2d0] sm:$0xff] }
  0x1e   : > { %1334 = vmatprep.subr.bf16.mxu0 %v2633_v36  ;;  %1407 = vmatprep.subr.bf16.mxu1 %v2635_v38  ;;  %v2729_v2 = vcombine.high %v373_v57, %v373_v57  ;;  %v2731_v5 = vcombine.high %v374_v62, %v374_v62  ;;  %v2728_v7 = vcombine.low %v373_v57, %v373_v57  ;;  %v357_v12 = vld [vmem:[%s3906_s1 + $0x400] sm:$0xff]  ;;  %v358_v14 = vld [vmem:[%s3906_s1 + $0x408] sm:$0xff]  ;;  %v3073_v38 = vld [vmem:[%s2969_s5 + $0x14] ss:$8 sps:$4 sm:$0xff]  }
  0x1f   : > { %v2586_v8 = vcombine.low %v230_v58, %v238_v59  ;;  %v2730_v10 = vcombine.low %v374_v62, %v374_v62  ;;  %v365_v13 = vld [vmem:[%s3906_s1 + $0x440] sm:$0xff]  ;;  %v366_v15 = vld [vmem:[%s3906_s1 + $0x448] sm:$0xff]  ;;  %v2702_v34 = vcombine.low %v344_v22, %v352_v23  ;;  %v2685_v35 = vcombine.high %v327_v28, %v335_v29  ;;  %v312_v41 = vld [vmem:[%s3906_s1 + $0x298] sm:$0xff] }
  0x20   : > { %v1282_v9 = vand.u32 %v2729_v2, %v3027_v4  ;;  %v1288_v11 = vand.u32 %v2731_v5, %v3027_v4  ;;  %v1279_v16 = vand.u32 %v2728_v7, %v3027_v4  ;;  %v2713_v18 = vcombine.high %v357_v12, %v365_v13  ;;  %v320_v42 = vld [vmem:[%s3906_s1 + $0x2d8] sm:$0xff]  ;;  %v295_v47 = vld [vmem:[%s3906_s1 + $0x210] sm:$0xff]  ;;  %v3109_v56 = vld [vmem:[%s2969_s5 + $0x24] ss:$8 sps:$4 sm:$0xff]  }
  0x21   : > { %1335 = vmatpush1.bf16.msra.mxu0 %v2632_v43  ;;  %1408 = vmatpush1.bf16.msra.mxu1 %v2634_v44  ;;  %v1285_v17 = vand.u32 %v2730_v10, %v3027_v4  ;;  %v2715_v19 = vcombine.high %v358_v14, %v366_v15  ;;  %v2712_v24 = vcombine.low %v357_v12, %v365_v13  ;;  %v303_v48 = vld [vmem:[%s3906_s1 + $0x250] sm:$0xff]  ;;  %v296_v50 = vld [vmem:[%s3906_s1 + $0x218] sm:$0xff]  ;;  %vm2470_vm11 = vmand %vm2468_vm6, %vm2469_vm7 }
  0x22   : > { %1336 = vmatprep.subr.bf16.mxu0 %v2617_v45  ;;  %1409 = vmatprep.subr.bf16.mxu1 %v2619_v46  ;;  %v2714_v25 = vcombine.low %v358_v14, %v366_v15  ;;  %v2687_v36 = vcombine.high %v328_v31, %v336_v32  ;;  %v2684_v43 = vcombine.low %v327_v28, %v335_v29  ;;  %v3100_v49 = vld [vmem:[%s2969_s5 + $0x10] ss:$8 sps:$4 sm:$0xff]   ;;  %vm3684_vm14 = vmor %vm2470_vm11, %vm2467_vm10  ;;  %vm2488_vm11 = vcmask 1047559  }
  0x23   : > { %v2686_v44 = vcombine.low %v328_v31, %v336_v32  ;;  %v2669_v45 = vcombine.high %v311_v39, %v319_v40  ;;  %v2671_v46 = vcombine.high %v312_v41, %v320_v42  ;;  %v279_v57 = vld [vmem:[%s3906_s1 + $0x190] sm:$0xff]  ;;  %v280_v59 = vld [vmem:[%s3906_s1 + $0x198] sm:$0xff]  ;;  %v2652_v61 = vcombine.low %v295_v47, %v303_v48  ;;  %vm3688_vm15 = vmand %vm2472_vm12, %vm2473_vm13 }
  0x24   : > { %v287_v58 = vld [vmem:[%s3906_s1 + $0x1d0] sm:$0xff]  ;;  %v264_v5 = vld [vmem:[%s3906_s1 + $0x118] sm:$0xff]  ;;  %vm2475_vm2 = vmor %vm3688_vm15, %vm3684_vm14  ;;  %vm2489_vm13 = vsmask.f32 7424 }
  0x25   : > { %1337 = vmatpush1.bf16.msra.mxu0 %v2616_v51  ;;  %1410 = vmatpush1.bf16.msra.mxu1 %v2618_v52  ;;  %v304_v51 = vld [vmem:[%s3906_s1 + $0x258] sm:$0xff]  ;;  %v2668_v52 = vcombine.low %v311_v39, %v319_v40  ;;  %v271_v2 = vld [vmem:[%s3906_s1 + $0x150] sm:$0xff]  ;;  %v2636_v7 = vcombine.low %v279_v57, %v287_v58  ;;  %vm3717_vm7 = vmand %vm2480_vm4, %vm2481_vm5 }
  0x26   : > { %1338 = vmatprep.subr.bf16.mxu0 %v2601_v53  ;;  %1411 = vmatprep.subr.bf16.mxu1 %v2603_v54  ;;  %v2670_v53 = vcombine.low %v312_v41, %v320_v42  ;;  %v2653_v54 = vcombine.high %v295_v47, %v303_v48  ;;  %v2655_v55 = vcombine.high %v296_v50, %v304_v51  ;;  %v247_v12 = vld [vmem:[%s3906_s1 + $0x90] sm:$0xff]  ;;  %v248_v14 = vld [vmem:[%s3906_s1 + $0x98] sm:$0xff]  ;;  %vm3744_vm12 = vmand %vm2484_vm8, %vm2485_vm9 }
  0x27   : > { %v2654_v62 = vcombine.low %v296_v50, %v304_v51  ;;  %v255_v13 = vld [vmem:[%s3906_s1 + $0xd0] sm:$0xff]  ;;  %v256_v15 = vld [vmem:[%s3906_s1 + $0xd8] sm:$0xff]  ;;  %v345_v51 = vld [vmem:[%s3906_s1 + $0x3a0] sm:$0xff] }
  0x28   : > { %v2607_v20 = vcombine.high %v248_v14, %v256_v15  ;;  %v231_v21 = vld [vmem:[%s3906_s1 + $0x10] sm:$0xff]  ;;  %v2606_v28 = vcombine.low %v248_v14, %v256_v15  ;;  %v297_v15 = vld [vmem:[%s3906_s1 + $0x220] sm:$0xff]  ;;  %vm3778_vm15 = vmand %vm2488_vm11, %vm2489_vm13 }
  0x29   : > { %1339 = vmatpush1.bf16.msra.mxu0 %v2600_v63  ;;  %1412 = vmatpush1.bf16.msra.mxu1 %v2602_v0  ;;  %v2637_v63 = vcombine.high %v279_v57, %v287_v58  ;;  %v2639_v0 = vcombine.high %v280_v59, %v288_v60  ;;  %v239_v22 = vld [vmem:[%s3906_s1 + $0x50] sm:$0xff] }
  0x2a   : > { %1340 = vmatprep.subr.bf16.mxu0 %v2585_v1  ;;  %1413 = vmatprep.subr.bf16.mxu1 %v2587_v3  ;;  %v263_v1 = vld [vmem:[%s3906_s1 + $0x110] sm:$0xff]  ;;  %v3136_v3 = vld [vmem:[%s2969_s5 + $0x20] ss:$8 sps:$4 sm:$0xff]   ;;  %v2589_v29 = vcombine.high %v231_v21, %v239_v22 }
  0x2b   : > { %v375_v23 = vld [vmem:[%s3906_s1 + $0x490] sm:$0x33] }
  0x2c   : > { %v2733_v31 = vcombine.high %v375_v23, %v375_v23  ;;  %v359_v42 = vld [vmem:[%s3906_s1 + $0x410] sm:$0xff] }
  0x2d   : > { %1341 = vmatpush1.bf16.msra.mxu0 %v2584_v6  ;;  %1414 = vmatpush1.bf16.msra.mxu1 %v2586_v8  ;;  %v272_v6 = vld [vmem:[%s3906_s1 + $0x158] sm:$0xff]  ;;  %v2638_v8 = vcombine.low %v280_v59, %v288_v60  ;;  %v329_v60 = vld [vmem:[%s3906_s1 + $0x320] sm:$0xff] }
  0x2e   : > { %1354 = vmatprep.subr.bf16.mxu0 %v1282_v9  ;;  %1427 = vmatprep.subr.bf16.mxu1 %v1288_v11  ;;  %v2621_v9 = vcombine.high %v263_v1, %v271_v2  ;;  %v2623_v10 = vcombine.high %v264_v5, %v272_v6  ;;  %v3145_v11 = vld [vmem:[%s2969_s5 + $0x34] ss:$8 sps:$4 sm:$0xff]   ;;  %v1294_v39 = vand.u32 %v2733_v31, %v3027_v4 }
  0x31   : > { %1355 = vmatpush2.bf16.msra.mxu0 %v1279_v16  ;;  %1428 = vmatpush2.bf16.msra.mxu1 %v1285_v17  ;;  %v2620_v16 = vcombine.low %v263_v1, %v271_v2  ;;  %v2622_v17 = vcombine.low %v264_v5, %v272_v6  ;;  %v313_v6 = vld [vmem:[%s3906_s1 + $0x2a0] sm:$0xff] }
  0x32   : > { %1356 = vmatprep.subr.bf16.mxu0 %v2713_v18  ;;  %1429 = vmatprep.subr.bf16.mxu1 %v2715_v19  ;;  %v3162_v18 = vld [vmem:[%s2969_s5 + $0x30] ss:$8 sps:$4 sm:$0xff]   ;;  %v2605_v19 = vcombine.high %v247_v12, %v255_v13 }
  0x35   : > { %1357 = vmatpush2.bf16.msra.mxu0 %v2712_v24  ;;  %1430 = vmatpush2.bf16.msra.mxu1 %v2714_v25  ;;  %v232_v24 = vld [vmem:[%s3906_s1 + $0x18] sm:$0xff] }
  0x36   : > { %1472 = vmatprep.subr.bf16.mxu0 %v2701_v26  ;;  %1545 = vmatprep.subr.bf16.mxu1 %v2703_v27  ;;  %v240_v25 = vld [vmem:[%s3906_s1 + $0x58] sm:$0xff]  ;;  %v2604_v27 = vcombine.low %v247_v12, %v255_v13 }
  0x37   : > { %v376_v26 = vld [vmem:[%s3906_s1 + $0x498] sm:$0x33]  ;;  %v2591_v32 = vcombine.high %v232_v24, %v240_v25 }
  0x38   : > { %1359 = vmatmul.mubr.bf16.vlgmr.msra.gmra.mxu0 %v3064_v30  ;;  %1432 = vmatmul.mubr.bf16.vlgmr.msra.gmra.mxu1 %v3064_v30  ;;  %v2734_v40 = vcombine.low %v376_v26, %v376_v26 }
  0x39   : > { %1473 = vmatpush1.bf16.msra.mxu0 %v2700_v33  ;;  %1546 = vmatpush1.bf16.msra.mxu1 %v2702_v34  ;;  %v2735_v33 = vcombine.high %v376_v26, %v376_v26  ;;  %v2588_v34 = vcombine.low %v231_v21, %v239_v22  ;;  %v282_v26 = vld [vmem:[%s3906_s1 + $0x1a8] sm:$0xff] }
  0x3a   : > { %1474 = vmatprep.subr.bf16.mxu0 %v2685_v35  ;;  %1547 = vmatprep.subr.bf16.mxu1 %v2687_v36  ;;  %v2732_v35 = vcombine.low %v375_v23, %v375_v23  ;;  %v2590_v36 = vcombine.low %v232_v24, %v240_v25  ;;  %v1297_v47 = vand.u32 %v2734_v40, %v3027_v4  ;;  %v281_v24 = vld [vmem:[%s3906_s1 + $0x1a0] sm:$0xff] }
  0x3b   : > { %2745 = vmatprep.mubr.msk.bf16.mxu0 %vm1261_vm0, %v3073_v38  ;;  %2749 = vmatprep.mubr.msk.bf16.mxu1 %vm1261_vm0, %v3073_v38  ;;  %v1300_v41 = vand.u32 %v2735_v33, %v3027_v4  ;;  %v289_v25 = vld [vmem:[%s3906_s1 + $0x1e0] sm:$0xff] }
  0x3c   : > { %v2641_v31 = vcombine.high %v281_v24, %v289_v25  ;;  %v265_v33 = vld [vmem:[%s3906_s1 + $0x120] sm:$0xff] }
  0x3d   : > { %1475 = vmatpush1.bf16.msra.mxu0 %v2684_v43  ;;  %1548 = vmatpush1.bf16.msra.mxu1 %v2686_v44  ;;  %v367_v43 = vld [vmem:[%s3906_s1 + $0x450] sm:$0xff]  ;;  %v360_v44 = vld [vmem:[%s3906_s1 + $0x418] sm:$0xff] }
  0x3e   : > { %1476 = vmatprep.subr.bf16.mxu0 %v2669_v45  ;;  %1549 = vmatprep.subr.bf16.mxu1 %v2671_v46  ;;  %v368_v45 = vld [vmem:[%s3906_s1 + $0x458] sm:$0xff]  ;;  %v1291_v46 = vand.u32 %v2732_v35, %v3027_v4  ;;  %v2717_v48 = vcombine.high %v359_v42, %v367_v43  ;;  %v266_v35 = vld [vmem:[%s3906_s1 + $0x128] sm:$0xff] }
  0x3f   : > { %v2719_v50 = vcombine.high %v360_v44, %v368_v45  ;;  %v2718_v57 = vcombine.low %v360_v44, %v368_v45  ;;  %v257_v44 = vld [vmem:[%s3906_s1 + $0xe0] sm:$0xff]  ;;  %v250_v45 = vld [vmem:[%s3906_s1 + $0xa8] sm:$0xff] }
  0x40   : > { %1369 = vmatmul.mubr.bf16.gmra.mxu0 %v3100_v49  ;;  %1442 = vmatmul.mubr.bf16.gmra.mxu1 %v3100_v49 }
  0x41   : > { %1477 = vmatpush1.bf16.msra.mxu0 %v2668_v52  ;;  %1550 = vmatpush1.bf16.msra.mxu1 %v2670_v53  ;;  %v353_v52 = vld [vmem:[%s3906_s1 + $0x3e0] sm:$0xff]  ;;  %v346_v53 = vld [vmem:[%s3906_s1 + $0x3a8] sm:$0xff] }
  0x42   : > { %1478 = vmatprep.subr.bf16.mxu0 %v2653_v54  ;;  %1551 = vmatprep.subr.bf16.mxu1 %v2655_v55  ;;  %v354_v54 = vld [vmem:[%s3906_s1 + $0x3e8] sm:$0xff]  ;;  %v2716_v55 = vcombine.low %v359_v42, %v367_v43  ;;  %v2705_v58 = vcombine.high %v345_v51, %v353_v52  ;;  %v249_v43 = vld [vmem:[%s3906_s1 + $0xa0] sm:$0xff] }
  0x43   : > { %2746 = vmatprep.mubr.msk.bf16.mxu0 %vm1261_vm0, %v3109_v56  ;;  %2750 = vmatprep.mubr.msk.bf16.mxu1 %vm1261_vm0, %v3109_v56  ;;  %v2707_v59 = vcombine.high %v346_v53, %v354_v54  ;;  %v2706_v1 = vcombine.low %v346_v53, %v354_v54  ;;  %v241_v53 = vld [vmem:[%s3906_s1 + $0x60] sm:$0xff] }
  0x44   : > { %v377_v54 = vld [vmem:[%s3906_s1 + $0x4a0] sm:$0x33] }
  0x45   : > { %1479 = vmatpush1.bf16.msra.mxu0 %v2652_v61  ;;  %1552 = vmatpush1.bf16.msra.mxu1 %v2654_v62  ;;  %v337_v61 = vld [vmem:[%s3906_s1 + $0x360] sm:$0xff]  ;;  %v330_v62 = vld [vmem:[%s3906_s1 + $0x328] sm:$0xff] }
  0x46   : > { %1480 = vmatprep.subr.bf16.mxu0 %v2637_v63  ;;  %1553 = vmatprep.subr.bf16.mxu1 %v2639_v0  ;;  %v338_v63 = vld [vmem:[%s3906_s1 + $0x368] sm:$0xff]  ;;  %v2704_v0 = vcombine.low %v345_v51, %v353_v52  ;;  %v2689_v2 = vcombine.high %v329_v60, %v337_v61  ;;  %v233_v52 = vld [vmem:[%s3906_s1 + $0x20] sm:$0xff] }
  0x47   : > { %v2691_v5 = vcombine.high %v330_v62, %v338_v63  ;;  %v2690_v12 = vcombine.low %v330_v62, %v338_v63  ;;  %v2737_v62 = vcombine.high %v377_v54, %v377_v54 }
  0x48   : > { %1379 = vmatmul.mubr.bf16.gmra.mxu0 %v3136_v3  ;;  %1452 = vmatmul.mubr.bf16.gmra.mxu1 %v3136_v3 }
  0x49   : > { %1481 = vmatpush1.bf16.msra.mxu0 %v2636_v7  ;;  %1554 = vmatpush1.bf16.msra.mxu1 %v2638_v8  ;;  %v321_v7 = vld [vmem:[%s3906_s1 + $0x2e0] sm:$0xff]  ;;  %v314_v8 = vld [vmem:[%s3906_s1 + $0x2a8] sm:$0xff] }
  0x4a   : > { %1482 = vmatprep.subr.bf16.mxu0 %v2621_v9  ;;  %1555 = vmatprep.subr.bf16.mxu1 %v2623_v10  ;;  %v322_v9 = vld [vmem:[%s3906_s1 + $0x2e8] sm:$0xff]  ;;  %v2688_v10 = vcombine.low %v329_v60, %v337_v61  ;;  %v2673_v13 = vcombine.high %v313_v6, %v321_v7  ;;  %v2593_v61 = vcombine.high %v233_v52, %v241_v53 }
  0x4b   : > { %2747 = vmatprep.mubr.msk.bf16.mxu0 %vm1261_vm0, %v3145_v11  ;;  %2751 = vmatprep.mubr.msk.bf16.mxu1 %vm1261_vm0, %v3145_v11  ;;  %v2675_v14 = vcombine.high %v314_v8, %v322_v9  ;;  %v2674_v21 = vcombine.low %v314_v8, %v322_v9  ;;  %v361_v9 = vld [vmem:[%s3906_s1 + $0x420] sm:$0xff] }
  0x4d   : > { %1483 = vmatpush1.bf16.msra.mxu0 %v2620_v16  ;;  %1556 = vmatpush1.bf16.msra.mxu1 %v2622_v17  ;;  %v305_v16 = vld [vmem:[%s3906_s1 + $0x260] sm:$0xff]  ;;  %v298_v17 = vld [vmem:[%s3906_s1 + $0x228] sm:$0xff] }
  0x4e   : > { %1484 = vmatprep.subr.bf16.mxu0 %v2605_v19  ;;  %1557 = vmatprep.subr.bf16.mxu1 %v2607_v20  ;;  %v306_v19 = vld [vmem:[%s3906_s1 + $0x268] sm:$0xff]  ;;  %v2672_v20 = vcombine.low %v313_v6, %v321_v7  ;;  %v2657_v22 = vcombine.high %v297_v15, %v305_v16  ;;  %v1306_v6 = vand.u32 %v2737_v62, %v3027_v4 }
  0x4f   : > { %v2659_v23 = vcombine.high %v298_v17, %v306_v19 }
  0x50   : > { %1389 = vmatmul.mubr.bf16.gmra.mxu0 %v3162_v18  ;;  %1462 = vmatmul.mubr.bf16.gmra.mxu1 %v3162_v18 }
  0x51   : > { %1485 = vmatpush1.bf16.msra.mxu0 %v2604_v27  ;;  %1558 = vmatpush1.bf16.msra.mxu1 %v2606_v28  ;;  %v290_v27 = vld [vmem:[%s3906_s1 + $0x1e8] sm:$0xff]  ;;  %v2656_v28 = vcombine.low %v297_v15, %v305_v16 }
  0x52   : > { %1486 = vmatprep.subr.bf16.mxu0 %v2589_v29  ;;  %1559 = vmatprep.subr.bf16.mxu1 %v2591_v32  ;;  %v2658_v29 = vcombine.low %v298_v17, %v306_v19  ;;  %v2643_v32 = vcombine.high %v282_v26, %v290_v27  ;;  %v2642_v40 = vcombine.low %v282_v26, %v290_v27  ;;  %v347_v19 = vld [vmem:[%s3906_s1 + $0x3b0] sm:$0xff] }
  0x53   : > { %2752 = vmatprep.mubr.msk.bf16.mxu0 %vm1261_vm0, %v2978_v37  ;;  %2756 = vmatprep.mubr.msk.bf16.mxu1 %vm1261_vm0, %v2978_v37  ;;  %v331_v27 = vld [vmem:[%s3906_s1 + $0x330] sm:$0xff] }
  0x55   : > { %1487 = vmatpush1.bf16.msra.mxu0 %v2588_v34  ;;  %1560 = vmatpush1.bf16.msra.mxu1 %v2590_v36  ;;  %v273_v34 = vld [vmem:[%s3906_s1 + $0x160] sm:$0xff]  ;;  %v274_v36 = vld [vmem:[%s3906_s1 + $0x168] sm:$0xff] }
  0x56   : > { %1500 = vmatprep.subr.bf16.mxu0 %v1294_v39  ;;  %1573 = vmatprep.subr.bf16.mxu1 %v1300_v41  ;;  %v2640_v39 = vcombine.low %v281_v24, %v289_v25  ;;  %v2625_v41 = vcombine.high %v265_v33, %v273_v34  ;;  %v2627_v42 = vcombine.high %v266_v35, %v274_v36 }
  0x59   : > { %1501 = vmatpush2.bf16.msra.mxu0 %v1291_v46  ;;  %1574 = vmatpush2.bf16.msra.mxu1 %v1297_v47  ;;  %v258_v46 = vld [vmem:[%s3906_s1 + $0xe8] sm:$0xff]  ;;  %v2624_v47 = vcombine.low %v265_v33, %v273_v34 }
  0x5a   : > { %1502 = vmatprep.subr.bf16.mxu0 %v2717_v48  ;;  %1575 = vmatprep.subr.bf16.mxu1 %v2719_v50  ;;  %v2626_v48 = vcombine.low %v266_v35, %v274_v36  ;;  %v2609_v50 = vcombine.high %v249_v43, %v257_v44  ;;  %v2611_v51 = vcombine.high %v250_v45, %v258_v46  ;;  %v315_v36 = vld [vmem:[%s3906_s1 + $0x2b0] sm:$0xff] }
  0x5b   : > { %v2610_v60 = vcombine.low %v250_v45, %v258_v46  ;;  %v299_v46 = vld [vmem:[%s3906_s1 + $0x230] sm:$0xff] }
  0x5d   : > { %1503 = vmatpush2.bf16.msra.mxu0 %v2716_v55  ;;  %1576 = vmatpush2.bf16.msra.mxu1 %v2718_v57  ;;  %v234_v55 = vld [vmem:[%s3906_s1 + $0x28] sm:$0xff] }
  0x5e   : > { %1618 = vmatprep.subr.bf16.mxu0 %v2705_v58  ;;  %1691 = vmatprep.subr.bf16.mxu1 %v2707_v59  ;;  %v242_v57 = vld [vmem:[%s3906_s1 + $0x68] sm:$0xff]  ;;  %v2608_v59 = vcombine.low %v249_v43, %v257_v44 }
  0x5f   : > { %v378_v58 = vld [vmem:[%s3906_s1 + $0x4a8] sm:$0x33]  ;;  %v2595_v63 = vcombine.high %v234_v55, %v242_v57 }
  0x60   : > { %1505 = vmatmul.mubr.bf16.vlgmr.msra.gmra.mxu0 %v3064_v30  ;;  %1578 = vmatmul.mubr.bf16.vlgmr.msra.gmra.mxu1 %v3064_v30  ;;  %v2738_v7 = vcombine.low %v378_v58, %v378_v58 }
  0x61   : > { %1619 = vmatpush1.bf16.msra.mxu0 %v2704_v0  ;;  %1692 = vmatpush1.bf16.msra.mxu1 %v2706_v1  ;;  %v2739_v0 = vcombine.high %v378_v58, %v378_v58  ;;  %v2592_v1 = vcombine.low %v233_v52, %v241_v53  ;;  %v284_v58 = vld [vmem:[%s3906_s1 + $0x1b8] sm:$0xff] }
  0x62   : > { %1620 = vmatprep.subr.bf16.mxu0 %v2689_v2  ;;  %1693 = vmatprep.subr.bf16.mxu1 %v2691_v5  ;;  %v2736_v2 = vcombine.low %v377_v54, %v377_v54  ;;  %v2594_v5 = vcombine.low %v234_v55, %v242_v57  ;;  %v1309_v15 = vand.u32 %v2738_v7, %v3027_v4  ;;  %v283_v55 = vld [vmem:[%s3906_s1 + $0x1b0] sm:$0xff] }
  0x63   : > { %2753 = vmatprep.mubr.msk.bf16.mxu0 %vm1261_vm0, %v3073_v38  ;;  %2757 = vmatprep.mubr.msk.bf16.mxu1 %vm1261_vm0, %v3073_v38  ;;  %v1312_v8 = vand.u32 %v2739_v0, %v3027_v4  ;;  %v291_v57 = vld [vmem:[%s3906_s1 + $0x1f0] sm:$0xff] }
  0x64   : > { %v2645_v62 = vcombine.high %v283_v55, %v291_v57  ;;  %v267_v0 = vld [vmem:[%s3906_s1 + $0x130] sm:$0xff] }
  0x65   : > { %1621 = vmatpush1.bf16.msra.mxu0 %v2688_v10  ;;  %1694 = vmatpush1.bf16.msra.mxu1 %v2690_v12  ;;  %v369_v10 = vld [vmem:[%s3906_s1 + $0x460] sm:$0xff]  ;;  %v362_v12 = vld [vmem:[%s3906_s1 + $0x428] sm:$0xff] }
  0x66   : > { %1622 = vmatprep.subr.bf16.mxu0 %v2673_v13  ;;  %1695 = vmatprep.subr.bf16.mxu1 %v2675_v14  ;;  %v370_v13 = vld [vmem:[%s3906_s1 + $0x468] sm:$0xff]  ;;  %v1303_v14 = vand.u32 %v2736_v2, %v3027_v4  ;;  %v2721_v16 = vcombine.high %v361_v9, %v369_v10  ;;  %v268_v2 = vld [vmem:[%s3906_s1 + $0x138] sm:$0xff] }
  0x67   : > { %v2723_v17 = vcombine.high %v362_v12, %v370_v13  ;;  %v2722_v24 = vcombine.low %v362_v12, %v370_v13  ;;  %v259_v12 = vld [vmem:[%s3906_s1 + $0xf0] sm:$0xff]  ;;  %v252_v13 = vld [vmem:[%s3906_s1 + $0xb8] sm:$0xff] }
  0x68   : > { %1515 = vmatmul.mubr.bf16.gmra.mxu0 %v3100_v49  ;;  %1588 = vmatmul.mubr.bf16.gmra.mxu1 %v3100_v49 }
  0x69   : > { %1623 = vmatpush1.bf16.msra.mxu0 %v2672_v20  ;;  %1696 = vmatpush1.bf16.msra.mxu1 %v2674_v21  ;;  %v355_v20 = vld [vmem:[%s3906_s1 + $0x3f0] sm:$0xff]  ;;  %v348_v21 = vld [vmem:[%s3906_s1 + $0x3b8] sm:$0xff] }
  0x6a   : > { %1624 = vmatprep.subr.bf16.mxu0 %v2657_v22  ;;  %1697 = vmatprep.subr.bf16.mxu1 %v2659_v23  ;;  %v356_v22 = vld [vmem:[%s3906_s1 + $0x3f8] sm:$0xff]  ;;  %v2720_v23 = vcombine.low %v361_v9, %v369_v10  ;;  %v2709_v25 = vcombine.high %v347_v19, %v355_v20  ;;  %v251_v10 = vld [vmem:[%s3906_s1 + $0xb0] sm:$0xff] }
  0x6b   : > { %2754 = vmatprep.mubr.msk.bf16.mxu0 %vm1261_vm0, %v3109_v56  ;;  %2758 = vmatprep.mubr.msk.bf16.mxu1 %vm1261_vm0, %v3109_v56  ;;  %v2711_v26 = vcombine.high %v348_v21, %v356_v22  ;;  %v2710_v33 = vcombine.low %v348_v21, %v356_v22  ;;  %v243_v21 = vld [vmem:[%s3906_s1 + $0x70] sm:$0xff] }
  0x6c   : > { %v379_v22 = vld [vmem:[%s3906_s1 + $0x4b0] sm:$0x33] }
  0x6d   : > { %1625 = vmatpush1.bf16.msra.mxu0 %v2656_v28  ;;  %1698 = vmatpush1.bf16.msra.mxu1 %v2658_v29  ;;  %v339_v28 = vld [vmem:[%s3906_s1 + $0x370] sm:$0xff]  ;;  %v332_v29 = vld [vmem:[%s3906_s1 + $0x338] sm:$0xff] }
  0x6e   : > { %1626 = vmatprep.subr.bf16.mxu0 %v2641_v31  ;;  %1699 = vmatprep.subr.bf16.mxu1 %v2643_v32  ;;  %v340_v31 = vld [vmem:[%s3906_s1 + $0x378] sm:$0xff]  ;;  %v2708_v32 = vcombine.low %v347_v19, %v355_v20  ;;  %v2693_v34 = vcombine.high %v331_v27, %v339_v28  ;;  %v235_v20 = vld [vmem:[%s3906_s1 + $0x30] sm:$0xff] }
  0x6f   : > { %v2695_v35 = vcombine.high %v332_v29, %v340_v31  ;;  %v2694_v43 = vcombine.low %v332_v29, %v340_v31  ;;  %v2741_v29 = vcombine.high %v379_v22, %v379_v22 }
  0x70   : > { %1525 = vmatmul.mubr.bf16.gmra.mxu0 %v3136_v3  ;;  %1598 = vmatmul.mubr.bf16.gmra.mxu1 %v3136_v3 }
  0x71   : > { %1627 = vmatpush1.bf16.msra.mxu0 %v2640_v39  ;;  %1700 = vmatpush1.bf16.msra.mxu1 %v2642_v40  ;;  %v323_v39 = vld [vmem:[%s3906_s1 + $0x2f0] sm:$0xff]  ;;  %v316_v40 = vld [vmem:[%s3906_s1 + $0x2b8] sm:$0xff] }
  0x72   : > { %1628 = vmatprep.subr.bf16.mxu0 %v2625_v41  ;;  %1701 = vmatprep.subr.bf16.mxu1 %v2627_v42  ;;  %v324_v41 = vld [vmem:[%s3906_s1 + $0x2f8] sm:$0xff]  ;;  %v2692_v42 = vcombine.low %v331_v27, %v339_v28  ;;  %v2677_v44 = vcombine.high %v315_v36, %v323_v39  ;;  %v2597_v28 = vcombine.high %v235_v20, %v243_v21 }
  0x73   : > { %2755 = vmatprep.mubr.msk.bf16.mxu0 %vm1261_vm0, %v3145_v11  ;;  %2759 = vmatprep.mubr.msk.bf16.mxu1 %vm1261_vm0, %v3145_v11  ;;  %v2679_v45 = vcombine.high %v316_v40, %v324_v41  ;;  %v2678_v52 = vcombine.low %v316_v40, %v324_v41  ;;  %v363_v41 = vld [vmem:[%s3906_s1 + $0x430] sm:$0xff] }
  0x75   : > { %1629 = vmatpush1.bf16.msra.mxu0 %v2624_v47  ;;  %1702 = vmatpush1.bf16.msra.mxu1 %v2626_v48  ;;  %v307_v47 = vld [vmem:[%s3906_s1 + $0x270] sm:$0xff]  ;;  %v300_v48 = vld [vmem:[%s3906_s1 + $0x238] sm:$0xff] }
  0x76   : > { %1630 = vmatprep.subr.bf16.mxu0 %v2609_v50  ;;  %1703 = vmatprep.subr.bf16.mxu1 %v2611_v51  ;;  %v308_v50 = vld [vmem:[%s3906_s1 + $0x278] sm:$0xff]  ;;  %v2676_v51 = vcombine.low %v315_v36, %v323_v39  ;;  %v2661_v53 = vcombine.high %v299_v46, %v307_v47  ;;  %v1318_v36 = vand.u32 %v2741_v29, %v3027_v4 }
  0x77   : > { %v2663_v54 = vcombine.high %v300_v48, %v308_v50 }
  0x78   : > { %1535 = vmatmul.mubr.bf16.gmra.mxu0 %v3162_v18  ;;  %1608 = vmatmul.mubr.bf16.gmra.mxu1 %v3162_v18 }
  0x79   : > { %1631 = vmatpush1.bf16.msra.mxu0 %v2608_v59  ;;  %1704 = vmatpush1.bf16.msra.mxu1 %v2610_v60  ;;  %v292_v59 = vld [vmem:[%s3906_s1 + $0x1f8] sm:$0xff]  ;;  %v2660_v60 = vcombine.low %v299_v46, %v307_v47 }
  0x7a   : > { %1632 = vmatprep.subr.bf16.mxu0 %v2593_v61  ;;  %1705 = vmatprep.subr.bf16.mxu1 %v2595_v63  ;;  %v2662_v61 = vcombine.low %v300_v48, %v308_v50  ;;  %v2647_v63 = vcombine.high %v284_v58, %v292_v59  ;;  %v2646_v7 = vcombine.low %v284_v58, %v292_v59 }
  0x7b   : > { %2760 = vmatprep.mubr.msk.bf16.mxu0 %vm1261_vm0, %v2978_v37  ;;  %2764 = vmatprep.mubr.msk.bf16.mxu1 %vm1261_vm0, %v2978_v37 }
  0x7d   : > { %1633 = vmatpush1.bf16.msra.mxu0 %v2592_v1  ;;  %1706 = vmatpush1.bf16.msra.mxu1 %v2594_v5  ;;  %v275_v1 = vld [vmem:[%s3906_s1 + $0x170] sm:$0xff]  ;;  %v276_v5 = vld [vmem:[%s3906_s1 + $0x178] sm:$0xff] }
  0x7e   : > { %1646 = vmatprep.subr.bf16.mxu0 %v1306_v6  ;;  %1719 = vmatprep.subr.bf16.mxu1 %v1312_v8  ;;  %v2644_v6 = vcombine.low %v283_v55, %v291_v57  ;;  %v2629_v8 = vcombine.high %v267_v0, %v275_v1  ;;  %v2631_v9 = vcombine.high %v268_v2, %v276_v5 }
  0x81   : > { %1647 = vmatpush2.bf16.msra.mxu0 %v1303_v14  ;;  %1720 = vmatpush2.bf16.msra.mxu1 %v1309_v15  ;;  %v260_v14 = vld [vmem:[%s3906_s1 + $0xf8] sm:$0xff]  ;;  %v2628_v15 = vcombine.low %v267_v0, %v275_v1 }
  0x82   : > { %1648 = vmatprep.subr.bf16.mxu0 %v2721_v16  ;;  %1721 = vmatprep.subr.bf16.mxu1 %v2723_v17  ;;  %v2630_v16 = vcombine.low %v268_v2, %v276_v5  ;;  %v2613_v17 = vcombine.high %v251_v10, %v259_v12  ;;  %v2615_v19 = vcombine.high %v252_v13, %v260_v14 }
  0x83   : > { %v2614_v27 = vcombine.low %v252_v13, %v260_v14 }
  0x85   : > { %1649 = vmatpush2.bf16.msra.mxu0 %v2720_v23  ;;  %1722 = vmatpush2.bf16.msra.mxu1 %v2722_v24  ;;  %v236_v23 = vld [vmem:[%s3906_s1 + $0x38] sm:$0xff] }
  0x86   : > { %1764 = vmatprep.subr.bf16.mxu0 %v2709_v25  ;;  %1837 = vmatprep.subr.bf16.mxu1 %v2711_v26  ;;  %v244_v24 = vld [vmem:[%s3906_s1 + $0x78] sm:$0xff]  ;;  %v2612_v26 = vcombine.low %v251_v10, %v259_v12 }
  0x87   : > { %v380_v25 = vld [vmem:[%s3906_s1 + $0x4b8] sm:$0x33]  ;;  %v2599_v31 = vcombine.high %v236_v23, %v244_v24 }
  0x88   : > { %1651 = vmatmul.mubr.bf16.vlgmr.msra.gmra.mxu0 %v3064_v30  ;;  %1724 = vmatmul.mubr.bf16.vlgmr.msra.gmra.mxu1 %v3064_v30  ;;  %v2742_v39 = vcombine.low %v380_v25, %v380_v25 }
  0x89   : > { %1765 = vmatpush1.bf16.msra.mxu0 %v2708_v32  ;;  %1838 = vmatpush1.bf16.msra.mxu1 %v2710_v33  ;;  %v2743_v32 = vcombine.high %v380_v25, %v380_v25  ;;  %v2596_v33 = vcombine.low %v235_v20, %v243_v21 }
  0x8a   : > { %1766 = vmatprep.subr.bf16.mxu0 %v2693_v34  ;;  %1839 = vmatprep.subr.bf16.mxu1 %v2695_v35  ;;  %v2740_v34 = vcombine.low %v379_v22, %v379_v22  ;;  %v2598_v35 = vcombine.low %v236_v23, %v244_v24  ;;  %v1321_v46 = vand.u32 %v2742_v39, %v3027_v4 }
  0x8b   : > { %2761 = vmatprep.mubr.msk.bf16.mxu0 %vm1261_vm0, %v3073_v38  ;;  %2765 = vmatprep.mubr.msk.bf16.mxu1 %vm1261_vm0, %v3073_v38  ;;  %v1324_v40 = vand.u32 %v2743_v32, %v3027_v4 }
  0x8d   : > { %1767 = vmatpush1.bf16.msra.mxu0 %v2692_v42  ;;  %1840 = vmatpush1.bf16.msra.mxu1 %v2694_v43  ;;  %v371_v42 = vld [vmem:[%s3906_s1 + $0x470] sm:$0xff]  ;;  %v364_v43 = vld [vmem:[%s3906_s1 + $0x438] sm:$0xff] }
  0x8e   : > { %1768 = vmatprep.subr.bf16.mxu0 %v2677_v44  ;;  %1841 = vmatprep.subr.bf16.mxu1 %v2679_v45  ;;  %v372_v44 = vld [vmem:[%s3906_s1 + $0x478] sm:$0xff]  ;;  %v1315_v45 = vand.u32 %v2740_v34, %v3027_v4  ;;  %v2725_v47 = vcombine.high %v363_v41, %v371_v42  ;;  %v2724_v50 = vcombine.low %v363_v41, %v371_v42 }
  0x8f   : > { %v2727_v48 = vcombine.high %v364_v43, %v372_v44 }
  0x90   : > { %1661 = vmatmul.mubr.bf16.gmra.mxu0 %v3100_v49  ;;  %1734 = vmatmul.mubr.bf16.gmra.mxu1 %v3100_v49 }
  0x91   : > { %1769 = vmatpush1.bf16.msra.mxu0 %v2676_v51  ;;  %1842 = vmatpush1.bf16.msra.mxu1 %v2678_v52  ;;  %v2726_v51 = vcombine.low %v364_v43, %v372_v44 }
  0x92   : > { %1770 = vmatprep.subr.bf16.mxu0 %v2661_v53  ;;  %1843 = vmatprep.subr.bf16.mxu1 %v2663_v54 }
  0x93   : > { %2762 = vmatprep.mubr.msk.bf16.mxu0 %vm1261_vm0, %v3109_v56  ;;  %2766 = vmatprep.mubr.msk.bf16.mxu1 %vm1261_vm0, %v3109_v56 }
  0x95   : > { %1771 = vmatpush1.bf16.msra.mxu0 %v2660_v60  ;;  %1844 = vmatpush1.bf16.msra.mxu1 %v2662_v61 }
  0x96   : > { %1772 = vmatprep.subr.bf16.mxu0 %v2645_v62  ;;  %1845 = vmatprep.subr.bf16.mxu1 %v2647_v63 }
  0x98   : > { %1671 = vmatmul.mubr.bf16.gmra.mxu0 %v3136_v3  ;;  %1744 = vmatmul.mubr.bf16.gmra.mxu1 %v3136_v3 }
  0x99   : > { %1773 = vmatpush1.bf16.msra.mxu0 %v2644_v6  ;;  %1846 = vmatpush1.bf16.msra.mxu1 %v2646_v7 }
  0x9a   : > { %1774 = vmatprep.subr.bf16.mxu0 %v2629_v8  ;;  %1847 = vmatprep.subr.bf16.mxu1 %v2631_v9 }
  0x9b   : > { %2763 = vmatprep.mubr.msk.bf16.mxu0 %vm1261_vm0, %v3145_v11  ;;  %2767 = vmatprep.mubr.msk.bf16.mxu1 %vm1261_vm0, %v3145_v11 }
  0x9d   : > { %1775 = vmatpush1.bf16.msra.mxu0 %v2628_v15  ;;  %1848 = vmatpush1.bf16.msra.mxu1 %v2630_v16 }
  0x9e   : > { %1776 = vmatprep.subr.bf16.mxu0 %v2613_v17  ;;  %1849 = vmatprep.subr.bf16.mxu1 %v2615_v19 }
  0xa0   : > { %1681 = vmatmul.mubr.bf16.gmra.mxu0 %v3162_v18  ;;  %1754 = vmatmul.mubr.bf16.gmra.mxu1 %v3162_v18 }
  0xa1   : > { %1777 = vmatpush1.bf16.msra.mxu0 %v2612_v26  ;;  %1850 = vmatpush1.bf16.msra.mxu1 %v2614_v27 }
  0xa2   : > { %1778 = vmatprep.subr.bf16.mxu0 %v2597_v28  ;;  %1851 = vmatprep.subr.bf16.mxu1 %v2599_v31 }
  0xa3   : > { %2768 = vmatprep.mubr.msk.bf16.mxu0 %vm1261_vm0, %v2978_v37  ;;  %2772 = vmatprep.mubr.msk.bf16.mxu1 %vm1261_vm0, %v2978_v37  ;;  %v385_v37 = vlaneseq }
  0xa5   : > { %1779 = vmatpush1.bf16.msra.mxu0 %v2596_v33  ;;  %1852 = vmatpush1.bf16.msra.mxu1 %v2598_v35  ;;  %v3512_v4 = vshrl.u32 %v385_v37, 7 }
  0xa6   : > { %1792 = vmatprep.subr.bf16.mxu0 %v1318_v36  ;;  %1865 = vmatprep.subr.bf16.mxu1 %v1324_v40 }
  0xa7   : > { %v391_v53 = vsub.s32 1, %v3512_v4 }
  0xa9   : > { %1793 = vmatpush2.bf16.msra.mxu0 %v1315_v45  ;;  %1866 = vmatpush2.bf16.msra.mxu1 %v1321_v46 }
  0xaa   : > { %1794 = vmatprep.subr.bf16.mxu0 %v2725_v47  ;;  %1867 = vmatprep.subr.bf16.mxu1 %v2727_v48 }
  0xad   : > { %1795 = vmatpush2.bf16.msra.mxu0 %v2724_v50  ;;  %1868 = vmatpush2.bf16.msra.mxu1 %v2726_v51 }
  0xb0   : > { %1797 = vmatmul.mubr.bf16.vlgmr.msra.gmra.mxu0 %v3064_v30  ;;  %1870 = vmatmul.mubr.bf16.vlgmr.msra.gmra.mxu1 %v3064_v30 }
  0xb1   : > { %2769 = vmatprep.mubr.msk.bf16.mxu0 %vm1261_vm0, %v3073_v38  ;;  %2773 = vmatprep.mubr.msk.bf16.mxu1 %vm1261_vm0, %v3073_v38 }
  0xb8   : > { %1807 = vmatmul.mubr.bf16.gmra.mxu0 %v3100_v49  ;;  %1880 = vmatmul.mubr.bf16.gmra.mxu1 %v3100_v49 }
  0xb9   : > { %2770 = vmatprep.mubr.msk.bf16.mxu0 %vm1261_vm0, %v3109_v56  ;;  %2774 = vmatprep.mubr.msk.bf16.mxu1 %vm1261_vm0, %v3109_v56  ;;  %v387_v56 = vsub.s32 0, %v3512_v4 }
  0xc0   : > { %1817 = vmatmul.mubr.bf16.gmra.mxu0 %v3136_v3  ;;  %1890 = vmatmul.mubr.bf16.gmra.mxu1 %v3136_v3  ;;  %v3518_v3 = vld [vmem:[%s3907_s2] sm:$0xff] }
  0xc1   : > { %2771 = vmatprep.mubr.msk.bf16.mxu0 %vm1261_vm0, %v3145_v11  ;;  %2775 = vmatprep.mubr.msk.bf16.mxu1 %vm1261_vm0, %v3145_v11  ;;  %v395_v11 = vsub.s32 2, %v3512_v4  ;;  %v3526_v58 = vrot.slane %v3518_v3, %v387_v56  ;;  %v3536_v61 = vrot.slane %v3518_v3, %v391_v53  ;;  %vm2476_vm0 = vcmask 1044484  }
  0xc2   : > { %vm2478_vm3 = vmand %vm2476_vm0, %vm2477_vm1 }
  0xc3   : > { %v3531_v60 = vrot.slane %v3518_v3, %v395_v11  ;;  %vm3708_vm6 = vmor %vm2478_vm3, %vm2475_vm2 }
  0xc4   : > { %vm2483_vm10 = vmor %vm3717_vm7, %vm3708_vm6 }
  0xc5   : > { %vm3765_vm14 = vmor %vm3744_vm12, %vm2483_vm10 }
  0xc6   : > { %vm2491_vm0 = vmor %vm3778_vm15, %vm3765_vm14 }
  0xc8   : > { %1827 = vmatmul.mubr.bf16.gmra.mxu0 %v3162_v18  ;;  %1900 = vmatmul.mubr.bf16.gmra.mxu1 %v3162_v18  ;;  %v399_v18 = vsub.s32 3, %v3512_v4 }
  0xca   : > { %v3541_v63 = vrot.slane %v3518_v3, %v399_v18 }
  0xf8   : > { %v1360_v30 = vpop.f32.mrf.mxu0  ;;  %v1433_v38 = vpop.f32.mrf.mxu1 }
  0xf9   : > { %v1361_v6 = vadd.f32 %v1360_v30, %v3526_v58  ;;  %v1434_v9 = vadd.f32 %v1433_v38, %v3531_v60 }
  0xfa   : > { %v1362_v49 = vpop.f32.mrf.mxu0  ;;  %v1435_v52 = vpop.f32.mrf.mxu1 }
  0xfb   : > { %v1363_v10 = vadd.f32 %v1362_v49, %v3536_v61  ;;  %v1436_v13 = vadd.f32 %v1435_v52, %v3541_v63  ;;  %v1910_v23 = vmax.f32 %v1361_v6, 0.0  ;;  %v1912_v27 = vmax.f32 %v1434_v9, 0.0 }
  0xfc   : > { %v1364_v54 = vpop.f32.mrf.mxu0  ;;  %v1437_v55 = vpop.f32.mrf.mxu1 }
  0xfd   : > { %v1365_v1 = vadd.f32 %v1364_v54, %v3526_v58  ;;  %v1438_v2 = vadd.f32 %v1437_v55, %v3531_v60  ;;  %v1911_v28 = vmax.f32 %v1363_v10, 0.0  ;;  %v1913_v33 = vmax.f32 %v1436_v13, 0.0 }
  0xfe   : > { %v1366_v57 = vpop.f32.mrf.mxu0  ;;  %v1439_v59 = vpop.f32.mrf.mxu1 }
  0xff   : > { %v1367_v7 = vadd.f32 %v1366_v57, %v3536_v61  ;;  %v1440_v14 = vadd.f32 %v1439_v59, %v3541_v63  ;;  %v1926_v17 = vmax.f32 %v1365_v1, 0.0  ;;  %v1928_v19 = vmax.f32 %v1438_v2, 0.0 }
 0x100   : > { %v1370_v62 = vpop.f32.mrf.mxu0  ;;  %v1443_v0 = vpop.f32.mrf.mxu1 }
 0x101   : > { %v1371_v15 = vadd.f32 %v1370_v62, %v3526_v58  ;;  %v1444_v20 = vadd.f32 %v1443_v0, %v3531_v60  ;;  %v1927_v24 = vmax.f32 %v1367_v7, 0.0  ;;  %v1929_v34 = vmax.f32 %v1440_v14, 0.0 }
 0x102   : > { %v1372_v5 = vpop.f32.mrf.mxu0  ;;  %v1445_v8 = vpop.f32.mrf.mxu1  ;;  %v2054_v40 = vadd.f32 %v1926_v17, %v1910_v23  ;;  %v2068_v41 = vadd.f32 %v1928_v19, %v1912_v27 }
 0x103   : > { %v1373_v21 = vadd.f32 %v1372_v5, %v3536_v61  ;;  %v1446_v25 = vadd.f32 %v1445_v8, %v3541_v63  ;;  %v1942_v35 = vmax.f32 %v1371_v15, 0.0  ;;  %v1944_v42 = vmax.f32 %v1444_v20, 0.0 }
 0x104   : > { %v1374_v12 = vpop.f32.mrf.mxu0  ;;  %v1447_v16 = vpop.f32.mrf.mxu1  ;;  %v2061_v45 = vadd.f32 %v1927_v24, %v1911_v28  ;;  %v2075_v52 = vadd.f32 %v1929_v34, %v1913_v33 }
 0x105   : > { %v1375_v29 = vadd.f32 %v1374_v12, %v3526_v58  ;;  %v1448_v31 = vadd.f32 %v1447_v16, %v3531_v60  ;;  %v1943_v43 = vmax.f32 %v1373_v21, 0.0  ;;  %v1945_v46 = vmax.f32 %v1446_v25, 0.0 }
 0x106   : > { %v1376_v22 = vpop.f32.mrf.mxu0  ;;  %v1449_v26 = vpop.f32.mrf.mxu1  ;;  %v2055_v54 = vadd.f32 %v2054_v40, %v1942_v35  ;;  %v2069_v62 = vadd.f32 %v2068_v41, %v1944_v42 }
 0x107   : > { %v1377_v36 = vadd.f32 %v1376_v22, %v3536_v61  ;;  %v1450_v47 = vadd.f32 %v1449_v26, %v3541_v63  ;;  %v1958_v51 = vmax.f32 %v1375_v29, 0.0  ;;  %v1960_v37 = vmax.f32 %v1448_v31, 0.0 }
 0x108   : > { %v1380_v32 = vpop.f32.mrf.mxu0  ;;  %v1453_v39 = vpop.f32.mrf.mxu1  ;;  %v2062_v0 = vadd.f32 %v2061_v45, %v1943_v43  ;;  %v2076_v6 = vadd.f32 %v2075_v52, %v1945_v46 }
 0x109   : > { %v1381_v48 = vadd.f32 %v1380_v32, %v3526_v58  ;;  %v1454_v30 = vadd.f32 %v1453_v39, %v3531_v60  ;;  %v1959_v55 = vmax.f32 %v1377_v36, 0.0  ;;  %v1961_v7 = vmax.f32 %v1450_v47, 0.0 }
 0x10a   : > { %v1382_v44 = vpop.f32.mrf.mxu0  ;;  %v1455_v50 = vpop.f32.mrf.mxu1  ;;  %v2056_v12 = vadd.f32 %v2055_v54, %v1958_v51  ;;  %v2070_v13 = vadd.f32 %v2069_v62, %v1960_v37 }
 0x10b   : > { %v1383_v38 = vadd.f32 %v1382_v44, %v3536_v61  ;;  %v1456_v1 = vadd.f32 %v1455_v50, %v3541_v63  ;;  %v1974_v8 = vmax.f32 %v1381_v48, 0.0  ;;  %v1976_v14 = vmax.f32 %v1454_v30, 0.0 }
 0x10c   : > { %v1384_v49 = vpop.f32.mrf.mxu0  ;;  %v1457_v59 = vpop.f32.mrf.mxu1  ;;  %v2063_v17 = vadd.f32 %v2062_v0, %v1959_v55  ;;  %v2077_v28 = vadd.f32 %v2076_v6, %v1961_v7 }
 0x10d   : > { %v1385_v57 = vadd.f32 %v1384_v49, %v3526_v58  ;;  %v1458_v2 = vadd.f32 %v1457_v59, %v3531_v60  ;;  %v1975_v15 = vmax.f32 %v1383_v38, 0.0  ;;  %v1977_v23 = vmax.f32 %v1456_v1, 0.0 }
 0x10e   : > { %v1386_v5 = vpop.f32.mrf.mxu0  ;;  %v1459_v10 = vpop.f32.mrf.mxu1  ;;  %v2057_v29 = vadd.f32 %v2056_v12, %v1974_v8  ;;  %v2071_v34 = vadd.f32 %v2070_v13, %v1976_v14 }
 0x10f   : > { %v1387_v9 = vadd.f32 %v1386_v5, %v3536_v61  ;;  %v1990_v19 = vmax.f32 %v1385_v57, 0.0  ;;  %v1460_v20 = vadd.f32 %v1459_v10, %v3541_v63  ;;  %v1992_v24 = vmax.f32 %v1458_v2, 0.0 }
 0x110   : > { %v1390_v16 = vpop.f32.mrf.mxu0  ;;  %v1463_v22 = vpop.f32.mrf.mxu1  ;;  %v2064_v35 = vadd.f32 %v2063_v17, %v1975_v15  ;;  %v2078_v46 = vadd.f32 %v2077_v28, %v1977_v23 }
 0x111   : > { %v1391_v21 = vadd.f32 %v1390_v16, %v3526_v58  ;;  %v1991_v25 = vmax.f32 %v1387_v9, 0.0  ;;  %v1464_v26 = vadd.f32 %v1463_v22, %v3531_v60  ;;  %v2058_v41 = vadd.f32 %v2057_v29, %v1990_v19 }
 0x112   : > { %v1392_v27 = vpop.f32.mrf.mxu0  ;;  %v1465_v33 = vpop.f32.mrf.mxu1  ;;  %v1993_v42 = vmax.f32 %v1460_v20, 0.0  ;;  %v2072_v47 = vadd.f32 %v2071_v34, %v1992_v24  ;;  %v407_v22 = vsub.s32 5, %v3512_v4 }
 0x113   : > { %v2006_v31 = vmax.f32 %v1391_v21, 0.0  ;;  %v1393_v32 = vadd.f32 %v1392_v27, %v3536_v61  ;;  %v2008_v36 = vmax.f32 %v1464_v26, 0.0  ;;  %v1466_v39 = vadd.f32 %v1465_v33, %v3541_v63 }
 0x114   : > { %v1394_v40 = vpop.f32.mrf.mxu0  ;;  %v1467_v45 = vpop.f32.mrf.mxu1  ;;  %v2065_v48 = vadd.f32 %v2064_v35, %v1991_v25  ;;  %v2079_v59 = vadd.f32 %v2078_v46, %v1993_v42  ;;  %v415_v26 = vsub.s32 7, %v3512_v4  ;;  %v3595_v35 = vrot.slane %v3518_v3, %v407_v22 }
 0x115   : > { %v2007_v43 = vmax.f32 %v1393_v32, 0.0  ;;  %v1395_v44 = vadd.f32 %v1394_v40, %v3526_v58  ;;  %v1468_v50 = vadd.f32 %v1467_v45, %v3531_v60  ;;  %v2059_v37 = vadd.f32 %v2058_v41, %v2006_v31 }
 0x116   : > { %v1396_v51 = vpop.f32.mrf.mxu0  ;;  %v2009_v30 = vmax.f32 %v1466_v39, 0.0  ;;  %v1469_v52 = vpop.f32.mrf.mxu1  ;;  %v2073_v54 = vadd.f32 %v2072_v47, %v2008_v36  ;;  %v3602_v41 = vrot.slane %v3518_v3, %v415_v26 }
 0x117   : > { %v2022_v38 = vmax.f32 %v1395_v44, 0.0  ;;  %v1397_v49 = vadd.f32 %v1396_v51, %v3536_v61  ;;  %v2024_v55 = vmax.f32 %v1468_v50, 0.0  ;;  %v1470_v57 = vadd.f32 %v1469_v52, %v3541_v63 }
 0x118   : > { %v2066_v62 = vadd.f32 %v2065_v48, %v2007_v43  ;;  %v2080_v5 = vadd.f32 %v2079_v59, %v2009_v30  ;;  %v403_v61 = vsub.s32 4, %v3512_v4  ;;  %v411_v63 = vsub.s32 6, %v3512_v4 }
 0x119   : > { %v2060_v58 = vadd.f32 %v2059_v37, %v2022_v38  ;;  %v2023_v0 = vmax.f32 %v1397_v49, 0.0  ;;  %v2074_v1 = vadd.f32 %v2073_v54, %v2024_v55  ;;  %v2025_v2 = vmax.f32 %v1470_v57, 0.0 }
 0x11a   : > { %v3580_v21 = vrot.slane %v3518_v3, %v403_v61  ;;  %v3587_v28 = vrot.slane %v3518_v3, %v411_v63  ;;  %v2866_v48 = vmov 1966171168  }
 0x11b   : > { %v2067_v6 = vadd.f32 %v2066_v62, %v2023_v0  ;;  %v2217_v60 = vrot.slane %v2060_v58, 4  ;;  %v2229_v7 = vrot.slane %v2074_v1, 4  ;;  %v2081_v8 = vadd.f32 %v2080_v5, %v2025_v2 }
 0x11c   : > { %v3609_v50 = vunpack.c.l.s4 %v2866_v48 }
 0x11d   : > { %v2223_v9 = vrot.slane %v2067_v6, 4  ;;  %v2218_v10 = vadd.f32 %v2217_v60, %v2060_v58  ;;  %v2230_v13 = vadd.f32 %v2229_v7, %v2074_v1  ;;  %v2235_v14 = vrot.slane %v2081_v8, 4 }
 0x11f   : > { %v2224_v17 = vadd.f32 %v2223_v9, %v2067_v6  ;;  %v2219_v20 = vrot.slane %v2218_v10, 2  ;;  %v2231_v24 = vrot.slane %v2230_v13, 2  ;;  %v2236_v25 = vadd.f32 %v2235_v14, %v2081_v8 }
 0x120   : > { %v1506_v12 = vpop.f32.mrf.mxu0  ;;  %v1579_v15 = vpop.f32.mrf.mxu1 }
 0x121   : > { %v2225_v31 = vrot.slane %v2224_v17, 2  ;;  %v3589_v33 = vadd.f32 %v2219_v20, %v2218_v10  ;;  %v1507_v34 = vadd.f32 %v1506_v12, %v3580_v21  ;;  %v3597_v39 = vadd.f32 %v2231_v24, %v2230_v13 }
 0x122   : > { %v1508_v16 = vpop.f32.mrf.mxu0  ;;  %v1581_v19 = vpop.f32.mrf.mxu1  ;;  %v2237_v40 = vrot.slane %v2236_v25, 2  ;;  %v1580_v43 = vadd.f32 %v1579_v15, %v3587_v28 }
 0x123   : > { %v3607_v47 = vadd.f32 %v2225_v31, %v2224_v17  ;;  %v2221_v30 = vrot.slane %v3589_v33, 1  ;;  %v1914_v3 = vmax.f32 %v1507_v34, 0.0  ;;  %v1509_v38 = vadd.f32 %v1508_v16, %v3595_v35 }
 0x124   : > { %v1510_v23 = vpop.f32.mrf.mxu0  ;;  %v1583_v27 = vpop.f32.mrf.mxu1  ;;  %v2233_v54 = vrot.slane %v3597_v39, 1  ;;  %v3616_v55 = vadd.f32 %v2237_v40, %v2236_v25  ;;  %v1582_v57 = vadd.f32 %v1581_v19, %v3602_v41  ;;  %v1916_v58 = vmax.f32 %v1580_v43, 0.0 }
 0x125   : > { %v1511_v44 = vadd.f32 %v1510_v23, %v3580_v21  ;;  %v1584_v45 = vadd.f32 %v1583_v27, %v3587_v28  ;;  %v2227_v6 = vrot.slane %v3607_v47, 1  ;;  %v1915_v10 = vmax.f32 %v1509_v38, 0.0 }
 0x126   : > { %v1512_v29 = vpop.f32.mrf.mxu0  ;;  %v1585_v32 = vpop.f32.mrf.mxu1  ;;  %v2239_v16 = vrot.slane %v3616_v55, 1  ;;  %v1917_v17 = vmax.f32 %v1582_v57, 0.0 }
 0x127   : > { %v1513_v51 = vadd.f32 %v1512_v29, %v3595_v35  ;;  %v1586_v49 = vadd.f32 %v1585_v32, %v3602_v41  ;;  %v1930_v0 = vmax.f32 %v1511_v44, 0.0  ;;  %v1932_v1 = vmax.f32 %v1584_v45, 0.0 }
 0x128   : > { %v1516_v36 = vpop.f32.mrf.mxu0  ;;  %v1589_v42 = vpop.f32.mrf.mxu1 }
 0x129   : > { %v1517_v59 = vadd.f32 %v1516_v36, %v3580_v21  ;;  %v1590_v2 = vadd.f32 %v1589_v42, %v3587_v28  ;;  %v1931_v60 = vmax.f32 %v1513_v51, 0.0  ;;  %v1933_v12 = vmax.f32 %v1586_v49, 0.0 }
 0x12a   : > { %v1518_v46 = vpop.f32.mrf.mxu0  ;;  %v1591_v37 = vpop.f32.mrf.mxu1  ;;  %v2082_v24 = vadd.f32 %v1930_v0, %v1914_v3  ;;  %v2096_v25 = vadd.f32 %v1932_v1, %v1916_v58 }
 0x12b   : > { %v1519_v7 = vadd.f32 %v1518_v46, %v3595_v35  ;;  %v1592_v8 = vadd.f32 %v1591_v37, %v3602_v41  ;;  %v1946_v19 = vmax.f32 %v1517_v59, 0.0  ;;  %v1948_v27 = vmax.f32 %v1590_v2, 0.0 }
 0x12c   : > { %v1520_v52 = vpop.f32.mrf.mxu0  ;;  %v1593_v62 = vpop.f32.mrf.mxu1  ;;  %v2089_v32 = vadd.f32 %v1931_v60, %v1915_v10  ;;  %v2103_v43 = vadd.f32 %v1933_v12, %v1917_v17 }
 0x12d   : > { %v1521_v13 = vadd.f32 %v1520_v52, %v3580_v21  ;;  %v1594_v14 = vadd.f32 %v1593_v62, %v3587_v28  ;;  %v1947_v34 = vmax.f32 %v1519_v7, 0.0  ;;  %v1949_v36 = vmax.f32 %v1592_v8, 0.0 }
 0x12e   : > { %v1522_v5 = vpop.f32.mrf.mxu0  ;;  %v1595_v9 = vpop.f32.mrf.mxu1  ;;  %v2083_v51 = vadd.f32 %v2082_v24, %v1946_v19  ;;  %v2097_v52 = vadd.f32 %v2096_v25, %v1948_v27 }
 0x12f   : > { %v1523_v20 = vadd.f32 %v1522_v5, %v3595_v35  ;;  %v1596_v29 = vadd.f32 %v1595_v9, %v3602_v41  ;;  %v1962_v44 = vmax.f32 %v1521_v13, 0.0  ;;  %v1964_v45 = vmax.f32 %v1594_v14, 0.0 }
 0x130   : > { %v1526_v15 = vpop.f32.mrf.mxu0  ;;  %v1599_v23 = vpop.f32.mrf.mxu1  ;;  %v2090_v0 = vadd.f32 %v2089_v32, %v1947_v34  ;;  %v2104_v1 = vadd.f32 %v2103_v43, %v1949_v36 }
 0x131   : > { %v1527_v40 = vadd.f32 %v1526_v15, %v3580_v21  ;;  %v1600_v46 = vadd.f32 %v1599_v23, %v3587_v28  ;;  %v1963_v37 = vmax.f32 %v1523_v20, 0.0  ;;  %v1965_v57 = vmax.f32 %v1596_v29, 0.0 }
 0x132   : > { %v1528_v31 = vpop.f32.mrf.mxu0  ;;  %v1601_v42 = vpop.f32.mrf.mxu1  ;;  %v2084_v7 = vadd.f32 %v2083_v51, %v1962_v44  ;;  %v2098_v8 = vadd.f32 %v2097_v52, %v1964_v45 }
 0x133   : > { %v1529_v3 = vadd.f32 %v1528_v31, %v3595_v35  ;;  %v1602_v59 = vadd.f32 %v1601_v42, %v3602_v41  ;;  %v1978_v2 = vmax.f32 %v1527_v40, 0.0  ;;  %v1980_v9 = vmax.f32 %v1600_v46, 0.0 }
 0x134   : > { %v1530_v48 = vpop.f32.mrf.mxu0  ;;  %v1603_v49 = vpop.f32.mrf.mxu1  ;;  %v2091_v13 = vadd.f32 %v2090_v0, %v1963_v37  ;;  %v2105_v20 = vadd.f32 %v2104_v1, %v1965_v57 }
 0x135   : > { %v1531_v38 = vadd.f32 %v1530_v48, %v3580_v21  ;;  %v1604_v62 = vadd.f32 %v1603_v49, %v3587_v28  ;;  %v1979_v14 = vmax.f32 %v1529_v3, 0.0  ;;  %v1981_v23 = vmax.f32 %v1602_v59, 0.0 }
 0x136   : > { %v1532_v58 = vpop.f32.mrf.mxu0  ;;  %v1605_v60 = vpop.f32.mrf.mxu1  ;;  %v2085_v29 = vadd.f32 %v2084_v7, %v1978_v2  ;;  %v2099_v40 = vadd.f32 %v2098_v8, %v1980_v9 }
 0x137   : > { %v1533_v5 = vadd.f32 %v1532_v58, %v3595_v35  ;;  %v1606_v10 = vadd.f32 %v1605_v60, %v3602_v41  ;;  %v1994_v15 = vmax.f32 %v1531_v38, 0.0  ;;  %v1996_v24 = vmax.f32 %v1604_v62, 0.0 }
 0x138   : > { %v1536_v12 = vpop.f32.mrf.mxu0  ;;  %v1609_v19 = vpop.f32.mrf.mxu1  ;;  %v2092_v46 = vadd.f32 %v2091_v13, %v1979_v14  ;;  %v2106_v38 = vadd.f32 %v2105_v20, %v1981_v23  ;;  %v2240_v13 = vadd.f32 %v2239_v16, %v3616_v55  ;;  %v2234_v55 = vadd.f32 %v2233_v54, %v3597_v39 }
 0x139   : > { %v1537_v17 = vadd.f32 %v1536_v12, %v3580_v21  ;;  %v1610_v25 = vadd.f32 %v1609_v19, %v3587_v28  ;;  %v1995_v31 = vmax.f32 %v1533_v5, 0.0  ;;  %v1997_v42 = vmax.f32 %v1606_v10, 0.0 }
 0x13a   : > { %v1538_v27 = vpop.f32.mrf.mxu0  ;;  %v1611_v36 = vpop.f32.mrf.mxu1  ;;  %v2086_v48 = vadd.f32 %v2085_v29, %v1994_v15  ;;  %v2100_v49 = vadd.f32 %v2099_v40, %v1996_v24 }
 0x13b   : > { %v2010_v32 = vmax.f32 %v1537_v17, 0.0  ;;  %v1539_v34 = vadd.f32 %v1538_v27, %v3595_v35  ;;  %v2012_v43 = vmax.f32 %v1610_v25, 0.0  ;;  %v1612_v44 = vadd.f32 %v1611_v36, %v3602_v41 }
 0x13c   : > { %v1540_v45 = vpop.f32.mrf.mxu0  ;;  %v1613_v3 = vpop.f32.mrf.mxu1  ;;  %v2093_v62 = vadd.f32 %v2092_v46, %v1995_v31  ;;  %v2367_v17 = vunpack.c.0.s8 %v3609_v50  ;;  %v2316_v25 = vmul.f32 0.015625, %v2240_v13 }
 0x13d   : > { %v2011_v51 = vmax.f32 %v1539_v34, 0.0  ;;  %v1541_v37 = vadd.f32 %v1540_v45, %v3580_v21  ;;  %v2013_v52 = vmax.f32 %v1612_v44, 0.0  ;;  %v1614_v57 = vadd.f32 %v1613_v3, %v3587_v28 }
 0x13e   : > { %v1542_v59 = vpop.f32.mrf.mxu0  ;;  %v2087_v58 = vadd.f32 %v2086_v48, %v2010_v32  ;;  %v1615_v2 = vpop.f32.mrf.mxu1  ;;  %v2107_v21 = vadd.f32 %v2106_v38, %v1997_v42  ;;  %v2101_v60 = vadd.f32 %v2100_v49, %v2012_v43  ;;  %v3677_v31 = vsub.s32 %v2367_v17, %v3512_v4 }
 0x13f   : > { %v2026_v0 = vmax.f32 %v1541_v37, 0.0  ;;  %v1543_v1 = vadd.f32 %v1542_v59, %v3595_v35  ;;  %v2028_v7 = vmax.f32 %v1614_v57, 0.0  ;;  %v1616_v8 = vadd.f32 %v1615_v2, %v3602_v41 }
 0x140   : > { %v2228_v35 = vadd.f32 %v2227_v6, %v3607_v47  ;;  %v2094_v9 = vadd.f32 %v2093_v62, %v2011_v51  ;;  %v2108_v14 = vadd.f32 %v2107_v21, %v2013_v52  ;;  %v2222_v47 = vadd.f32 %v2221_v30, %v3589_v33  ;;  %v3699_v62 = vld [vmem:[%s3907_s2 + $0x8] sm:$0xff] }
 0x141   : > { %v2088_v10 = vadd.f32 %v2087_v58, %v2026_v0  ;;  %v2027_v12 = vmax.f32 %v1543_v1, 0.0  ;;  %v2102_v15 = vadd.f32 %v2101_v60, %v2028_v7  ;;  %v2029_v41 = vmax.f32 %v1616_v8, 0.0 }
 0x142   : > { %v2314_v24 = vmul.f32 0.015625, %v2228_v35  ;;  %v2313_v54 = vmul.f32 0.015625, %v2222_v47  ;;  %v2315_v32 = vmul.f32 0.015625, %v2234_v55 }
 0x143   : > { %v2241_v19 = vrot.slane %v2088_v10, 4  ;;  %v2095_v20 = vadd.f32 %v2094_v9, %v2027_v12  ;;  %v2253_v6 = vrot.slane %v2102_v15, 4  ;;  %v2109_v16 = vadd.f32 %v2108_v14, %v2029_v41 }
 0x144   : > { %v2776_v46 = vpack.c.bf16 %v2314_v24, %v2313_v54  ;;  %v2777_v48 = vpack.c.bf16 %v2316_v25, %v2315_v32  ;;  %v3715_v9 = vrot.slane %v3699_v62, %v387_v56  ;;  %v3724_v14 = vrot.slane %v3699_v62, %v395_v11 }
 0x145   : > { %v2242_v50 = vadd.f32 %v2241_v19, %v2088_v10  ;;  %v2247_v23 = vrot.slane %v2095_v20, 4  ;;  %v2254_v27 = vadd.f32 %v2253_v6, %v2102_v15  ;;  %v2259_v29 = vrot.slane %v2109_v16, 4 }
 0x146   : > { %v2371_v5 = vrot.slane %v2776_v46, %v3677_v31  ;;  %v2378_v21 = vrot.slane %v2777_v48, %v3677_v31  ;;  %v3729_v15 = vrot.slane %v3699_v62, %v391_v53  ;;  %v3734_v56 = vrot.slane %v3699_v62, %v399_v18 }
 0x147   : > { %v2243_v33 = vrot.slane %v2242_v50, 2  ;;  %v2248_v30 = vadd.f32 %v2247_v23, %v2095_v20  ;;  %v2255_v34 = vrot.slane %v2254_v27, 2  ;;  %v2260_v36 = vadd.f32 %v2259_v29, %v2109_v16 }
 0x148   : > { %v1652_v42 = vpop.f32.mrf.mxu0  ;;  %v1725_v45 = vpop.f32.mrf.mxu1  ;;  %v2393_v47 = vcombine.low %v2371_v5, %v2378_v21 }
 0x149   : > { %v2244_v43 = vadd.f32 %v2243_v33, %v2242_v50  ;;  %v2249_v44 = vrot.slane %v2248_v30, 2  ;;  %v2256_v51 = vadd.f32 %v2255_v34, %v2254_v27  ;;  %v2261_v37 = vrot.slane %v2260_v36, 2 }
 0x14a   : > { %v1654_v3 = vpop.f32.mrf.mxu0  ;;  %v1727_v52 = vpop.f32.mrf.mxu1  ;;  %v1653_v18 = vadd.f32 %v1652_v42, %v3715_v9  ;;  %v1726_v27 = vadd.f32 %v1725_v45, %v3724_v14 }
 0x14b   : > { %v2245_v38 = vrot.slane %v2244_v43, 1  ;;  %v2250_v49 = vadd.f32 %v2249_v44, %v2248_v30  ;;  %v2257_v57 = vrot.slane %v2256_v51, 1  ;;  %v2262_v59 = vadd.f32 %v2261_v37, %v2260_v36 }
 0x14c   : > { %v1656_v58 = vpop.f32.mrf.mxu0  ;;  %v1729_v2 = vpop.f32.mrf.mxu1  ;;  %v1655_v29 = vadd.f32 %v1654_v3, %v3729_v15  ;;  %v1728_v33 = vadd.f32 %v1727_v52, %v3734_v56  ;;  %v2401_v36 = vrot.slane %v2393_v47, %v3677_v31  ;;  %v1918_v46 = vmax.f32 %v1653_v18, 0.0 }
 0x14d   : > { %v2246_v0 = vadd.f32 %v2245_v38, %v2244_v43  ;;  %v2251_v1 = vrot.slane %v2250_v49, 1  ;;  %v2258_v60 = vadd.f32 %v2257_v57, %v2256_v51  ;;  %v2263_v7 = vrot.slane %v2262_v59, 1 }
 0x14e   : > { %v1658_v8 = vpop.f32.mrf.mxu0  ;;  %v1731_v10 = vpop.f32.mrf.mxu1  ;;  %v1657_v6 = vadd.f32 %v1656_v58, %v3715_v9  ;;  %v1730_v50 = vadd.f32 %v1729_v2, %v3724_v14  ;;  %v1920_v52 = vmax.f32 %v1726_v27, 0.0  ;;  %v1919_v57 = vmax.f32 %v1655_v29, 0.0 }
 0x14f   : > { %v2252_v28 = vadd.f32 %v2251_v1, %v2250_v49  ;;  %v2264_v12 = vadd.f32 %v2263_v7, %v2262_v59  ;;  %v2317_v17 = vmul.f32 0.015625, %v2246_v0  ;;  %v2319_v55 = vmul.f32 0.015625, %v2258_v60 }
 0x150   : > { %v1662_v41 = vpop.f32.mrf.mxu0  ;;  %v1735_v20 = vpop.f32.mrf.mxu1  ;;  %v1659_v54 = vadd.f32 %v1658_v8, %v3729_v15  ;;  %v1732_v32 = vadd.f32 %v1731_v10, %v3734_v56  ;;  %v1934_v42 = vmax.f32 %v1657_v6, 0.0  ;;  %v1936_v48 = vmax.f32 %v1730_v50, 0.0  ;;  %v2492_v10 = vld [vmem:[%s3774_s8] sm:$0xff] }
 0x151   : > { %v2318_v19 = vmul.f32 0.015625, %v2252_v28  ;;  %v2320_v11 = vmul.f32 0.015625, %v2264_v12  ;;  %v1663_v43 = vadd.f32 %v1662_v41, %v3715_v9  ;;  %v1736_v51 = vadd.f32 %v1735_v20, %v3724_v14 }
 0x152   : > { %v1664_v16 = vpop.f32.mrf.mxu0  ;;  %v1737_v23 = vpop.f32.mrf.mxu1  ;;  %v1921_v59 = vmax.f32 %v1728_v33, 0.0  ;;  %v1935_v0 = vmax.f32 %v1659_v54, 0.0  ;;  %v1937_v1 = vmax.f32 %v1732_v32, 0.0  ;;  %v2110_v7 = vadd.f32 %v1934_v42, %v1918_v46 }
 0x153   : > { %v2778_v53 = vpack.c.bf16 %v2318_v19, %v2317_v17  ;;  %v2779_v24 = vpack.c.bf16 %v2320_v11, %v2319_v55  ;;  %v1665_v37 = vadd.f32 %v1664_v16, %v3729_v15  ;;  %v1738_v2 = vadd.f32 %v1737_v23, %v3734_v56 }
 0x154   : > { %v1666_v30 = vpop.f32.mrf.mxu0  ;;  %v1739_v34 = vpop.f32.mrf.mxu1  ;;  %v1950_v8 = vmax.f32 %v1663_v43, 0.0  ;;  %v2124_v12 = vadd.f32 %v1936_v48, %v1920_v52  ;;  %v1952_v13 = vmax.f32 %v1736_v51, 0.0  ;;  %v2117_v16 = vadd.f32 %v1935_v0, %v1919_v57 }
 0x155   : > { %v2385_v39 = vrot.slane %v2778_v53, %v3677_v31  ;;  %v2392_v40 = vrot.slane %v2779_v24, %v3677_v31  ;;  %v1667_v5 = vadd.f32 %v1666_v30, %v3715_v9  ;;  %v1740_v28 = vadd.f32 %v1739_v34, %v3724_v14 }
 0x156   : > { %v1668_v44 = vpop.f32.mrf.mxu0  ;;  %v1741_v3 = vpop.f32.mrf.mxu1  ;;  %v1951_v41 = vmax.f32 %v1665_v37, 0.0  ;;  %v2131_v53 = vadd.f32 %v1937_v1, %v1921_v59  ;;  %v1953_v18 = vmax.f32 %v1738_v2, 0.0  ;;  %v2111_v25 = vadd.f32 %v2110_v7, %v1950_v8 }
 0x157   : > { %v2394_v38 = vcombine.low %v2385_v39, %v2392_v40  ;;  %v1669_v17 = vadd.f32 %v1668_v44, %v3729_v15  ;;  %v1742_v47 = vadd.f32 %v1741_v3, %v3734_v56  ;;  %v1966_v50 = vmax.f32 %v1667_v5, 0.0 }
 0x158   : > { %v1672_v58 = vpop.f32.mrf.mxu0  ;;  %v1745_v21 = vpop.f32.mrf.mxu1  ;;  %v1968_v27 = vmax.f32 %v1740_v28, 0.0  ;;  %v2125_v30 = vadd.f32 %v2124_v12, %v1952_v13  ;;  %v2118_v39 = vadd.f32 %v2117_v16, %v1951_v41  ;;  %v2132_v46 = vadd.f32 %v2131_v53, %v1953_v18 }
 0x159   : > { %v2408_v60 = vrot.slane %v2394_v38, %v3677_v31  ;;  %v1673_v55 = vadd.f32 %v1672_v58, %v3715_v9  ;;  %v1746_v11 = vadd.f32 %v1745_v21, %v3724_v14  ;;  %v1967_v54 = vmax.f32 %v1669_v17, 0.0 }
 0x15a   : > { %v1674_v35 = vpop.f32.mrf.mxu0  ;;  %v1747_v19 = vpop.f32.mrf.mxu1  ;;  %v2112_v48 = vadd.f32 %v2111_v25, %v1966_v50  ;;  %v2126_v38 = vadd.f32 %v2125_v30, %v1968_v27 }
 0x15b   : > { %v2409_v20 = vcombine.low %v2401_v36, %v2408_v60  ;;  %v1675_v29 = vadd.f32 %v1674_v35, %v3729_v15  ;;  %v1969_v36 = vmax.f32 %v1742_v47, 0.0  ;;  %v1982_v40 = vmax.f32 %v1673_v55, 0.0 }
 0x15c   : > { %v1676_v6 = vpop.f32.mrf.mxu0  ;;  %v1749_v23 = vpop.f32.mrf.mxu1  ;;  %v1984_v42 = vmax.f32 %v1746_v11, 0.0  ;;  %v1748_v51 = vadd.f32 %v1747_v19, %v3734_v56  ;;  %v2119_v0 = vadd.f32 %v2118_v39, %v1967_v54 }
 0x15d   : > { %v2493_v24 = vsel %vm2491_vm0, %v2409_v20, %v2492_v10  ;;  %v1677_v32 = vadd.f32 %v1676_v6, %v3715_v9  ;;  %v1750_v43 = vadd.f32 %v1749_v23, %v3724_v14  ;;  %v1983_v52 = vmax.f32 %v1675_v29, 0.0 }
 0x15e   : > { %v1678_v33 = vpop.f32.mrf.mxu0  ;;  %2494 = vst [vmem:[%s3774_s8] sm:$0xff] %v2493_v24  ;;  %v1751_v34 = vpop.f32.mrf.mxu1  ;;  %v2133_v60 = vadd.f32 %v2132_v46, %v1969_v36  ;;  %v2113_v7 = vadd.f32 %v2112_v48, %v1982_v40  ;;  %v2127_v8 = vadd.f32 %v2126_v38, %v1984_v42  ;;  %v1985_v10 = vmax.f32 %v1748_v51, 0.0 }
 0x15f   : > { %v1679_v37 = vadd.f32 %v1678_v33, %v3729_v15  ;;  %v1998_v1 = vmax.f32 %v1677_v32, 0.0  ;;  %v1752_v2 = vadd.f32 %v1751_v34, %v3734_v56  ;;  %v2000_v28 = vmax.f32 %v1750_v43, 0.0 }
 0x160   : > { %v1682_v44 = vpop.f32.mrf.mxu0  ;;  %v1755_v3 = vpop.f32.mrf.mxu1  ;;  %v2120_v19 = vadd.f32 %v2119_v0, %v1983_v52  ;;  %v2134_v29 = vadd.f32 %v2133_v60, %v1985_v10  ;;  %v3828_v10 = vrot.slane %v3699_v62, %v407_v22 }
 0x161   : > { %v1683_v57 = vadd.f32 %v1682_v44, %v3715_v9  ;;  %v1756_v59 = vadd.f32 %v1755_v3, %v3724_v14  ;;  %v1999_v12 = vmax.f32 %v1679_v37, 0.0  ;;  %v2114_v6 = vadd.f32 %v2113_v7, %v1998_v1 }
 0x162   : > { %v1684_v58 = vpop.f32.mrf.mxu0  ;;  %v1757_v21 = vpop.f32.mrf.mxu1  ;;  %v2001_v16 = vmax.f32 %v1752_v2, 0.0  ;;  %v2128_v23 = vadd.f32 %v2127_v8, %v2000_v28  ;;  %v3818_v1 = vrot.slane %v3699_v62, %v403_v61  ;;  %v3823_v8 = vrot.slane %v3699_v62, %v411_v63 }
 0x163   : > { %v1685_v5 = vadd.f32 %v1684_v58, %v3729_v15  ;;  %v1758_v13 = vadd.f32 %v1757_v21, %v3734_v56  ;;  %v2014_v20 = vmax.f32 %v1683_v57, 0.0  ;;  %v2016_v47 = vmax.f32 %v1756_v59, 0.0 }
 0x164   : > { %v1686_v35 = vpop.f32.mrf.mxu0  ;;  %v1759_v17 = vpop.f32.mrf.mxu1  ;;  %v2135_v32 = vadd.f32 %v2134_v29, %v2001_v16  ;;  %v3833_v61 = vrot.slane %v3699_v62, %v415_v26 }
 0x165   : > { %v1687_v41 = vadd.f32 %v1686_v35, %v3715_v9  ;;  %v1760_v55 = vadd.f32 %v1759_v17, %v3724_v14  ;;  %v2015_v53 = vmax.f32 %v1685_v5, 0.0  ;;  %v2121_v9 = vadd.f32 %v2120_v19, %v1999_v12 }
 0x166   : > { %v1688_v11 = vpop.f32.mrf.mxu0  ;;  %v1761_v50 = vpop.f32.mrf.mxu1  ;;  %v2017_v33 = vmax.f32 %v1758_v13, 0.0  ;;  %v2115_v39 = vadd.f32 %v2114_v6, %v2014_v20  ;;  %v2129_v54 = vadd.f32 %v2128_v23, %v2016_v47 }
 0x167   : > { %v1689_v18 = vadd.f32 %v1688_v11, %v3729_v15  ;;  %v2030_v24 = vmax.f32 %v1687_v41, 0.0  ;;  %v2032_v25 = vmax.f32 %v1760_v55, 0.0  ;;  %v1762_v27 = vadd.f32 %v1761_v50, %v3734_v56 }
 0x168   : > { %v2122_v14 = vadd.f32 %v2121_v9, %v2015_v53  ;;  %v2136_v42 = vadd.f32 %v2135_v32, %v2017_v33 }
 0x169   : > { %v2031_v30 = vmax.f32 %v1689_v18, 0.0  ;;  %v2033_v34 = vmax.f32 %v1762_v27, 0.0  ;;  %v2116_v36 = vadd.f32 %v2115_v39, %v2030_v24  ;;  %v2130_v40 = vadd.f32 %v2129_v54, %v2032_v25 }
 0x16b   : > { %v2123_v43 = vadd.f32 %v2122_v14, %v2031_v30  ;;  %v2137_v15 = vadd.f32 %v2136_v42, %v2033_v34  ;;  %v2265_v44 = vrot.slane %v2116_v36, 4  ;;  %v2277_v46 = vrot.slane %v2130_v40, 4 }
 0x16d   : > { %v2271_v51 = vrot.slane %v2123_v43, 4  ;;  %v2283_v3 = vrot.slane %v2137_v15, 4  ;;  %v2266_v52 = vadd.f32 %v2265_v44, %v2116_v36  ;;  %v2278_v57 = vadd.f32 %v2277_v46, %v2130_v40 }
 0x16f   : > { %v2272_v58 = vadd.f32 %v2271_v51, %v2123_v43  ;;  %v2284_v5 = vadd.f32 %v2283_v3, %v2137_v15  ;;  %v2267_v60 = vrot.slane %v2266_v52, 2  ;;  %v2279_v7 = vrot.slane %v2278_v57, 2 }
 0x170   : > { %v1798_v48 = vpop.f32.mrf.mxu0  ;;  %v1871_v37 = vpop.f32.mrf.mxu1 }
 0x171   : > { %v2273_v35 = vrot.slane %v2272_v58, 2  ;;  %v1799_v13 = vadd.f32 %v1798_v48, %v3818_v1  ;;  %v2285_v19 = vrot.slane %v2284_v5, 2  ;;  %v3839_v55 = vadd.f32 %v2267_v60, %v2266_v52 }
 0x172   : > { %v1800_v56 = vpop.f32.mrf.mxu0  ;;  %v1873_v38 = vpop.f32.mrf.mxu1  ;;  %v3841_v22 = vadd.f32 %v2279_v7, %v2278_v57  ;;  %v1872_v4 = vadd.f32 %v1871_v37, %v3823_v8 }
 0x173   : > { %v3845_v11 = vadd.f32 %v2273_v35, %v2272_v58  ;;  %v1801_v6 = vadd.f32 %v1800_v56, %v3828_v10  ;;  %v1874_v16 = vadd.f32 %v1873_v38, %v3833_v61  ;;  %v1922_v50 = vmax.f32 %v1799_v13, 0.0 }
 0x174   : > { %v1802_v59 = vpop.f32.mrf.mxu0  ;;  %v1875_v0 = vpop.f32.mrf.mxu1  ;;  %v3851_v29 = vadd.f32 %v2285_v19, %v2284_v5  ;;  %v1924_v54 = vmax.f32 %v1872_v4, 0.0 }
 0x175   : > { %v1803_v41 = vadd.f32 %v1802_v59, %v3818_v1  ;;  %v1876_v63 = vadd.f32 %v1875_v0, %v3823_v8  ;;  %v1923_v40 = vmax.f32 %v1801_v6, 0.0  ;;  %v1925_v42 = vmax.f32 %v1874_v16, 0.0 }
 0x176   : > { %v1804_v2 = vpop.f32.mrf.mxu0  ;;  %v1877_v21 = vpop.f32.mrf.mxu1 }
 0x177   : > { %v1805_v20 = vadd.f32 %v1804_v2, %v3828_v10  ;;  %v1878_v26 = vadd.f32 %v1877_v21, %v3833_v61  ;;  %v1938_v23 = vmax.f32 %v1803_v41, 0.0  ;;  %v1940_v24 = vmax.f32 %v1876_v63, 0.0 }
 0x178   : > { %v1808_v28 = vpop.f32.mrf.mxu0  ;;  %v1881_v12 = vpop.f32.mrf.mxu1 }
 0x179   : > { %v1809_v53 = vadd.f32 %v1808_v28, %v3818_v1  ;;  %v1882_v25 = vadd.f32 %v1881_v12, %v3823_v8  ;;  %v1939_v9 = vmax.f32 %v1805_v20, 0.0  ;;  %v1941_v32 = vmax.f32 %v1878_v26, 0.0 }
 0x17a   : > { %v1810_v17 = vpop.f32.mrf.mxu0  ;;  %v1883_v47 = vpop.f32.mrf.mxu1  ;;  %v2138_v46 = vadd.f32 %v1938_v23, %v1922_v50  ;;  %v2152_v48 = vadd.f32 %v1940_v24, %v1924_v54 }
 0x17b   : > { %v1811_v33 = vadd.f32 %v1810_v17, %v3828_v10  ;;  %v1884_v30 = vadd.f32 %v1883_v47, %v3833_v61  ;;  %v1954_v43 = vmax.f32 %v1809_v53, 0.0  ;;  %v1956_v51 = vmax.f32 %v1882_v25, 0.0 }
 0x17c   : > { %v1812_v62 = vpop.f32.mrf.mxu0  ;;  %v1885_v18 = vpop.f32.mrf.mxu1  ;;  %v2145_v3 = vadd.f32 %v1939_v9, %v1923_v40  ;;  %v2159_v58 = vadd.f32 %v1941_v32, %v1925_v42 }
 0x17d   : > { %v1813_v14 = vadd.f32 %v1812_v62, %v3818_v1  ;;  %v1886_v34 = vadd.f32 %v1885_v18, %v3823_v8  ;;  %v1955_v38 = vmax.f32 %v1811_v33, 0.0  ;;  %v1957_v52 = vmax.f32 %v1884_v30, 0.0 }
 0x17e   : > { %v1814_v27 = vpop.f32.mrf.mxu0  ;;  %v1887_v39 = vpop.f32.mrf.mxu1  ;;  %v2139_v60 = vadd.f32 %v2138_v46, %v1954_v43  ;;  %v2153_v13 = vadd.f32 %v2152_v48, %v1956_v51 }
 0x17f   : > { %v1815_v15 = vadd.f32 %v1814_v27, %v3828_v10  ;;  %v1888_v37 = vadd.f32 %v1887_v39, %v3833_v61  ;;  %v1970_v0 = vmax.f32 %v1813_v14, 0.0  ;;  %v1972_v2 = vmax.f32 %v1886_v34, 0.0 }
 0x180   : > { %v1818_v36 = vpop.f32.mrf.mxu0  ;;  %v1891_v44 = vpop.f32.mrf.mxu1  ;;  %v2146_v20 = vadd.f32 %v2145_v3, %v1955_v38  ;;  %v2160_v47 = vadd.f32 %v2159_v58, %v1957_v52 }
 0x181   : > { %v1819_v57 = vadd.f32 %v1818_v36, %v3818_v1  ;;  %v1892_v5 = vadd.f32 %v1891_v44, %v3823_v8  ;;  %v1971_v7 = vmax.f32 %v1815_v15, 0.0  ;;  %v1973_v41 = vmax.f32 %v1888_v37, 0.0 }
 0x182   : > { %v1820_v56 = vpop.f32.mrf.mxu0  ;;  %v1893_v59 = vpop.f32.mrf.mxu1  ;;  %v2140_v6 = vadd.f32 %v2139_v60, %v1970_v0  ;;  %v2154_v16 = vadd.f32 %v2153_v13, %v1972_v2 }
 0x183   : > { %v1821_v28 = vadd.f32 %v1820_v56, %v3828_v10  ;;  %v1894_v63 = vadd.f32 %v1893_v59, %v3833_v61  ;;  %v1986_v4 = vmax.f32 %v1819_v57, 0.0  ;;  %v1988_v53 = vmax.f32 %v1892_v5, 0.0 }
 0x184   : > { %v1822_v21 = vpop.f32.mrf.mxu0  ;;  %v1895_v12 = vpop.f32.mrf.mxu1  ;;  %v2147_v23 = vadd.f32 %v2146_v20, %v1971_v7  ;;  %v2161_v33 = vadd.f32 %v2160_v47, %v1973_v41 }
 0x185   : > { %v1823_v35 = vadd.f32 %v1822_v21, %v3818_v1  ;;  %v1896_v17 = vadd.f32 %v1895_v12, %v3823_v8  ;;  %v1987_v24 = vmax.f32 %v1821_v28, 0.0  ;;  %v1989_v30 = vmax.f32 %v1894_v63, 0.0 }
 0x186   : > { %v1824_v19 = vpop.f32.mrf.mxu0  ;;  %v1897_v62 = vpop.f32.mrf.mxu1  ;;  %v2141_v14 = vadd.f32 %v2140_v6, %v1986_v4  ;;  %v2155_v43 = vadd.f32 %v2154_v16, %v1988_v53 }
 0x187   : > { %v1825_v26 = vadd.f32 %v1824_v19, %v3828_v10  ;;  %v1898_v18 = vadd.f32 %v1897_v62, %v3833_v61  ;;  %v2002_v25 = vmax.f32 %v1823_v35, 0.0  ;;  %v2004_v39 = vmax.f32 %v1896_v17, 0.0 }
 0x188   : > { %v1828_v50 = vpop.f32.mrf.mxu0  ;;  %v1901_v9 = vpop.f32.mrf.mxu1  ;;  %v2148_v51 = vadd.f32 %v2147_v23, %v1987_v24  ;;  %v2162_v52 = vadd.f32 %v2161_v33, %v1989_v30  ;;  %v2287_v19 = vrot.slane %v3851_v29, 1  ;;  %v2281_v62 = vrot.slane %v3841_v22, 1 }
 0x189   : > { %v1829_v27 = vadd.f32 %v1828_v50, %v3818_v1  ;;  %v1902_v54 = vadd.f32 %v1901_v9, %v3823_v8  ;;  %v2003_v34 = vmax.f32 %v1825_v26, 0.0  ;;  %v2005_v15 = vmax.f32 %v1898_v18, 0.0 }
 0x18a   : > { %v1830_v32 = vpop.f32.mrf.mxu0  ;;  %v1903_v42 = vpop.f32.mrf.mxu1  ;;  %v2142_v37 = vadd.f32 %v2141_v14, %v2002_v25  ;;  %v2156_v57 = vadd.f32 %v2155_v43, %v2004_v39  ;;  %v2288_v50 = vadd.f32 %v2287_v19, %v3851_v29  ;;  %v2282_v33 = vadd.f32 %v2281_v62, %v3841_v22 }
 0x18b   : > { %v2018_v36 = vmax.f32 %v1829_v27, 0.0  ;;  %v1831_v40 = vadd.f32 %v1830_v32, %v3828_v10  ;;  %v2020_v44 = vmax.f32 %v1902_v54, 0.0  ;;  %v1904_v46 = vadd.f32 %v1903_v42, %v3833_v61 }
 0x18c   : > { %v1832_v48 = vpop.f32.mrf.mxu0  ;;  %v1905_v38 = vpop.f32.mrf.mxu1  ;;  %v2149_v2 = vadd.f32 %v2148_v51, %v2003_v34  ;;  %v2163_v28 = vadd.f32 %v2162_v52, %v2005_v15  ;;  %v2324_v34 = vmul.f32 0.015625, %v2288_v50  ;;  %v2323_v29 = vmul.f32 0.015625, %v2282_v33 }
 0x18d   : > { %v2019_v56 = vmax.f32 %v1831_v40, 0.0  ;;  %v1833_v3 = vadd.f32 %v1832_v48, %v3818_v1  ;;  %v2021_v59 = vmax.f32 %v1904_v46, 0.0  ;;  %v1906_v58 = vadd.f32 %v1905_v38, %v3823_v8 }
 0x18e   : > { %v1834_v0 = vpop.f32.mrf.mxu0  ;;  %v2143_v5 = vadd.f32 %v2142_v37, %v2018_v36  ;;  %v1907_v7 = vpop.f32.mrf.mxu1  ;;  %v2157_v35 = vadd.f32 %v2156_v57, %v2020_v44  ;;  %v2275_v1 = vrot.slane %v3845_v11, 1 }
 0x18f   : > { %v2034_v21 = vmax.f32 %v1833_v3, 0.0  ;;  %v1835_v60 = vadd.f32 %v1834_v0, %v3828_v10  ;;  %v2036_v12 = vmax.f32 %v1906_v58, 0.0  ;;  %v1908_v13 = vadd.f32 %v1907_v7, %v3833_v61 }
 0x190   : > { %v2150_v41 = vadd.f32 %v2149_v2, %v2019_v56  ;;  %v2164_v8 = vadd.f32 %v2163_v28, %v2021_v59  ;;  %v2269_v10 = vrot.slane %v3839_v55, 1  ;;  %v2276_v18 = vadd.f32 %v2275_v1, %v3845_v11 }
 0x191   : > { %v2144_v63 = vadd.f32 %v2143_v5, %v2034_v21  ;;  %v2035_v17 = vmax.f32 %v1835_v60, 0.0  ;;  %v2158_v20 = vadd.f32 %v2157_v35, %v2036_v12  ;;  %v2037_v47 = vmax.f32 %v1908_v13, 0.0  ;;  %v2495_v13 = vld [vmem:[%s3774_s8 + $0x8] sm:$0xff] }
 0x192   : > { %v2270_v9 = vadd.f32 %v2269_v10, %v3839_v55  ;;  %v2322_v14 = vmul.f32 0.015625, %v2276_v18  ;;  %v2781_v55 = vpack.c.bf16 %v2324_v34, %v2323_v29 }
 0x193   : > { %v2289_v4 = vrot.slane %v2144_v63, 4  ;;  %v2151_v26 = vadd.f32 %v2150_v41, %v2035_v17  ;;  %v2301_v6 = vrot.slane %v2158_v20, 4  ;;  %v2165_v16 = vadd.f32 %v2164_v8, %v2037_v47 }
 0x194   : > { %v2321_v43 = vmul.f32 0.015625, %v2270_v9  ;;  %v2427_v59 = vrot.slane %v2781_v55, %v3677_v31 }
 0x195   : > { %v2290_v53 = vadd.f32 %v2289_v4, %v2144_v63  ;;  %v2295_v61 = vrot.slane %v2151_v26, 4  ;;  %v2302_v23 = vadd.f32 %v2301_v6, %v2158_v20  ;;  %v2307_v24 = vrot.slane %v2165_v16, 4 }
 0x196   : > { %v2780_v51 = vpack.c.bf16 %v2322_v14, %v2321_v43 }
 0x197   : > { %v2291_v25 = vrot.slane %v2290_v53, 2  ;;  %v2296_v27 = vadd.f32 %v2295_v61, %v2151_v26  ;;  %v2303_v30 = vrot.slane %v2302_v23, 2  ;;  %v2308_v39 = vadd.f32 %v2307_v24, %v2165_v16 }
 0x198   : > { %v2420_v57 = vrot.slane %v2780_v51, %v3677_v31 }
 0x199   : > { %v2292_v54 = vadd.f32 %v2291_v25, %v2290_v53  ;;  %v2297_v32 = vrot.slane %v2296_v27, 2  ;;  %v2304_v36 = vadd.f32 %v2303_v30, %v2302_v23  ;;  %v2309_v40 = vrot.slane %v2308_v39, 2 }
 0x19a   : > { %v2442_v60 = vcombine.low %v2420_v57, %v2427_v59 }
 0x19b   : > { %v2293_v42 = vrot.slane %v2292_v54, 1  ;;  %v2298_v11 = vadd.f32 %v2297_v32, %v2296_v27  ;;  %v2305_v15 = vrot.slane %v2304_v36, 1  ;;  %v2310_v44 = vadd.f32 %v2309_v40, %v2308_v39 }
 0x19c   : > { %v2450_v35 = vrot.slane %v2442_v60, %v3677_v31 }
 0x19d   : > { %v2294_v46 = vadd.f32 %v2293_v42, %v2292_v54  ;;  %v2299_v48 = vrot.slane %v2298_v11, 1  ;;  %v2306_v37 = vadd.f32 %v2305_v15, %v2304_v36  ;;  %v2311_v22 = vrot.slane %v2310_v44, 1 }
 0x19f   : > { %v2300_v56 = vadd.f32 %v2299_v48, %v2298_v11  ;;  %v2312_v3 = vadd.f32 %v2311_v22, %v2310_v44  ;;  %v2325_v38 = vmul.f32 0.015625, %v2294_v46  ;;  %v2327_v58 = vmul.f32 0.015625, %v2306_v37 }
 0x1a1   : > { %v2326_v52 = vmul.f32 0.015625, %v2300_v56  ;;  %v2328_v0 = vmul.f32 0.015625, %v2312_v3 }
 0x1a3   : > { %v2782_v2 = vpack.c.bf16 %v2326_v52, %v2325_v38  ;;  %v2783_v5 = vpack.c.bf16 %v2328_v0, %v2327_v58 }
 0x1a5   : > { %v2434_v21 = vrot.slane %v2782_v2, %v3677_v31  ;;  %v2441_v7 = vrot.slane %v2783_v5, %v3677_v31 }
 0x1a7   : > { %v2443_v28 = vcombine.low %v2434_v21, %v2441_v7 }
 0x1a9   : > { %v2457_v12 = vrot.slane %v2443_v28, %v3677_v31 }
 0x1ab   : > { %v2458_v1 = vcombine.low %v2450_v35, %v2457_v12 }
 0x1ad   : > { %v2496_v41 = vsel %vm2491_vm0, %v2458_v1, %v2495_v13 }
 0x1ae   : > { %2497 = vst [vmem:[%s3774_s8 + $0x8] sm:$0xff] %v2496_v41 }
 0x1af PF: > { %s13_s14 = sadd.s32 1, %s2863_s14   ;;  %s3927_s12 = smov %s2859_s13 }
 0x1b0   : > { %p10_p5 = scmp.ge.s32.totalorder %s13_s14, 6   ;;  %s3928_s13 = smov %s3930_s15 }
 0x1b2   :  { %12 = sbr.rel (!%p10_p5) target bundleno = 2 (0x2), region = 70 }

// kernel: siamese_forward.3
= control target key start
LH: loop header
LB: loop body
LE: loop exit
PB: predicated region body
PF: predicated region fallthrough
CT: control target
= control target key end

     0   :  { %s4872_s18 = smov 0   ;;  %s4874_s19 = smov 0   ;;  %s6012_s0 = inlined_call_operand.vmem [shape: bf16[16,2048], index: 0, kind: input, shape index: {}]   ;;  %s6013_s1 = inlined_call_operand.vmem [shape: bf16[2048,1024], index: 1, kind: input, shape index: {}]   ;;  %s6014_s2 = inlined_call_operand.vmem [shape: f32[1,1024], index: 2, kind: input, shape index: {}]   ;;  %s6015_s3 = inlined_call_operand.vmem [shape: bf16[1024,512], index: 3, kind: input, shape index: {}]   ;;  %s6016_s4 = inlined_call_operand.vmem [shape: f32[1,512], index: 4, kind: input, shape index: {}]   ;;  %s6017_s5 = inlined_call_operand.vmem [shape: f32[16,512], index: 5, kind: output, shape index: {}]  }
   0x1   :  { %s4876_s20 = smov 0  }
   0x2 LB: > { %s4888_s21 = sadd.s32 4294967295, %s4839_s20   ;;  %s4891_s22 = sadd.s32 1, %s4839_s20   ;;  %s4839_s20 = sphi %s4876_s20, %s6020_s20   ;;  %s4835_s19 = sphi %s4874_s19, %s6019_s19   ;;  %s4831_s18 = sphi %s4872_s18, %s6018_s18  }
   0x3   : > { %s40_s23 = ssub.s32 %s4839_s20, %s4891_s22  ;;  %s43_s24 = sadd.s32 1, %s4835_s19 }
   0x4   : > { %p41_p0 = scmp.eq.s32.totalorder %s40_s23, 0  ;;  %p50_p1 = scmp.ne.s32.totalorder %s4835_s19, %s4831_s18 }
   0x5   : > { %p51_p2 = scmp.eq.s32.totalorder %s4839_s20, 0  ;;  %p3956_p4 = scmp.ge.s32.totalorder %s4839_s20, 4 }
   0x6   : > { %s4900_s25 = scalar_select %p41_p0, %s4835_s19, %s43_s24  }
   0x7   : > { %p52_p3 = por %p51_p2, %p50_p1  ;;  %176 = sbr.rel (%p3956_p4) target bundleno = 272 (0x110), region = 24 }
   0xc   : > { %179 = sbr.rel (!%p52_p3) target bundleno = 272 (0x110), region = 28  ;;  %s181_s26 = sand.u32 (%p52_p3), 1, %s4835_s19  }
   0xd   : > { %s4306_s27 = sshll.u32 (%p52_p3), %s4839_s20, 3  ;;  %s3957_s28 = sshll.u32 (%p52_p3), %s181_s26, 11 }
   0xe   : > { %s4908_s6 = scalar_lea.vmem (%p52_p3), %s6013_s1, %s4306_s27  ;;  %s4913_s7 = scalar_lea.vmem (%p52_p3), [#allocation2], %s3957_s28 }
   0xf   : > { %v725_v0 = vld [vmem:[%s4908_s6] sm:$0xff] (%p52_p3) }
  0x10   : > { %v727_v1 = vld [vmem:[%s4908_s6 + $0x20] sm:$0xff] (%p52_p3)  ;;  %726 = vst [vmem:[%s4913_s7] sm:$0xff] (%p52_p3), %v725_v0 }
  0x11   : > { %v729_v2 = vld [vmem:[%s4908_s6 + $0x40] sm:$0xff]  ;;  %728 = vst [vmem:[%s4913_s7 + $0x8] sm:$0xff] %v727_v1 }
  0x12   : > { %730 = vst [vmem:[%s4913_s7 + $0x10] sm:$0xff] %v729_v2  ;;  %v731_v3 = vld [vmem:[%s4908_s6 + $0x60] sm:$0xff] }
  0x13   : > { %v733_v4 = vld [vmem:[%s4908_s6 + $0x80] sm:$0xff]  ;;  %732 = vst [vmem:[%s4913_s7 + $0x18] sm:$0xff] %v731_v3 }
  0x14   : > { %v735_v5 = vld [vmem:[%s4908_s6 + $0xa0] sm:$0xff]  ;;  %734 = vst [vmem:[%s4913_s7 + $0x20] sm:$0xff] %v733_v4 }
  0x15   : > { %736 = vst [vmem:[%s4913_s7 + $0x28] sm:$0xff] %v735_v5  ;;  %v737_v6 = vld [vmem:[%s4908_s6 + $0xc0] sm:$0xff] }
  0x16   : > { %v739_v7 = vld [vmem:[%s4908_s6 + $0xe0] sm:$0xff]  ;;  %738 = vst [vmem:[%s4913_s7 + $0x30] sm:$0xff] %v737_v6 }
  0x17   : > { %v741_v8 = vld [vmem:[%s4908_s6 + $0x100] sm:$0xff]  ;;  %740 = vst [vmem:[%s4913_s7 + $0x38] sm:$0xff] %v739_v7 }
  0x18   : > { %742 = vst [vmem:[%s4913_s7 + $0x40] sm:$0xff] %v741_v8  ;;  %v743_v9 = vld [vmem:[%s4908_s6 + $0x120] sm:$0xff] }
  0x19   : > { %v745_v10 = vld [vmem:[%s4908_s6 + $0x140] sm:$0xff]  ;;  %744 = vst [vmem:[%s4913_s7 + $0x48] sm:$0xff] %v743_v9 }
  0x1a   : > { %v747_v11 = vld [vmem:[%s4908_s6 + $0x160] sm:$0xff]  ;;  %746 = vst [vmem:[%s4913_s7 + $0x50] sm:$0xff] %v745_v10 }
  0x1b   : > { %748 = vst [vmem:[%s4913_s7 + $0x58] sm:$0xff] %v747_v11  ;;  %v749_v12 = vld [vmem:[%s4908_s6 + $0x180] sm:$0xff] }
  0x1c   : > { %v751_v13 = vld [vmem:[%s4908_s6 + $0x1a0] sm:$0xff]  ;;  %750 = vst [vmem:[%s4913_s7 + $0x60] sm:$0xff] %v749_v12 }
  0x1d   : > { %v753_v14 = vld [vmem:[%s4908_s6 + $0x1c0] sm:$0xff]  ;;  %752 = vst [vmem:[%s4913_s7 + $0x68] sm:$0xff] %v751_v13 }
  0x1e   : > { %754 = vst [vmem:[%s4913_s7 + $0x70] sm:$0xff] %v753_v14  ;;  %v755_v15 = vld [vmem:[%s4908_s6 + $0x1e0] sm:$0xff] }
  0x1f   : > { %v757_v16 = vld [vmem:[%s4908_s6 + $0x200] sm:$0xff]  ;;  %756 = vst [vmem:[%s4913_s7 + $0x78] sm:$0xff] %v755_v15 }
  0x20   : > { %v759_v17 = vld [vmem:[%s4908_s6 + $0x220] sm:$0xff]  ;;  %758 = vst [vmem:[%s4913_s7 + $0x80] sm:$0xff] %v757_v16 }
  0x21   : > { %760 = vst [vmem:[%s4913_s7 + $0x88] sm:$0xff] %v759_v17  ;;  %v761_v18 = vld [vmem:[%s4908_s6 + $0x240] sm:$0xff] }
  0x22   : > { %v763_v19 = vld [vmem:[%s4908_s6 + $0x260] sm:$0xff]  ;;  %762 = vst [vmem:[%s4913_s7 + $0x90] sm:$0xff] %v761_v18 }
  0x23   : > { %v765_v20 = vld [vmem:[%s4908_s6 + $0x280] sm:$0xff]  ;;  %764 = vst [vmem:[%s4913_s7 + $0x98] sm:$0xff] %v763_v19 }
  0x24   : > { %766 = vst [vmem:[%s4913_s7 + $0xa0] sm:$0xff] %v765_v20  ;;  %v767_v21 = vld [vmem:[%s4908_s6 + $0x2a0] sm:$0xff] }
  0x25   : > { %v769_v22 = vld [vmem:[%s4908_s6 + $0x2c0] sm:$0xff]  ;;  %768 = vst [vmem:[%s4913_s7 + $0xa8] sm:$0xff] %v767_v21 }
  0x26   : > { %v771_v23 = vld [vmem:[%s4908_s6 + $0x2e0] sm:$0xff]  ;;  %770 = vst [vmem:[%s4913_s7 + $0xb0] sm:$0xff] %v769_v22 }
  0x27   : > { %772 = vst [vmem:[%s4913_s7 + $0xb8] sm:$0xff] %v771_v23  ;;  %v773_v24 = vld [vmem:[%s4908_s6 + $0x300] sm:$0xff] }
  0x28   : > { %v775_v25 = vld [vmem:[%s4908_s6 + $0x320] sm:$0xff]  ;;  %774 = vst [vmem:[%s4913_s7 + $0xc0] sm:$0xff] %v773_v24 }
  0x29   : > { %v777_v26 = vld [vmem:[%s4908_s6 + $0x340] sm:$0xff]  ;;  %776 = vst [vmem:[%s4913_s7 + $0xc8] sm:$0xff] %v775_v25 }
  0x2a   : > { %778 = vst [vmem:[%s4913_s7 + $0xd0] sm:$0xff] %v777_v26  ;;  %v779_v27 = vld [vmem:[%s4908_s6 + $0x360] sm:$0xff] }
  0x2b   : > { %v781_v28 = vld [vmem:[%s4908_s6 + $0x380] sm:$0xff]  ;;  %780 = vst [vmem:[%s4913_s7 + $0xd8] sm:$0xff] %v779_v27 }
  0x2c   : > { %v783_v29 = vld [vmem:[%s4908_s6 + $0x3a0] sm:$0xff]  ;;  %782 = vst [vmem:[%s4913_s7 + $0xe0] sm:$0xff] %v781_v28 }
  0x2d   : > { %784 = vst [vmem:[%s4913_s7 + $0xe8] sm:$0xff] %v783_v29  ;;  %v785_v30 = vld [vmem:[%s4908_s6 + $0x3c0] sm:$0xff] }
  0x2e   : > { %v787_v31 = vld [vmem:[%s4908_s6 + $0x3e0] sm:$0xff]  ;;  %786 = vst [vmem:[%s4913_s7 + $0xf0] sm:$0xff] %v785_v30 }
  0x2f   : > { %v789_v32 = vld [vmem:[%s4908_s6 + $0x400] sm:$0xff]  ;;  %788 = vst [vmem:[%s4913_s7 + $0xf8] sm:$0xff] %v787_v31 }
  0x30   : > { %790 = vst [vmem:[%s4913_s7 + $0x100] sm:$0xff] %v789_v32  ;;  %v791_v33 = vld [vmem:[%s4908_s6 + $0x420] sm:$0xff] }
  0x31   : > { %v793_v34 = vld [vmem:[%s4908_s6 + $0x440] sm:$0xff]  ;;  %792 = vst [vmem:[%s4913_s7 + $0x108] sm:$0xff] %v791_v33 }
  0x32   : > { %v795_v35 = vld [vmem:[%s4908_s6 + $0x460] sm:$0xff]  ;;  %794 = vst [vmem:[%s4913_s7 + $0x110] sm:$0xff] %v793_v34 }
  0x33   : > { %796 = vst [vmem:[%s4913_s7 + $0x118] sm:$0xff] %v795_v35  ;;  %v797_v36 = vld [vmem:[%s4908_s6 + $0x480] sm:$0xff] }
  0x34   : > { %v799_v37 = vld [vmem:[%s4908_s6 + $0x4a0] sm:$0xff]  ;;  %798 = vst [vmem:[%s4913_s7 + $0x120] sm:$0xff] %v797_v36 }
  0x35   : > { %v801_v38 = vld [vmem:[%s4908_s6 + $0x4c0] sm:$0xff]  ;;  %800 = vst [vmem:[%s4913_s7 + $0x128] sm:$0xff] %v799_v37 }
  0x36   : > { %802 = vst [vmem:[%s4913_s7 + $0x130] sm:$0xff] %v801_v38  ;;  %v803_v39 = vld [vmem:[%s4908_s6 + $0x4e0] sm:$0xff] }
  0x37   : > { %v805_v40 = vld [vmem:[%s4908_s6 + $0x500] sm:$0xff]  ;;  %804 = vst [vmem:[%s4913_s7 + $0x138] sm:$0xff] %v803_v39 }
  0x38   : > { %v807_v41 = vld [vmem:[%s4908_s6 + $0x520] sm:$0xff]  ;;  %806 = vst [vmem:[%s4913_s7 + $0x140] sm:$0xff] %v805_v40 }
  0x39   : > { %808 = vst [vmem:[%s4913_s7 + $0x148] sm:$0xff] %v807_v41  ;;  %v809_v42 = vld [vmem:[%s4908_s6 + $0x540] sm:$0xff] }
  0x3a   : > { %v811_v43 = vld [vmem:[%s4908_s6 + $0x560] sm:$0xff]  ;;  %810 = vst [vmem:[%s4913_s7 + $0x150] sm:$0xff] %v809_v42 }
  0x3b   : > { %v813_v44 = vld [vmem:[%s4908_s6 + $0x580] sm:$0xff]  ;;  %812 = vst [vmem:[%s4913_s7 + $0x158] sm:$0xff] %v811_v43 }
  0x3c   : > { %814 = vst [vmem:[%s4913_s7 + $0x160] sm:$0xff] %v813_v44  ;;  %v815_v45 = vld [vmem:[%s4908_s6 + $0x5a0] sm:$0xff] }
  0x3d   : > { %v817_v46 = vld [vmem:[%s4908_s6 + $0x5c0] sm:$0xff]  ;;  %816 = vst [vmem:[%s4913_s7 + $0x168] sm:$0xff] %v815_v45 }
  0x3e   : > { %v819_v47 = vld [vmem:[%s4908_s6 + $0x5e0] sm:$0xff]  ;;  %818 = vst [vmem:[%s4913_s7 + $0x170] sm:$0xff] %v817_v46 }
  0x3f   : > { %820 = vst [vmem:[%s4913_s7 + $0x178] sm:$0xff] %v819_v47  ;;  %v821_v48 = vld [vmem:[%s4908_s6 + $0x600] sm:$0xff] }
  0x40   : > { %v823_v49 = vld [vmem:[%s4908_s6 + $0x620] sm:$0xff]  ;;  %822 = vst [vmem:[%s4913_s7 + $0x180] sm:$0xff] %v821_v48 }
  0x41   : > { %v825_v50 = vld [vmem:[%s4908_s6 + $0x640] sm:$0xff]  ;;  %824 = vst [vmem:[%s4913_s7 + $0x188] sm:$0xff] %v823_v49 }
  0x42   : > { %826 = vst [vmem:[%s4913_s7 + $0x190] sm:$0xff] %v825_v50  ;;  %v827_v51 = vld [vmem:[%s4908_s6 + $0x660] sm:$0xff] }
  0x43   : > { %v829_v52 = vld [vmem:[%s4908_s6 + $0x680] sm:$0xff]  ;;  %828 = vst [vmem:[%s4913_s7 + $0x198] sm:$0xff] %v827_v51 }
  0x44   : > { %v831_v53 = vld [vmem:[%s4908_s6 + $0x6a0] sm:$0xff]  ;;  %830 = vst [vmem:[%s4913_s7 + $0x1a0] sm:$0xff] %v829_v52 }
  0x45   : > { %832 = vst [vmem:[%s4913_s7 + $0x1a8] sm:$0xff] %v831_v53  ;;  %v833_v54 = vld [vmem:[%s4908_s6 + $0x6c0] sm:$0xff] }
  0x46   : > { %v835_v55 = vld [vmem:[%s4908_s6 + $0x6e0] sm:$0xff]  ;;  %834 = vst [vmem:[%s4913_s7 + $0x1b0] sm:$0xff] %v833_v54 }
  0x47   : > { %v837_v56 = vld [vmem:[%s4908_s6 + $0x700] sm:$0xff]  ;;  %836 = vst [vmem:[%s4913_s7 + $0x1b8] sm:$0xff] %v835_v55 }
  0x48   : > { %838 = vst [vmem:[%s4913_s7 + $0x1c0] sm:$0xff] %v837_v56  ;;  %v839_v57 = vld [vmem:[%s4908_s6 + $0x720] sm:$0xff] }
  0x49   : > { %v841_v58 = vld [vmem:[%s4908_s6 + $0x740] sm:$0xff]  ;;  %840 = vst [vmem:[%s4913_s7 + $0x1c8] sm:$0xff] %v839_v57 }
  0x4a   : > { %v843_v59 = vld [vmem:[%s4908_s6 + $0x760] sm:$0xff]  ;;  %842 = vst [vmem:[%s4913_s7 + $0x1d0] sm:$0xff] %v841_v58 }
  0x4b   : > { %844 = vst [vmem:[%s4913_s7 + $0x1d8] sm:$0xff] %v843_v59  ;;  %v845_v60 = vld [vmem:[%s4908_s6 + $0x780] sm:$0xff] }
  0x4c   : > { %v847_v61 = vld [vmem:[%s4908_s6 + $0x7a0] sm:$0xff]  ;;  %846 = vst [vmem:[%s4913_s7 + $0x1e0] sm:$0xff] %v845_v60 }
  0x4d   : > { %v849_v62 = vld [vmem:[%s4908_s6 + $0x7c0] sm:$0xff]  ;;  %848 = vst [vmem:[%s4913_s7 + $0x1e8] sm:$0xff] %v847_v61 }
  0x4e   : > { %850 = vst [vmem:[%s4913_s7 + $0x1f0] sm:$0xff] %v849_v62  ;;  %v851_v63 = vld [vmem:[%s4908_s6 + $0x7e0] sm:$0xff] }
  0x4f   : > { %v853_v0 = vld [vmem:[%s4908_s6 + $0x800] sm:$0xff]  ;;  %852 = vst [vmem:[%s4913_s7 + $0x1f8] sm:$0xff] %v851_v63 }
  0x50   : > { %v855_v1 = vld [vmem:[%s4908_s6 + $0x820] sm:$0xff]  ;;  %854 = vst [vmem:[%s4913_s7 + $0x200] sm:$0xff] %v853_v0 }
  0x51   : > { %856 = vst [vmem:[%s4913_s7 + $0x208] sm:$0xff] %v855_v1  ;;  %v857_v2 = vld [vmem:[%s4908_s6 + $0x840] sm:$0xff] }
  0x52   : > { %v859_v3 = vld [vmem:[%s4908_s6 + $0x860] sm:$0xff]  ;;  %858 = vst [vmem:[%s4913_s7 + $0x210] sm:$0xff] %v857_v2 }
  0x53   : > { %v861_v4 = vld [vmem:[%s4908_s6 + $0x880] sm:$0xff]  ;;  %860 = vst [vmem:[%s4913_s7 + $0x218] sm:$0xff] %v859_v3 }
  0x54   : > { %862 = vst [vmem:[%s4913_s7 + $0x220] sm:$0xff] %v861_v4  ;;  %v863_v5 = vld [vmem:[%s4908_s6 + $0x8a0] sm:$0xff] }
  0x55   : > { %v865_v6 = vld [vmem:[%s4908_s6 + $0x8c0] sm:$0xff]  ;;  %864 = vst [vmem:[%s4913_s7 + $0x228] sm:$0xff] %v863_v5 }
  0x56   : > { %v867_v7 = vld [vmem:[%s4908_s6 + $0x8e0] sm:$0xff]  ;;  %866 = vst [vmem:[%s4913_s7 + $0x230] sm:$0xff] %v865_v6 }
  0x57   : > { %868 = vst [vmem:[%s4913_s7 + $0x238] sm:$0xff] %v867_v7  ;;  %v869_v8 = vld [vmem:[%s4908_s6 + $0x900] sm:$0xff] }
  0x58   : > { %v871_v9 = vld [vmem:[%s4908_s6 + $0x920] sm:$0xff]  ;;  %870 = vst [vmem:[%s4913_s7 + $0x240] sm:$0xff] %v869_v8 }
  0x59   : > { %v873_v10 = vld [vmem:[%s4908_s6 + $0x940] sm:$0xff]  ;;  %872 = vst [vmem:[%s4913_s7 + $0x248] sm:$0xff] %v871_v9 }
  0x5a   : > { %874 = vst [vmem:[%s4913_s7 + $0x250] sm:$0xff] %v873_v10  ;;  %v875_v11 = vld [vmem:[%s4908_s6 + $0x960] sm:$0xff] }
  0x5b   : > { %v877_v12 = vld [vmem:[%s4908_s6 + $0x980] sm:$0xff]  ;;  %876 = vst [vmem:[%s4913_s7 + $0x258] sm:$0xff] %v875_v11 }
  0x5c   : > { %v879_v13 = vld [vmem:[%s4908_s6 + $0x9a0] sm:$0xff]  ;;  %878 = vst [vmem:[%s4913_s7 + $0x260] sm:$0xff] %v877_v12 }
  0x5d   : > { %880 = vst [vmem:[%s4913_s7 + $0x268] sm:$0xff] %v879_v13  ;;  %v881_v14 = vld [vmem:[%s4908_s6 + $0x9c0] sm:$0xff] }
  0x5e   : > { %v883_v15 = vld [vmem:[%s4908_s6 + $0x9e0] sm:$0xff]  ;;  %882 = vst [vmem:[%s4913_s7 + $0x270] sm:$0xff] %v881_v14 }
  0x5f   : > { %v885_v16 = vld [vmem:[%s4908_s6 + $0xa00] sm:$0xff]  ;;  %884 = vst [vmem:[%s4913_s7 + $0x278] sm:$0xff] %v883_v15 }
  0x60   : > { %886 = vst [vmem:[%s4913_s7 + $0x280] sm:$0xff] %v885_v16  ;;  %v887_v17 = vld [vmem:[%s4908_s6 + $0xa20] sm:$0xff] }
  0x61   : > { %v889_v18 = vld [vmem:[%s4908_s6 + $0xa40] sm:$0xff]  ;;  %888 = vst [vmem:[%s4913_s7 + $0x288] sm:$0xff] %v887_v17 }
  0x62   : > { %v891_v19 = vld [vmem:[%s4908_s6 + $0xa60] sm:$0xff]  ;;  %890 = vst [vmem:[%s4913_s7 + $0x290] sm:$0xff] %v889_v18 }
  0x63   : > { %892 = vst [vmem:[%s4913_s7 + $0x298] sm:$0xff] %v891_v19  ;;  %v893_v20 = vld [vmem:[%s4908_s6 + $0xa80] sm:$0xff] }
  0x64   : > { %v895_v21 = vld [vmem:[%s4908_s6 + $0xaa0] sm:$0xff]  ;;  %894 = vst [vmem:[%s4913_s7 + $0x2a0] sm:$0xff] %v893_v20 }
  0x65   : > { %v897_v22 = vld [vmem:[%s4908_s6 + $0xac0] sm:$0xff]  ;;  %896 = vst [vmem:[%s4913_s7 + $0x2a8] sm:$0xff] %v895_v21 }
  0x66   : > { %898 = vst [vmem:[%s4913_s7 + $0x2b0] sm:$0xff] %v897_v22  ;;  %v899_v23 = vld [vmem:[%s4908_s6 + $0xae0] sm:$0xff] }
  0x67   : > { %v901_v24 = vld [vmem:[%s4908_s6 + $0xb00] sm:$0xff]  ;;  %900 = vst [vmem:[%s4913_s7 + $0x2b8] sm:$0xff] %v899_v23 }
  0x68   : > { %v903_v25 = vld [vmem:[%s4908_s6 + $0xb20] sm:$0xff]  ;;  %902 = vst [vmem:[%s4913_s7 + $0x2c0] sm:$0xff] %v901_v24 }
  0x69   : > { %904 = vst [vmem:[%s4913_s7 + $0x2c8] sm:$0xff] %v903_v25  ;;  %v905_v26 = vld [vmem:[%s4908_s6 + $0xb40] sm:$0xff] }
  0x6a   : > { %v907_v27 = vld [vmem:[%s4908_s6 + $0xb60] sm:$0xff]  ;;  %906 = vst [vmem:[%s4913_s7 + $0x2d0] sm:$0xff] %v905_v26 }
  0x6b   : > { %v909_v28 = vld [vmem:[%s4908_s6 + $0xb80] sm:$0xff]  ;;  %908 = vst [vmem:[%s4913_s7 + $0x2d8] sm:$0xff] %v907_v27 }
  0x6c   : > { %910 = vst [vmem:[%s4913_s7 + $0x2e0] sm:$0xff] %v909_v28  ;;  %v911_v29 = vld [vmem:[%s4908_s6 + $0xba0] sm:$0xff] }
  0x6d   : > { %v913_v30 = vld [vmem:[%s4908_s6 + $0xbc0] sm:$0xff]  ;;  %912 = vst [vmem:[%s4913_s7 + $0x2e8] sm:$0xff] %v911_v29 }
  0x6e   : > { %v915_v31 = vld [vmem:[%s4908_s6 + $0xbe0] sm:$0xff]  ;;  %914 = vst [vmem:[%s4913_s7 + $0x2f0] sm:$0xff] %v913_v30 }
  0x6f   : > { %916 = vst [vmem:[%s4913_s7 + $0x2f8] sm:$0xff] %v915_v31  ;;  %v917_v32 = vld [vmem:[%s4908_s6 + $0xc00] sm:$0xff] }
  0x70   : > { %v919_v33 = vld [vmem:[%s4908_s6 + $0xc20] sm:$0xff]  ;;  %918 = vst [vmem:[%s4913_s7 + $0x300] sm:$0xff] %v917_v32 }
  0x71   : > { %v921_v34 = vld [vmem:[%s4908_s6 + $0xc40] sm:$0xff]  ;;  %920 = vst [vmem:[%s4913_s7 + $0x308] sm:$0xff] %v919_v33 }
  0x72   : > { %922 = vst [vmem:[%s4913_s7 + $0x310] sm:$0xff] %v921_v34  ;;  %v923_v35 = vld [vmem:[%s4908_s6 + $0xc60] sm:$0xff] }
  0x73   : > { %v925_v36 = vld [vmem:[%s4908_s6 + $0xc80] sm:$0xff]  ;;  %924 = vst [vmem:[%s4913_s7 + $0x318] sm:$0xff] %v923_v35 }
  0x74   : > { %v927_v37 = vld [vmem:[%s4908_s6 + $0xca0] sm:$0xff]  ;;  %926 = vst [vmem:[%s4913_s7 + $0x320] sm:$0xff] %v925_v36 }
  0x75   : > { %928 = vst [vmem:[%s4913_s7 + $0x328] sm:$0xff] %v927_v37  ;;  %v929_v38 = vld [vmem:[%s4908_s6 + $0xcc0] sm:$0xff] }
  0x76   : > { %v931_v39 = vld [vmem:[%s4908_s6 + $0xce0] sm:$0xff]  ;;  %930 = vst [vmem:[%s4913_s7 + $0x330] sm:$0xff] %v929_v38 }
  0x77   : > { %v933_v40 = vld [vmem:[%s4908_s6 + $0xd00] sm:$0xff]  ;;  %932 = vst [vmem:[%s4913_s7 + $0x338] sm:$0xff] %v931_v39 }
  0x78   : > { %934 = vst [vmem:[%s4913_s7 + $0x340] sm:$0xff] %v933_v40  ;;  %v935_v41 = vld [vmem:[%s4908_s6 + $0xd20] sm:$0xff] }
  0x79   : > { %v937_v42 = vld [vmem:[%s4908_s6 + $0xd40] sm:$0xff]  ;;  %936 = vst [vmem:[%s4913_s7 + $0x348] sm:$0xff] %v935_v41 }
  0x7a   : > { %v939_v43 = vld [vmem:[%s4908_s6 + $0xd60] sm:$0xff]  ;;  %938 = vst [vmem:[%s4913_s7 + $0x350] sm:$0xff] %v937_v42 }
  0x7b   : > { %940 = vst [vmem:[%s4913_s7 + $0x358] sm:$0xff] %v939_v43  ;;  %v941_v44 = vld [vmem:[%s4908_s6 + $0xd80] sm:$0xff] }
  0x7c   : > { %v943_v45 = vld [vmem:[%s4908_s6 + $0xda0] sm:$0xff]  ;;  %942 = vst [vmem:[%s4913_s7 + $0x360] sm:$0xff] %v941_v44 }
  0x7d   : > { %v945_v46 = vld [vmem:[%s4908_s6 + $0xdc0] sm:$0xff]  ;;  %944 = vst [vmem:[%s4913_s7 + $0x368] sm:$0xff] %v943_v45 }
  0x7e   : > { %946 = vst [vmem:[%s4913_s7 + $0x370] sm:$0xff] %v945_v46  ;;  %v947_v47 = vld [vmem:[%s4908_s6 + $0xde0] sm:$0xff] }
  0x7f   : > { %v949_v48 = vld [vmem:[%s4908_s6 + $0xe00] sm:$0xff]  ;;  %948 = vst [vmem:[%s4913_s7 + $0x378] sm:$0xff] %v947_v47 }
  0x80   : > { %v951_v49 = vld [vmem:[%s4908_s6 + $0xe20] sm:$0xff]  ;;  %950 = vst [vmem:[%s4913_s7 + $0x380] sm:$0xff] %v949_v48 }
  0x81   : > { %952 = vst [vmem:[%s4913_s7 + $0x388] sm:$0xff] %v951_v49  ;;  %v953_v50 = vld [vmem:[%s4908_s6 + $0xe40] sm:$0xff] }
  0x82   : > { %v955_v51 = vld [vmem:[%s4908_s6 + $0xe60] sm:$0xff]  ;;  %954 = vst [vmem:[%s4913_s7 + $0x390] sm:$0xff] %v953_v50 }
  0x83   : > { %v957_v52 = vld [vmem:[%s4908_s6 + $0xe80] sm:$0xff]  ;;  %956 = vst [vmem:[%s4913_s7 + $0x398] sm:$0xff] %v955_v51 }
  0x84   : > { %958 = vst [vmem:[%s4913_s7 + $0x3a0] sm:$0xff] %v957_v52  ;;  %v959_v53 = vld [vmem:[%s4908_s6 + $0xea0] sm:$0xff] }
  0x85   : > { %v961_v54 = vld [vmem:[%s4908_s6 + $0xec0] sm:$0xff]  ;;  %960 = vst [vmem:[%s4913_s7 + $0x3a8] sm:$0xff] %v959_v53 }
  0x86   : > { %v963_v55 = vld [vmem:[%s4908_s6 + $0xee0] sm:$0xff]  ;;  %962 = vst [vmem:[%s4913_s7 + $0x3b0] sm:$0xff] %v961_v54 }
  0x87   : > { %964 = vst [vmem:[%s4913_s7 + $0x3b8] sm:$0xff] %v963_v55  ;;  %v965_v56 = vld [vmem:[%s4908_s6 + $0xf00] sm:$0xff] }
  0x88   : > { %v967_v57 = vld [vmem:[%s4908_s6 + $0xf20] sm:$0xff]  ;;  %966 = vst [vmem:[%s4913_s7 + $0x3c0] sm:$0xff] %v965_v56 }
  0x89   : > { %v969_v58 = vld [vmem:[%s4908_s6 + $0xf40] sm:$0xff]  ;;  %968 = vst [vmem:[%s4913_s7 + $0x3c8] sm:$0xff] %v967_v57 }
  0x8a   : > { %970 = vst [vmem:[%s4913_s7 + $0x3d0] sm:$0xff] %v969_v58  ;;  %v971_v59 = vld [vmem:[%s4908_s6 + $0xf60] sm:$0xff] }
  0x8b   : > { %v973_v60 = vld [vmem:[%s4908_s6 + $0xf80] sm:$0xff]  ;;  %972 = vst [vmem:[%s4913_s7 + $0x3d8] sm:$0xff] %v971_v59 }
  0x8c   : > { %v975_v61 = vld [vmem:[%s4908_s6 + $0xfa0] sm:$0xff]  ;;  %974 = vst [vmem:[%s4913_s7 + $0x3e0] sm:$0xff] %v973_v60 }
  0x8d   : > { %976 = vst [vmem:[%s4913_s7 + $0x3e8] sm:$0xff] %v975_v61  ;;  %v977_v62 = vld [vmem:[%s4908_s6 + $0xfc0] sm:$0xff] }
  0x8e   : > { %v979_v63 = vld [vmem:[%s4908_s6 + $0xfe0] sm:$0xff]  ;;  %978 = vst [vmem:[%s4913_s7 + $0x3f0] sm:$0xff] %v977_v62 }
  0x8f   : > { %v981_v0 = vld [vmem:[%s4908_s6 + $0x1000] sm:$0xff]  ;;  %980 = vst [vmem:[%s4913_s7 + $0x3f8] sm:$0xff] %v979_v63 }
  0x90   : > { %982 = vst [vmem:[%s4913_s7 + $0x400] sm:$0xff] %v981_v0  ;;  %v983_v1 = vld [vmem:[%s4908_s6 + $0x1020] sm:$0xff] }
  0x91   : > { %v985_v2 = vld [vmem:[%s4908_s6 + $0x1040] sm:$0xff]  ;;  %984 = vst [vmem:[%s4913_s7 + $0x408] sm:$0xff] %v983_v1 }
  0x92   : > { %v987_v3 = vld [vmem:[%s4908_s6 + $0x1060] sm:$0xff]  ;;  %986 = vst [vmem:[%s4913_s7 + $0x410] sm:$0xff] %v985_v2 }
  0x93   : > { %988 = vst [vmem:[%s4913_s7 + $0x418] sm:$0xff] %v987_v3  ;;  %v989_v4 = vld [vmem:[%s4908_s6 + $0x1080] sm:$0xff] }
  0x94   : > { %v991_v5 = vld [vmem:[%s4908_s6 + $0x10a0] sm:$0xff]  ;;  %990 = vst [vmem:[%s4913_s7 + $0x420] sm:$0xff] %v989_v4 }
  0x95   : > { %v993_v6 = vld [vmem:[%s4908_s6 + $0x10c0] sm:$0xff]  ;;  %992 = vst [vmem:[%s4913_s7 + $0x428] sm:$0xff] %v991_v5 }
  0x96   : > { %994 = vst [vmem:[%s4913_s7 + $0x430] sm:$0xff] %v993_v6  ;;  %v995_v7 = vld [vmem:[%s4908_s6 + $0x10e0] sm:$0xff] }
  0x97   : > { %v997_v8 = vld [vmem:[%s4908_s6 + $0x1100] sm:$0xff]  ;;  %996 = vst [vmem:[%s4913_s7 + $0x438] sm:$0xff] %v995_v7 }
  0x98   : > { %v999_v9 = vld [vmem:[%s4908_s6 + $0x1120] sm:$0xff]  ;;  %998 = vst [vmem:[%s4913_s7 + $0x440] sm:$0xff] %v997_v8 }
  0x99   : > { %1000 = vst [vmem:[%s4913_s7 + $0x448] sm:$0xff] %v999_v9  ;;  %v1001_v10 = vld [vmem:[%s4908_s6 + $0x1140] sm:$0xff] }
  0x9a   : > { %v1003_v11 = vld [vmem:[%s4908_s6 + $0x1160] sm:$0xff]  ;;  %1002 = vst [vmem:[%s4913_s7 + $0x450] sm:$0xff] %v1001_v10 }
  0x9b   : > { %v1005_v12 = vld [vmem:[%s4908_s6 + $0x1180] sm:$0xff]  ;;  %1004 = vst [vmem:[%s4913_s7 + $0x458] sm:$0xff] %v1003_v11 }
  0x9c   : > { %1006 = vst [vmem:[%s4913_s7 + $0x460] sm:$0xff] %v1005_v12  ;;  %v1007_v13 = vld [vmem:[%s4908_s6 + $0x11a0] sm:$0xff] }
  0x9d   : > { %v1009_v14 = vld [vmem:[%s4908_s6 + $0x11c0] sm:$0xff]  ;;  %1008 = vst [vmem:[%s4913_s7 + $0x468] sm:$0xff] %v1007_v13 }
  0x9e   : > { %v1011_v15 = vld [vmem:[%s4908_s6 + $0x11e0] sm:$0xff]  ;;  %1010 = vst [vmem:[%s4913_s7 + $0x470] sm:$0xff] %v1009_v14 }
  0x9f   : > { %1012 = vst [vmem:[%s4913_s7 + $0x478] sm:$0xff] %v1011_v15  ;;  %v1013_v16 = vld [vmem:[%s4908_s6 + $0x1200] sm:$0xff] }
  0xa0   : > { %v1015_v17 = vld [vmem:[%s4908_s6 + $0x1220] sm:$0xff]  ;;  %1014 = vst [vmem:[%s4913_s7 + $0x480] sm:$0xff] %v1013_v16 }
  0xa1   : > { %v1017_v18 = vld [vmem:[%s4908_s6 + $0x1240] sm:$0xff]  ;;  %1016 = vst [vmem:[%s4913_s7 + $0x488] sm:$0xff] %v1015_v17 }
  0xa2   : > { %1018 = vst [vmem:[%s4913_s7 + $0x490] sm:$0xff] %v1017_v18  ;;  %v1019_v19 = vld [vmem:[%s4908_s6 + $0x1260] sm:$0xff] }
  0xa3   : > { %v1021_v20 = vld [vmem:[%s4908_s6 + $0x1280] sm:$0xff]  ;;  %1020 = vst [vmem:[%s4913_s7 + $0x498] sm:$0xff] %v1019_v19 }
  0xa4   : > { %v1023_v21 = vld [vmem:[%s4908_s6 + $0x12a0] sm:$0xff]  ;;  %1022 = vst [vmem:[%s4913_s7 + $0x4a0] sm:$0xff] %v1021_v20 }
  0xa5   : > { %1024 = vst [vmem:[%s4913_s7 + $0x4a8] sm:$0xff] %v1023_v21  ;;  %v1025_v22 = vld [vmem:[%s4908_s6 + $0x12c0] sm:$0xff] }
  0xa6   : > { %v1027_v23 = vld [vmem:[%s4908_s6 + $0x12e0] sm:$0xff]  ;;  %1026 = vst [vmem:[%s4913_s7 + $0x4b0] sm:$0xff] %v1025_v22 }
  0xa7   : > { %v1029_v24 = vld [vmem:[%s4908_s6 + $0x1300] sm:$0xff]  ;;  %1028 = vst [vmem:[%s4913_s7 + $0x4b8] sm:$0xff] %v1027_v23 }
  0xa8   : > { %1030 = vst [vmem:[%s4913_s7 + $0x4c0] sm:$0xff] %v1029_v24  ;;  %v1031_v25 = vld [vmem:[%s4908_s6 + $0x1320] sm:$0xff] }
  0xa9   : > { %v1033_v26 = vld [vmem:[%s4908_s6 + $0x1340] sm:$0xff]  ;;  %1032 = vst [vmem:[%s4913_s7 + $0x4c8] sm:$0xff] %v1031_v25 }
  0xaa   : > { %v1035_v27 = vld [vmem:[%s4908_s6 + $0x1360] sm:$0xff]  ;;  %1034 = vst [vmem:[%s4913_s7 + $0x4d0] sm:$0xff] %v1033_v26 }
  0xab   : > { %1036 = vst [vmem:[%s4913_s7 + $0x4d8] sm:$0xff] %v1035_v27  ;;  %v1037_v28 = vld [vmem:[%s4908_s6 + $0x1380] sm:$0xff] }
  0xac   : > { %v1039_v29 = vld [vmem:[%s4908_s6 + $0x13a0] sm:$0xff]  ;;  %1038 = vst [vmem:[%s4913_s7 + $0x4e0] sm:$0xff] %v1037_v28 }
  0xad   : > { %v1041_v30 = vld [vmem:[%s4908_s6 + $0x13c0] sm:$0xff]  ;;  %1040 = vst [vmem:[%s4913_s7 + $0x4e8] sm:$0xff] %v1039_v29 }
  0xae   : > { %1042 = vst [vmem:[%s4913_s7 + $0x4f0] sm:$0xff] %v1041_v30  ;;  %v1043_v31 = vld [vmem:[%s4908_s6 + $0x13e0] sm:$0xff] }
  0xaf   : > { %v1045_v32 = vld [vmem:[%s4908_s6 + $0x1400] sm:$0xff]  ;;  %1044 = vst [vmem:[%s4913_s7 + $0x4f8] sm:$0xff] %v1043_v31 }
  0xb0   : > { %v1047_v33 = vld [vmem:[%s4908_s6 + $0x1420] sm:$0xff]  ;;  %1046 = vst [vmem:[%s4913_s7 + $0x500] sm:$0xff] %v1045_v32 }
  0xb1   : > { %1048 = vst [vmem:[%s4913_s7 + $0x508] sm:$0xff] %v1047_v33  ;;  %v1049_v34 = vld [vmem:[%s4908_s6 + $0x1440] sm:$0xff] }
  0xb2   : > { %v1051_v35 = vld [vmem:[%s4908_s6 + $0x1460] sm:$0xff]  ;;  %1050 = vst [vmem:[%s4913_s7 + $0x510] sm:$0xff] %v1049_v34 }
  0xb3   : > { %v1053_v36 = vld [vmem:[%s4908_s6 + $0x1480] sm:$0xff]  ;;  %1052 = vst [vmem:[%s4913_s7 + $0x518] sm:$0xff] %v1051_v35 }
  0xb4   : > { %1054 = vst [vmem:[%s4913_s7 + $0x520] sm:$0xff] %v1053_v36  ;;  %v1055_v37 = vld [vmem:[%s4908_s6 + $0x14a0] sm:$0xff] }
  0xb5   : > { %v1057_v38 = vld [vmem:[%s4908_s6 + $0x14c0] sm:$0xff]  ;;  %1056 = vst [vmem:[%s4913_s7 + $0x528] sm:$0xff] %v1055_v37 }
  0xb6   : > { %v1059_v39 = vld [vmem:[%s4908_s6 + $0x14e0] sm:$0xff]  ;;  %1058 = vst [vmem:[%s4913_s7 + $0x530] sm:$0xff] %v1057_v38 }
  0xb7   : > { %1060 = vst [vmem:[%s4913_s7 + $0x538] sm:$0xff] %v1059_v39  ;;  %v1061_v40 = vld [vmem:[%s4908_s6 + $0x1500] sm:$0xff] }
  0xb8   : > { %v1063_v41 = vld [vmem:[%s4908_s6 + $0x1520] sm:$0xff]  ;;  %1062 = vst [vmem:[%s4913_s7 + $0x540] sm:$0xff] %v1061_v40 }
  0xb9   : > { %v1065_v42 = vld [vmem:[%s4908_s6 + $0x1540] sm:$0xff]  ;;  %1064 = vst [vmem:[%s4913_s7 + $0x548] sm:$0xff] %v1063_v41 }
  0xba   : > { %1066 = vst [vmem:[%s4913_s7 + $0x550] sm:$0xff] %v1065_v42  ;;  %v1067_v43 = vld [vmem:[%s4908_s6 + $0x1560] sm:$0xff] }
  0xbb   : > { %v1069_v44 = vld [vmem:[%s4908_s6 + $0x1580] sm:$0xff]  ;;  %1068 = vst [vmem:[%s4913_s7 + $0x558] sm:$0xff] %v1067_v43 }
  0xbc   : > { %v1071_v45 = vld [vmem:[%s4908_s6 + $0x15a0] sm:$0xff]  ;;  %1070 = vst [vmem:[%s4913_s7 + $0x560] sm:$0xff] %v1069_v44 }
  0xbd   : > { %1072 = vst [vmem:[%s4913_s7 + $0x568] sm:$0xff] %v1071_v45  ;;  %v1073_v46 = vld [vmem:[%s4908_s6 + $0x15c0] sm:$0xff] }
  0xbe   : > { %v1075_v47 = vld [vmem:[%s4908_s6 + $0x15e0] sm:$0xff]  ;;  %1074 = vst [vmem:[%s4913_s7 + $0x570] sm:$0xff] %v1073_v46 }
  0xbf   : > { %v1077_v48 = vld [vmem:[%s4908_s6 + $0x1600] sm:$0xff]  ;;  %1076 = vst [vmem:[%s4913_s7 + $0x578] sm:$0xff] %v1075_v47 }
  0xc0   : > { %1078 = vst [vmem:[%s4913_s7 + $0x580] sm:$0xff] %v1077_v48  ;;  %v1079_v49 = vld [vmem:[%s4908_s6 + $0x1620] sm:$0xff] }
  0xc1   : > { %v1081_v50 = vld [vmem:[%s4908_s6 + $0x1640] sm:$0xff]  ;;  %1080 = vst [vmem:[%s4913_s7 + $0x588] sm:$0xff] %v1079_v49 }
  0xc2   : > { %v1083_v51 = vld [vmem:[%s4908_s6 + $0x1660] sm:$0xff]  ;;  %1082 = vst [vmem:[%s4913_s7 + $0x590] sm:$0xff] %v1081_v50 }
  0xc3   : > { %1084 = vst [vmem:[%s4913_s7 + $0x598] sm:$0xff] %v1083_v51  ;;  %v1085_v52 = vld [vmem:[%s4908_s6 + $0x1680] sm:$0xff] }
  0xc4   : > { %v1087_v53 = vld [vmem:[%s4908_s6 + $0x16a0] sm:$0xff]  ;;  %1086 = vst [vmem:[%s4913_s7 + $0x5a0] sm:$0xff] %v1085_v52 }
  0xc5   : > { %v1089_v54 = vld [vmem:[%s4908_s6 + $0x16c0] sm:$0xff]  ;;  %1088 = vst [vmem:[%s4913_s7 + $0x5a8] sm:$0xff] %v1087_v53 }
  0xc6   : > { %1090 = vst [vmem:[%s4913_s7 + $0x5b0] sm:$0xff] %v1089_v54  ;;  %v1091_v55 = vld [vmem:[%s4908_s6 + $0x16e0] sm:$0xff] }
  0xc7   : > { %v1093_v56 = vld [vmem:[%s4908_s6 + $0x1700] sm:$0xff]  ;;  %1092 = vst [vmem:[%s4913_s7 + $0x5b8] sm:$0xff] %v1091_v55 }
  0xc8   : > { %v1095_v57 = vld [vmem:[%s4908_s6 + $0x1720] sm:$0xff]  ;;  %1094 = vst [vmem:[%s4913_s7 + $0x5c0] sm:$0xff] %v1093_v56 }
  0xc9   : > { %1096 = vst [vmem:[%s4913_s7 + $0x5c8] sm:$0xff] %v1095_v57  ;;  %v1097_v58 = vld [vmem:[%s4908_s6 + $0x1740] sm:$0xff] }
  0xca   : > { %v1099_v59 = vld [vmem:[%s4908_s6 + $0x1760] sm:$0xff]  ;;  %1098 = vst [vmem:[%s4913_s7 + $0x5d0] sm:$0xff] %v1097_v58 }
  0xcb   : > { %v1101_v60 = vld [vmem:[%s4908_s6 + $0x1780] sm:$0xff]  ;;  %1100 = vst [vmem:[%s4913_s7 + $0x5d8] sm:$0xff] %v1099_v59 }
  0xcc   : > { %1102 = vst [vmem:[%s4913_s7 + $0x5e0] sm:$0xff] %v1101_v60  ;;  %v1103_v61 = vld [vmem:[%s4908_s6 + $0x17a0] sm:$0xff] }
  0xcd   : > { %v1105_v62 = vld [vmem:[%s4908_s6 + $0x17c0] sm:$0xff]  ;;  %1104 = vst [vmem:[%s4913_s7 + $0x5e8] sm:$0xff] %v1103_v61 }
  0xce   : > { %v1107_v63 = vld [vmem:[%s4908_s6 + $0x17e0] sm:$0xff]  ;;  %1106 = vst [vmem:[%s4913_s7 + $0x5f0] sm:$0xff] %v1105_v62 }
  0xcf   : > { %1108 = vst [vmem:[%s4913_s7 + $0x5f8] sm:$0xff] %v1107_v63  ;;  %v1109_v0 = vld [vmem:[%s4908_s6 + $0x1800] sm:$0xff] }
  0xd0   : > { %v1111_v1 = vld [vmem:[%s4908_s6 + $0x1820] sm:$0xff]  ;;  %1110 = vst [vmem:[%s4913_s7 + $0x600] sm:$0xff] %v1109_v0 }
  0xd1   : > { %v1113_v2 = vld [vmem:[%s4908_s6 + $0x1840] sm:$0xff]  ;;  %1112 = vst [vmem:[%s4913_s7 + $0x608] sm:$0xff] %v1111_v1 }
  0xd2   : > { %1114 = vst [vmem:[%s4913_s7 + $0x610] sm:$0xff] %v1113_v2  ;;  %v1115_v3 = vld [vmem:[%s4908_s6 + $0x1860] sm:$0xff] }
  0xd3   : > { %v1117_v4 = vld [vmem:[%s4908_s6 + $0x1880] sm:$0xff]  ;;  %1116 = vst [vmem:[%s4913_s7 + $0x618] sm:$0xff] %v1115_v3 }
  0xd4   : > { %v1119_v5 = vld [vmem:[%s4908_s6 + $0x18a0] sm:$0xff]  ;;  %1118 = vst [vmem:[%s4913_s7 + $0x620] sm:$0xff] %v1117_v4 }
  0xd5   : > { %1120 = vst [vmem:[%s4913_s7 + $0x628] sm:$0xff] %v1119_v5  ;;  %v1121_v6 = vld [vmem:[%s4908_s6 + $0x18c0] sm:$0xff] }
  0xd6   : > { %v1123_v7 = vld [vmem:[%s4908_s6 + $0x18e0] sm:$0xff]  ;;  %1122 = vst [vmem:[%s4913_s7 + $0x630] sm:$0xff] %v1121_v6 }
  0xd7   : > { %v1125_v8 = vld [vmem:[%s4908_s6 + $0x1900] sm:$0xff]  ;;  %1124 = vst [vmem:[%s4913_s7 + $0x638] sm:$0xff] %v1123_v7 }
  0xd8   : > { %1126 = vst [vmem:[%s4913_s7 + $0x640] sm:$0xff] %v1125_v8  ;;  %v1127_v9 = vld [vmem:[%s4908_s6 + $0x1920] sm:$0xff] }
  0xd9   : > { %v1129_v10 = vld [vmem:[%s4908_s6 + $0x1940] sm:$0xff]  ;;  %1128 = vst [vmem:[%s4913_s7 + $0x648] sm:$0xff] %v1127_v9 }
  0xda   : > { %v1131_v11 = vld [vmem:[%s4908_s6 + $0x1960] sm:$0xff]  ;;  %1130 = vst [vmem:[%s4913_s7 + $0x650] sm:$0xff] %v1129_v10 }
  0xdb   : > { %1132 = vst [vmem:[%s4913_s7 + $0x658] sm:$0xff] %v1131_v11  ;;  %v1133_v12 = vld [vmem:[%s4908_s6 + $0x1980] sm:$0xff] }
  0xdc   : > { %v1135_v13 = vld [vmem:[%s4908_s6 + $0x19a0] sm:$0xff]  ;;  %1134 = vst [vmem:[%s4913_s7 + $0x660] sm:$0xff] %v1133_v12 }
  0xdd   : > { %v1137_v14 = vld [vmem:[%s4908_s6 + $0x19c0] sm:$0xff]  ;;  %1136 = vst [vmem:[%s4913_s7 + $0x668] sm:$0xff] %v1135_v13 }
  0xde   : > { %1138 = vst [vmem:[%s4913_s7 + $0x670] sm:$0xff] %v1137_v14  ;;  %v1139_v15 = vld [vmem:[%s4908_s6 + $0x19e0] sm:$0xff] }
  0xdf   : > { %v1141_v16 = vld [vmem:[%s4908_s6 + $0x1a00] sm:$0xff]  ;;  %1140 = vst [vmem:[%s4913_s7 + $0x678] sm:$0xff] %v1139_v15 }
  0xe0   : > { %v1143_v17 = vld [vmem:[%s4908_s6 + $0x1a20] sm:$0xff]  ;;  %1142 = vst [vmem:[%s4913_s7 + $0x680] sm:$0xff] %v1141_v16 }
  0xe1   : > { %1144 = vst [vmem:[%s4913_s7 + $0x688] sm:$0xff] %v1143_v17  ;;  %v1145_v18 = vld [vmem:[%s4908_s6 + $0x1a40] sm:$0xff] }
  0xe2   : > { %v1147_v19 = vld [vmem:[%s4908_s6 + $0x1a60] sm:$0xff]  ;;  %1146 = vst [vmem:[%s4913_s7 + $0x690] sm:$0xff] %v1145_v18 }
  0xe3   : > { %v1149_v20 = vld [vmem:[%s4908_s6 + $0x1a80] sm:$0xff]  ;;  %1148 = vst [vmem:[%s4913_s7 + $0x698] sm:$0xff] %v1147_v19 }
  0xe4   : > { %1150 = vst [vmem:[%s4913_s7 + $0x6a0] sm:$0xff] %v1149_v20  ;;  %v1151_v21 = vld [vmem:[%s4908_s6 + $0x1aa0] sm:$0xff] }
  0xe5   : > { %v1153_v22 = vld [vmem:[%s4908_s6 + $0x1ac0] sm:$0xff]  ;;  %1152 = vst [vmem:[%s4913_s7 + $0x6a8] sm:$0xff] %v1151_v21 }
  0xe6   : > { %v1155_v23 = vld [vmem:[%s4908_s6 + $0x1ae0] sm:$0xff]  ;;  %1154 = vst [vmem:[%s4913_s7 + $0x6b0] sm:$0xff] %v1153_v22 }
  0xe7   : > { %1156 = vst [vmem:[%s4913_s7 + $0x6b8] sm:$0xff] %v1155_v23  ;;  %v1157_v24 = vld [vmem:[%s4908_s6 + $0x1b00] sm:$0xff] }
  0xe8   : > { %v1159_v25 = vld [vmem:[%s4908_s6 + $0x1b20] sm:$0xff]  ;;  %1158 = vst [vmem:[%s4913_s7 + $0x6c0] sm:$0xff] %v1157_v24 }
  0xe9   : > { %v1161_v26 = vld [vmem:[%s4908_s6 + $0x1b40] sm:$0xff]  ;;  %1160 = vst [vmem:[%s4913_s7 + $0x6c8] sm:$0xff] %v1159_v25 }
  0xea   : > { %1162 = vst [vmem:[%s4913_s7 + $0x6d0] sm:$0xff] %v1161_v26  ;;  %v1163_v27 = vld [vmem:[%s4908_s6 + $0x1b60] sm:$0xff] }
  0xeb   : > { %v1165_v28 = vld [vmem:[%s4908_s6 + $0x1b80] sm:$0xff]  ;;  %1164 = vst [vmem:[%s4913_s7 + $0x6d8] sm:$0xff] %v1163_v27 }
  0xec   : > { %v1167_v29 = vld [vmem:[%s4908_s6 + $0x1ba0] sm:$0xff]  ;;  %1166 = vst [vmem:[%s4913_s7 + $0x6e0] sm:$0xff] %v1165_v28 }
  0xed   : > { %1168 = vst [vmem:[%s4913_s7 + $0x6e8] sm:$0xff] %v1167_v29  ;;  %v1169_v30 = vld [vmem:[%s4908_s6 + $0x1bc0] sm:$0xff] }
  0xee   : > { %v1171_v31 = vld [vmem:[%s4908_s6 + $0x1be0] sm:$0xff]  ;;  %1170 = vst [vmem:[%s4913_s7 + $0x6f0] sm:$0xff] %v1169_v30 }
  0xef   : > { %v1173_v32 = vld [vmem:[%s4908_s6 + $0x1c00] sm:$0xff]  ;;  %1172 = vst [vmem:[%s4913_s7 + $0x6f8] sm:$0xff] %v1171_v31 }
  0xf0   : > { %1174 = vst [vmem:[%s4913_s7 + $0x700] sm:$0xff] %v1173_v32  ;;  %v1175_v33 = vld [vmem:[%s4908_s6 + $0x1c20] sm:$0xff] }
  0xf1   : > { %v1177_v34 = vld [vmem:[%s4908_s6 + $0x1c40] sm:$0xff]  ;;  %1176 = vst [vmem:[%s4913_s7 + $0x708] sm:$0xff] %v1175_v33 }
  0xf2   : > { %v1179_v35 = vld [vmem:[%s4908_s6 + $0x1c60] sm:$0xff]  ;;  %1178 = vst [vmem:[%s4913_s7 + $0x710] sm:$0xff] %v1177_v34 }
  0xf3   : > { %1180 = vst [vmem:[%s4913_s7 + $0x718] sm:$0xff] %v1179_v35  ;;  %v1181_v36 = vld [vmem:[%s4908_s6 + $0x1c80] sm:$0xff] }
  0xf4   : > { %v1183_v37 = vld [vmem:[%s4908_s6 + $0x1ca0] sm:$0xff]  ;;  %1182 = vst [vmem:[%s4913_s7 + $0x720] sm:$0xff] %v1181_v36 }
  0xf5   : > { %v1185_v38 = vld [vmem:[%s4908_s6 + $0x1cc0] sm:$0xff]  ;;  %1184 = vst [vmem:[%s4913_s7 + $0x728] sm:$0xff] %v1183_v37 }
  0xf6   : > { %1186 = vst [vmem:[%s4913_s7 + $0x730] sm:$0xff] %v1185_v38  ;;  %v1187_v39 = vld [vmem:[%s4908_s6 + $0x1ce0] sm:$0xff] }
  0xf7   : > { %v1189_v40 = vld [vmem:[%s4908_s6 + $0x1d00] sm:$0xff]  ;;  %1188 = vst [vmem:[%s4913_s7 + $0x738] sm:$0xff] %v1187_v39 }
  0xf8   : > { %v1191_v41 = vld [vmem:[%s4908_s6 + $0x1d20] sm:$0xff]  ;;  %1190 = vst [vmem:[%s4913_s7 + $0x740] sm:$0xff] %v1189_v40 }
  0xf9   : > { %1192 = vst [vmem:[%s4913_s7 + $0x748] sm:$0xff] %v1191_v41  ;;  %v1193_v42 = vld [vmem:[%s4908_s6 + $0x1d40] sm:$0xff] }
  0xfa   : > { %v1195_v43 = vld [vmem:[%s4908_s6 + $0x1d60] sm:$0xff]  ;;  %1194 = vst [vmem:[%s4913_s7 + $0x750] sm:$0xff] %v1193_v42 }
  0xfb   : > { %v1197_v44 = vld [vmem:[%s4908_s6 + $0x1d80] sm:$0xff]  ;;  %1196 = vst [vmem:[%s4913_s7 + $0x758] sm:$0xff] %v1195_v43 }
  0xfc   : > { %1198 = vst [vmem:[%s4913_s7 + $0x760] sm:$0xff] %v1197_v44  ;;  %v1199_v45 = vld [vmem:[%s4908_s6 + $0x1da0] sm:$0xff] }
  0xfd   : > { %v1201_v46 = vld [vmem:[%s4908_s6 + $0x1dc0] sm:$0xff]  ;;  %1200 = vst [vmem:[%s4913_s7 + $0x768] sm:$0xff] %v1199_v45 }
  0xfe   : > { %v1203_v47 = vld [vmem:[%s4908_s6 + $0x1de0] sm:$0xff]  ;;  %1202 = vst [vmem:[%s4913_s7 + $0x770] sm:$0xff] %v1201_v46 }
  0xff   : > { %1204 = vst [vmem:[%s4913_s7 + $0x778] sm:$0xff] %v1203_v47  ;;  %v1205_v48 = vld [vmem:[%s4908_s6 + $0x1e00] sm:$0xff] }
 0x100   : > { %v1207_v49 = vld [vmem:[%s4908_s6 + $0x1e20] sm:$0xff]  ;;  %1206 = vst [vmem:[%s4913_s7 + $0x780] sm:$0xff] %v1205_v48 }
 0x101   : > { %v1209_v50 = vld [vmem:[%s4908_s6 + $0x1e40] sm:$0xff]  ;;  %1208 = vst [vmem:[%s4913_s7 + $0x788] sm:$0xff] %v1207_v49 }
 0x102   : > { %1210 = vst [vmem:[%s4913_s7 + $0x790] sm:$0xff] %v1209_v50  ;;  %v1211_v51 = vld [vmem:[%s4908_s6 + $0x1e60] sm:$0xff] }
 0x103   : > { %v1213_v52 = vld [vmem:[%s4908_s6 + $0x1e80] sm:$0xff]  ;;  %1212 = vst [vmem:[%s4913_s7 + $0x798] sm:$0xff] %v1211_v51 }
 0x104   : > { %v1215_v53 = vld [vmem:[%s4908_s6 + $0x1ea0] sm:$0xff]  ;;  %1214 = vst [vmem:[%s4913_s7 + $0x7a0] sm:$0xff] %v1213_v52 }
 0x105   : > { %1216 = vst [vmem:[%s4913_s7 + $0x7a8] sm:$0xff] %v1215_v53  ;;  %v1217_v54 = vld [vmem:[%s4908_s6 + $0x1ec0] sm:$0xff] }
 0x106   : > { %v1219_v55 = vld [vmem:[%s4908_s6 + $0x1ee0] sm:$0xff]  ;;  %1218 = vst [vmem:[%s4913_s7 + $0x7b0] sm:$0xff] %v1217_v54 }
 0x107   : > { %v1221_v56 = vld [vmem:[%s4908_s6 + $0x1f00] sm:$0xff]  ;;  %1220 = vst [vmem:[%s4913_s7 + $0x7b8] sm:$0xff] %v1219_v55 }
 0x108   : > { %1222 = vst [vmem:[%s4913_s7 + $0x7c0] sm:$0xff] %v1221_v56  ;;  %v1223_v57 = vld [vmem:[%s4908_s6 + $0x1f20] sm:$0xff] }
 0x109   : > { %v1225_v58 = vld [vmem:[%s4908_s6 + $0x1f40] sm:$0xff]  ;;  %1224 = vst [vmem:[%s4913_s7 + $0x7c8] sm:$0xff] %v1223_v57 }
 0x10a   : > { %v1227_v59 = vld [vmem:[%s4908_s6 + $0x1f60] sm:$0xff]  ;;  %1226 = vst [vmem:[%s4913_s7 + $0x7d0] sm:$0xff] %v1225_v58 }
 0x10b   : > { %1228 = vst [vmem:[%s4913_s7 + $0x7d8] sm:$0xff] %v1227_v59  ;;  %v1229_v60 = vld [vmem:[%s4908_s6 + $0x1f80] sm:$0xff] }
 0x10c   : > { %v1231_v61 = vld [vmem:[%s4908_s6 + $0x1fa0] sm:$0xff]  ;;  %1230 = vst [vmem:[%s4913_s7 + $0x7e0] sm:$0xff] %v1229_v60 }
 0x10d   : > { %v1233_v62 = vld [vmem:[%s4908_s6 + $0x1fc0] sm:$0xff]  ;;  %1232 = vst [vmem:[%s4913_s7 + $0x7e8] sm:$0xff] %v1231_v61 }
 0x10e   : > { %1234 = vst [vmem:[%s4913_s7 + $0x7f0] sm:$0xff] %v1233_v62  ;;  %v1235_v63 = vld [vmem:[%s4908_s6 + $0x1fe0] sm:$0xff] }
 0x10f   : > { %1236 = vst [vmem:[%s4913_s7 + $0x7f8] sm:$0xff] %v1235_v63 }
 0x110 PF: > { %p3960_p5 = scmp.ge.s32.totalorder %s4839_s20, 1  ;;  %p1259_p6 = scmp.lt.s32.totalorder %s4839_s20, 5 }
 0x112   : > { %p1260_p7 = pnand %p3960_p5, %p1259_p6 }
 0x113   : > { %s1266_s8 = sand.u32 (!%p1260_p7), 1, %s4831_s18   ;;  %s3962_s9 = sshll.u32 (!%p1260_p7), %s4888_s21, 1 }
 0x114   : > { %1263 = sbr.rel (%p1260_p7) target bundleno = 1138 (0x472), region = 74  ;;  %s3961_s10 = sshll.u32 (!%p1260_p7), %s1266_s8, 11 }
 0x115   : > { %p1300_p8 = scmp.lt.s32.totalorder (!%p1260_p7), %s3962_s9, 7  ;;  %s3963_s11 = sshll.u32 (!%p1260_p7), %s4888_s21, 5 }
 0x116   : > { %p1305_p9 = scmp.lt.s32.totalorder (!%p1260_p7), %s3963_s11, 127  ;;  %s5440_s18 = scalar_lea.vmem (!%p1260_p7), [#allocation2], %s3961_s10 }
 0x117   : > { %p3966_p10 = scmp.ne.s32.totalorder (!%p1260_p7), %s4888_s21, 0 }
 0x119   : > { %s6022_s9 = smov (!%p1300_p8, %s3962_s9), 7  ;;  %s6024_s11 = smov (!%p1305_p9, %s3963_s11), 127 }
 0x11a   : > { %s1302_s14 = scalar_lea.vmem %s6014_s2, %s6022_s9  ;;  %s4307_s15 = sshll.u32 %s6024_s11, 4 }
 0x11b   : > { %s5438_s20 = scalar_lea.vmem %s6015_s3, %s4307_s15  ;;  %1314 = sbr.rel (%p3966_p10) target bundleno = 293 (0x125), region = 82 }
 0x120   : > { %v4841_v0 = vmov 0.0  }
 0x121   : > { %1315 = vst [vmem:[%s6017_s5] sm:$0xff] %v4841_v0  ;;  %1316 = vst [vmem:[%s6017_s5 + $0x8] sm:$0xff] %v4841_v0 }
 0x122   : > { %1317 = vst [vmem:[%s6017_s5 + $0x10] sm:$0xff] %v4841_v0  ;;  %1318 = vst [vmem:[%s6017_s5 + $0x18] sm:$0xff] %v4841_v0 }
 0x123   : > { %1319 = vst [vmem:[%s6017_s5 + $0x20] sm:$0xff] %v4841_v0  ;;  %1320 = vst [vmem:[%s6017_s5 + $0x28] sm:$0xff] %v4841_v0 }
 0x124   : > { %1321 = vst [vmem:[%s6017_s5 + $0x30] sm:$0xff] %v4841_v0  ;;  %1322 = vst [vmem:[%s6017_s5 + $0x38] sm:$0xff] %v4841_v0 }
 0x125 PF: > { %v4333_v1 = vld [vmem:[%s5440_s18 + $0x74] ss:$8 sps:$4 sm:$0xff]   ;;  %v4337_v3 = vld [vmem:[%s5440_s18 + $0x70] ss:$8 sps:$4 sm:$0xff]   ;;  %v4339_v5 = vld [vmem:[%s5440_s18 + $0x64] ss:$8 sps:$4 sm:$0xff]  }
 0x126   : > { %v4335_v2 = vld [vmem:[%s5440_s18 + $0x174] ss:$8 sps:$4 sm:$0xff]   ;;  %2967 = vmatprep.subr.bf16.mxu0 %v4333_v1  ;;  %v4338_v4 = vld [vmem:[%s5440_s18 + $0x170] ss:$8 sps:$4 sm:$0xff]   ;;  %v4341_v6 = vld [vmem:[%s5440_s18 + $0x164] ss:$8 sps:$4 sm:$0xff]  }
 0x127   : > { %3010 = vmatprep.subr.bf16.mxu1 %v4335_v2  ;;  %2968 = vmatpush1.bf16.msra.mxu0 %v4337_v3  ;;  %v4343_v7 = vld [vmem:[%s5440_s18 + $0x60] ss:$8 sps:$4 sm:$0xff]   ;;  %v4345_v9 = vld [vmem:[%s5440_s18 + $0x54] ss:$8 sps:$4 sm:$0xff]   ;;  %v4349_v11 = vld [vmem:[%s5440_s18 + $0x50] ss:$8 sps:$4 sm:$0xff]  }
 0x128   : > { %3011 = vmatpush1.bf16.msra.mxu1 %v4338_v4  ;;  %2969 = vmatprep.subr.bf16.mxu0 %v4339_v5  ;;  %v4344_v8 = vld [vmem:[%s5440_s18 + $0x160] ss:$8 sps:$4 sm:$0xff]   ;;  %v4347_v10 = vld [vmem:[%s5440_s18 + $0x154] ss:$8 sps:$4 sm:$0xff]   ;;  %v4350_v12 = vld [vmem:[%s5440_s18 + $0x150] ss:$8 sps:$4 sm:$0xff]  }
 0x129   : > { %3012 = vmatprep.subr.bf16.mxu1 %v4341_v6  ;;  %v4351_v13 = vld [vmem:[%s5440_s18 + $0x44] ss:$8 sps:$4 sm:$0xff]   ;;  %v4355_v15 = vld [vmem:[%s5440_s18 + $0x40] ss:$8 sps:$4 sm:$0xff]   ;;  %v4357_v17 = vld [vmem:[%s5440_s18 + $0x34] ss:$8 sps:$4 sm:$0xff]  }
 0x12a   : > { %v4353_v14 = vld [vmem:[%s5440_s18 + $0x144] ss:$8 sps:$4 sm:$0xff]   ;;  %v4356_v16 = vld [vmem:[%s5440_s18 + $0x140] ss:$8 sps:$4 sm:$0xff]   ;;  %v4359_v18 = vld [vmem:[%s5440_s18 + $0x134] ss:$8 sps:$4 sm:$0xff]  }
 0x12b   : > { %2970 = vmatpush1.bf16.msra.mxu0 %v4343_v7  ;;  %v4361_v19 = vld [vmem:[%s5440_s18 + $0x30] ss:$8 sps:$4 sm:$0xff]   ;;  %v4363_v21 = vld [vmem:[%s5440_s18 + $0x24] ss:$8 sps:$4 sm:$0xff]   ;;  %v4367_v23 = vld [vmem:[%s5440_s18 + $0x20] ss:$8 sps:$4 sm:$0xff]  }
 0x12c   : > { %3013 = vmatpush1.bf16.msra.mxu1 %v4344_v8  ;;  %2971 = vmatprep.subr.bf16.mxu0 %v4345_v9  ;;  %v4362_v20 = vld [vmem:[%s5440_s18 + $0x130] ss:$8 sps:$4 sm:$0xff]   ;;  %v4365_v22 = vld [vmem:[%s5440_s18 + $0x124] ss:$8 sps:$4 sm:$0xff]   ;;  %v4368_v24 = vld [vmem:[%s5440_s18 + $0x120] ss:$8 sps:$4 sm:$0xff]  }
 0x12d   : > { %3014 = vmatprep.subr.bf16.mxu1 %v4347_v10  ;;  %v4369_v25 = vld [vmem:[%s5440_s18 + $0x14] ss:$8 sps:$4 sm:$0xff]   ;;  %v4373_v27 = vld [vmem:[%s5440_s18 + $0x10] ss:$8 sps:$4 sm:$0xff]   ;;  %v4375_v29 = vld [vmem:[%s5440_s18 + $0x4] ss:$8 sps:$4 sm:$0xff]  }
 0x12e   : > { %v4371_v26 = vld [vmem:[%s5440_s18 + $0x114] ss:$8 sps:$4 sm:$0xff]   ;;  %v4374_v28 = vld [vmem:[%s5440_s18 + $0x110] ss:$8 sps:$4 sm:$0xff]   ;;  %v4377_v30 = vld [vmem:[%s5440_s18 + $0x104] ss:$8 sps:$4 sm:$0xff]  }
 0x12f   : > { %2972 = vmatpush1.bf16.msra.mxu0 %v4349_v11  ;;  %v4379_v31 = vld [vmem:[%s5440_s18] ss:$8 sps:$4 sm:$0xff]   ;;  %v4381_v33 = vld [vmem:[%s5440_s18 + $0xf4] ss:$8 sps:$4 sm:$0xff]   ;;  %v4385_v35 = vld [vmem:[%s5440_s18 + $0xf0] ss:$8 sps:$4 sm:$0xff]  }
 0x130   : > { %3015 = vmatpush1.bf16.msra.mxu1 %v4350_v12  ;;  %2973 = vmatprep.subr.bf16.mxu0 %v4351_v13  ;;  %v4380_v32 = vld [vmem:[%s5440_s18 + $0x100] ss:$8 sps:$4 sm:$0xff]   ;;  %v4383_v34 = vld [vmem:[%s5440_s18 + $0x1f4] ss:$8 sps:$4 sm:$0xff]   ;;  %v4386_v36 = vld [vmem:[%s5440_s18 + $0x1f0] ss:$8 sps:$4 sm:$0xff]  }
 0x131   : > { %3016 = vmatprep.subr.bf16.mxu1 %v4353_v14  ;;  %v4387_v37 = vld [vmem:[%s5440_s18 + $0xe4] ss:$8 sps:$4 sm:$0xff]   ;;  %v4391_v39 = vld [vmem:[%s5440_s18 + $0xe0] ss:$8 sps:$4 sm:$0xff]   ;;  %v4393_v41 = vld [vmem:[%s5440_s18 + $0xd4] ss:$8 sps:$4 sm:$0xff]  }
 0x132   : > { %v4389_v38 = vld [vmem:[%s5440_s18 + $0x1e4] ss:$8 sps:$4 sm:$0xff]   ;;  %v4392_v40 = vld [vmem:[%s5440_s18 + $0x1e0] ss:$8 sps:$4 sm:$0xff]   ;;  %v4395_v42 = vld [vmem:[%s5440_s18 + $0x1d4] ss:$8 sps:$4 sm:$0xff]  }
 0x133   : > { %2974 = vmatpush1.bf16.msra.mxu0 %v4355_v15  ;;  %v4397_v43 = vld [vmem:[%s5440_s18 + $0xd0] ss:$8 sps:$4 sm:$0xff]   ;;  %v4399_v45 = vld [vmem:[%s5440_s18 + $0xc4] ss:$8 sps:$4 sm:$0xff]   ;;  %v4403_v47 = vld [vmem:[%s5440_s18 + $0xc0] ss:$8 sps:$4 sm:$0xff]  }
 0x134   : > { %3017 = vmatpush1.bf16.msra.mxu1 %v4356_v16  ;;  %2975 = vmatprep.subr.bf16.mxu0 %v4357_v17  ;;  %v4398_v44 = vld [vmem:[%s5440_s18 + $0x1d0] ss:$8 sps:$4 sm:$0xff]   ;;  %v4401_v46 = vld [vmem:[%s5440_s18 + $0x1c4] ss:$8 sps:$4 sm:$0xff]   ;;  %v4404_v48 = vld [vmem:[%s5440_s18 + $0x1c0] ss:$8 sps:$4 sm:$0xff]  }
 0x135   : > { %3018 = vmatprep.subr.bf16.mxu1 %v4359_v18  ;;  %v1323_v49 = vld [vmem:[%s6012_s0] sm:$0xff]  ;;  %v1324_v51 = vld [vmem:[%s6012_s0 + $0x8] sm:$0xff]  ;;  %v4405_v53 = vld [vmem:[%s5440_s18 + $0xb4] ss:$8 sps:$4 sm:$0xff]   ;;  %p4303_p11 = scmp.ne.s32.totalorder %s4888_s21, 3 }
 0x136   : > { %v1331_v50 = vld [vmem:[%s6012_s0 + $0x40] sm:$0xff]  ;;  %v1332_v52 = vld [vmem:[%s6012_s0 + $0x48] sm:$0xff]  ;;  %v4407_v55 = vld [vmem:[%s5440_s18 + $0x1b4] ss:$8 sps:$4 sm:$0xff]  }
 0x137   : > { %2976 = vmatpush1.bf16.msra.mxu0 %v4361_v19  ;;  %v3968_v54 = vcombine.high %v1323_v49, %v1331_v50  ;;  %v3970_v56 = vcombine.high %v1324_v51, %v1332_v52  ;;  %v4409_v57 = vld [vmem:[%s5440_s18 + $0xb0] ss:$8 sps:$4 sm:$0xff]   ;;  %v4411_v59 = vld [vmem:[%s5440_s18 + $0xa4] ss:$8 sps:$4 sm:$0xff]   ;;  %v4415_v61 = vld [vmem:[%s5440_s18 + $0xa0] ss:$8 sps:$4 sm:$0xff]   ;;  %v3967_v9 = vcombine.low %v1323_v49, %v1331_v50  ;;  %v3969_v10 = vcombine.low %v1324_v51, %v1332_v52 }
 0x138   : > { %3019 = vmatpush1.bf16.msra.mxu1 %v4362_v20  ;;  %2977 = vmatprep.subr.bf16.mxu0 %v4363_v21  ;;  %v4410_v58 = vld [vmem:[%s5440_s18 + $0x1b0] ss:$8 sps:$4 sm:$0xff]   ;;  %v4413_v60 = vld [vmem:[%s5440_s18 + $0x1a4] ss:$8 sps:$4 sm:$0xff]   ;;  %v4416_v62 = vld [vmem:[%s5440_s18 + $0x1a0] ss:$8 sps:$4 sm:$0xff]  }
 0x139   : > { %3020 = vmatprep.subr.bf16.mxu1 %v4365_v22  ;;  %2999 = vmatprep.mubr.bf16.mxu0 %v3968_v54  ;;  %v4417_v63 = vld [vmem:[%s5440_s18 + $0x94] ss:$8 sps:$4 sm:$0xff]   ;;  %v4421_v1 = vld [vmem:[%s5440_s18 + $0x90] ss:$8 sps:$4 sm:$0xff]   ;;  %v4423_v3 = vld [vmem:[%s5440_s18 + $0x84] ss:$8 sps:$4 sm:$0xff]  }
 0x13a   : > { %3042 = vmatprep.mubr.bf16.mxu1 %v3970_v56  ;;  %v4419_v0 = vld [vmem:[%s5440_s18 + $0x194] ss:$8 sps:$4 sm:$0xff]   ;;  %v4422_v2 = vld [vmem:[%s5440_s18 + $0x190] ss:$8 sps:$4 sm:$0xff]   ;;  %v4425_v4 = vld [vmem:[%s5440_s18 + $0x184] ss:$8 sps:$4 sm:$0xff]  }
 0x13b   : > { %2978 = vmatpush1.bf16.msra.mxu0 %v4367_v23  ;;  %v4427_v5 = vld [vmem:[%s5440_s18 + $0x80] ss:$8 sps:$4 sm:$0xff]   ;;  %v4431_v7 = vld [vmem:[%s5440_s18 + $0x274] ss:$8 sps:$4 sm:$0xff]   ;;  %v4429_v11 = vld [vmem:[%s5440_s18 + $0x270] ss:$8 sps:$4 sm:$0xff]  }
 0x13c   : > { %3021 = vmatpush1.bf16.msra.mxu1 %v4368_v24  ;;  %2979 = vmatprep.subr.bf16.mxu0 %v4369_v25  ;;  %v4428_v6 = vld [vmem:[%s5440_s18 + $0x180] ss:$8 sps:$4 sm:$0xff]   ;;  %v4434_v8 = vld [vmem:[%s5440_s18 + $0x374] ss:$8 sps:$4 sm:$0xff]   ;;  %v4432_v12 = vld [vmem:[%s5440_s18 + $0x370] ss:$8 sps:$4 sm:$0xff]  }
 0x13d   : > { %3022 = vmatprep.subr.bf16.mxu1 %v4371_v26  ;;  %v4437_v13 = vld [vmem:[%s5440_s18 + $0x264] ss:$8 sps:$4 sm:$0xff]   ;;  %v4435_v15 = vld [vmem:[%s5440_s18 + $0x260] ss:$8 sps:$4 sm:$0xff]   ;;  %v4443_v17 = vld [vmem:[%s5440_s18 + $0x254] ss:$8 sps:$4 sm:$0xff]  }
 0x13e   : > { %v4440_v14 = vld [vmem:[%s5440_s18 + $0x364] ss:$8 sps:$4 sm:$0xff]   ;;  %v4438_v16 = vld [vmem:[%s5440_s18 + $0x360] ss:$8 sps:$4 sm:$0xff]   ;;  %v4446_v18 = vld [vmem:[%s5440_s18 + $0x354] ss:$8 sps:$4 sm:$0xff]  }
 0x13f   : > { %2980 = vmatpush1.bf16.msra.mxu0 %v4373_v27  ;;  %v4441_v19 = vld [vmem:[%s5440_s18 + $0x250] ss:$8 sps:$4 sm:$0xff]   ;;  %v4449_v21 = vld [vmem:[%s5440_s18 + $0x244] ss:$8 sps:$4 sm:$0xff]   ;;  %v4447_v23 = vld [vmem:[%s5440_s18 + $0x240] ss:$8 sps:$4 sm:$0xff]  }
 0x140   : > { %3023 = vmatpush1.bf16.msra.mxu1 %v4374_v28  ;;  %2981 = vmatprep.subr.bf16.mxu0 %v4375_v29  ;;  %v4444_v20 = vld [vmem:[%s5440_s18 + $0x350] ss:$8 sps:$4 sm:$0xff]   ;;  %v4452_v22 = vld [vmem:[%s5440_s18 + $0x344] ss:$8 sps:$4 sm:$0xff]   ;;  %v4450_v24 = vld [vmem:[%s5440_s18 + $0x340] ss:$8 sps:$4 sm:$0xff]  }
 0x141   : > { %3024 = vmatprep.subr.bf16.mxu1 %v4377_v30  ;;  %v4455_v25 = vld [vmem:[%s5440_s18 + $0x234] ss:$8 sps:$4 sm:$0xff]   ;;  %v4453_v27 = vld [vmem:[%s5440_s18 + $0x230] ss:$8 sps:$4 sm:$0xff]   ;;  %v4461_v29 = vld [vmem:[%s5440_s18 + $0x224] ss:$8 sps:$4 sm:$0xff]  }
 0x142   : > { %v4458_v26 = vld [vmem:[%s5440_s18 + $0x334] ss:$8 sps:$4 sm:$0xff]   ;;  %v4456_v28 = vld [vmem:[%s5440_s18 + $0x330] ss:$8 sps:$4 sm:$0xff]   ;;  %v4464_v30 = vld [vmem:[%s5440_s18 + $0x324] ss:$8 sps:$4 sm:$0xff]  }
 0x143   : > { %2982 = vmatpush1.bf16.msra.mxu0 %v4379_v31  ;;  %v4459_v31 = vld [vmem:[%s5440_s18 + $0x220] ss:$8 sps:$4 sm:$0xff]   ;;  %v4477_v49 = vld [vmem:[%s5440_s18 + $0x2f0] ss:$8 sps:$4 sm:$0xff]   ;;  %v4485_v51 = vld [vmem:[%s5440_s18 + $0x2e4] ss:$8 sps:$4 sm:$0xff]  }
 0x144   : > { %3025 = vmatpush1.bf16.msra.mxu1 %v4380_v32  ;;  %2983 = vmatprep.subr.bf16.mxu0 %v4381_v33  ;;  %v4462_v32 = vld [vmem:[%s5440_s18 + $0x320] ss:$8 sps:$4 sm:$0xff]   ;;  %v4467_v33 = vld [vmem:[%s5440_s18 + $0x214] ss:$8 sps:$4 sm:$0xff]   ;;  %v4480_v50 = vld [vmem:[%s5440_s18 + $0x3f0] ss:$8 sps:$4 sm:$0xff]  }
 0x145   : > { %3026 = vmatprep.subr.bf16.mxu1 %v4383_v34  ;;  %v4470_v34 = vld [vmem:[%s5440_s18 + $0x314] ss:$8 sps:$4 sm:$0xff]   ;;  %v4488_v52 = vld [vmem:[%s5440_s18 + $0x3e4] ss:$8 sps:$4 sm:$0xff]   ;;  %v4486_v54 = vld [vmem:[%s5440_s18 + $0x3e0] ss:$8 sps:$4 sm:$0xff]  }
 0x146   : > { %v4494_v56 = vld [vmem:[%s5440_s18 + $0x3d4] ss:$8 sps:$4 sm:$0xff]  }
 0x147   : > { %2984 = vmatpush2.bf16.msra.mxu0 %v4385_v35  ;;  %v4465_v35 = vld [vmem:[%s5440_s18 + $0x210] ss:$8 sps:$4 sm:$0xff]  }
 0x148   : > { %3027 = vmatpush2.bf16.msra.mxu1 %v4386_v36  ;;  %2985 = vmatprep.subr.bf16.mxu0 %v4387_v37  ;;  %v4468_v36 = vld [vmem:[%s5440_s18 + $0x310] ss:$8 sps:$4 sm:$0xff]  }
 0x149   : > { %3028 = vmatprep.subr.bf16.mxu1 %v4389_v38  ;;  %v5574_v37 = vld [vmem:[%s6012_s0 + $0x10] sm:$0xff] }
 0x14a   : > { %v5579_v38 = vld [vmem:[%s6012_s0 + $0x50] sm:$0xff] }
 0x14b   : > { %2986 = vmatpush2.bf16.msra.mxu0 %v4391_v39  ;;  %v5584_v39 = vld [vmem:[%s6012_s0 + $0x18] sm:$0xff] }
 0x14c   : > { %3029 = vmatpush2.bf16.msra.mxu1 %v4392_v40  ;;  %2987 = vmatprep.subr.bf16.mxu0 %v4393_v41  ;;  %v5589_v40 = vld [vmem:[%s6012_s0 + $0x58] sm:$0xff]  ;;  %v4473_v41 = vld [vmem:[%s5440_s18 + $0x204] ss:$8 sps:$4 sm:$0xff]  }
 0x14d   : > { %3030 = vmatprep.subr.bf16.mxu1 %v4395_v42  ;;  %v3972_v42 = vcombine.high %v5574_v37, %v5579_v38 }
 0x14f   : > { %2988 = vmatpush2.bf16.msra.mxu0 %v4397_v43  ;;  %v4476_v43 = vld [vmem:[%s5440_s18 + $0x304] ss:$8 sps:$4 sm:$0xff]  }
 0x150   : > { %3031 = vmatpush2.bf16.msra.mxu1 %v4398_v44  ;;  %2989 = vmatprep.subr.bf16.mxu0 %v4399_v45  ;;  %v3974_v44 = vcombine.high %v5584_v39, %v5589_v40  ;;  %v4471_v45 = vld [vmem:[%s5440_s18 + $0x200] ss:$8 sps:$4 sm:$0xff]  }
 0x151   : > { %3032 = vmatprep.subr.bf16.mxu1 %v4401_v46  ;;  %v4474_v46 = vld [vmem:[%s5440_s18 + $0x300] ss:$8 sps:$4 sm:$0xff]  }
 0x153   : > { %2990 = vmatpush2.bf16.msra.mxu0 %v4403_v47  ;;  %v4479_v47 = vld [vmem:[%s5440_s18 + $0x2f4] ss:$8 sps:$4 sm:$0xff]  }
 0x154   : > { %3033 = vmatpush2.bf16.msra.mxu1 %v4404_v48  ;;  %2991 = vmatprep.subr.bf16.mxu0 %v4405_v53  ;;  %v4482_v48 = vld [vmem:[%s5440_s18 + $0x3f4] ss:$8 sps:$4 sm:$0xff]   ;;  %v4483_v53 = vld [vmem:[%s5440_s18 + $0x2e0] ss:$8 sps:$4 sm:$0xff]  }
 0x155   : > { %3034 = vmatprep.subr.bf16.mxu1 %v4407_v55  ;;  %v4491_v55 = vld [vmem:[%s5440_s18 + $0x2d4] ss:$8 sps:$4 sm:$0xff]  }
 0x157   : > { %2992 = vmatpush2.bf16.msra.mxu0 %v4409_v57  ;;  %v4489_v57 = vld [vmem:[%s5440_s18 + $0x2d0] ss:$8 sps:$4 sm:$0xff]  }
 0x158   : > { %3035 = vmatpush2.bf16.msra.mxu1 %v4410_v58  ;;  %2993 = vmatprep.subr.bf16.mxu0 %v4411_v59  ;;  %v4492_v58 = vld [vmem:[%s5440_s18 + $0x3d0] ss:$8 sps:$4 sm:$0xff]   ;;  %v4497_v59 = vld [vmem:[%s5440_s18 + $0x2c4] ss:$8 sps:$4 sm:$0xff]  }
 0x159   : > { %3036 = vmatprep.subr.bf16.mxu1 %v4413_v60  ;;  %v4500_v60 = vld [vmem:[%s5440_s18 + $0x3c4] ss:$8 sps:$4 sm:$0xff]  }
 0x15b   : > { %2994 = vmatpush2.bf16.msra.mxu0 %v4415_v61  ;;  %v4495_v61 = vld [vmem:[%s5440_s18 + $0x2c0] ss:$8 sps:$4 sm:$0xff]  }
 0x15c   : > { %3037 = vmatpush2.bf16.msra.mxu1 %v4416_v62  ;;  %2995 = vmatprep.subr.bf16.mxu0 %v4417_v63  ;;  %v4498_v62 = vld [vmem:[%s5440_s18 + $0x3c0] ss:$8 sps:$4 sm:$0xff]   ;;  %v4503_v63 = vld [vmem:[%s5440_s18 + $0x2b4] ss:$8 sps:$4 sm:$0xff]  }
 0x15d   : > { %3038 = vmatprep.subr.bf16.mxu1 %v4419_v0  ;;  %v4506_v0 = vld [vmem:[%s5440_s18 + $0x3b4] ss:$8 sps:$4 sm:$0xff]  }
 0x15f   : > { %2996 = vmatpush2.bf16.msra.mxu0 %v4421_v1  ;;  %v4501_v1 = vld [vmem:[%s5440_s18 + $0x2b0] ss:$8 sps:$4 sm:$0xff]  }
 0x160   : > { %3039 = vmatpush2.bf16.msra.mxu1 %v4422_v2  ;;  %2997 = vmatprep.subr.bf16.mxu0 %v4423_v3  ;;  %v4504_v2 = vld [vmem:[%s5440_s18 + $0x3b0] ss:$8 sps:$4 sm:$0xff]   ;;  %v4509_v3 = vld [vmem:[%s5440_s18 + $0x2a4] ss:$8 sps:$4 sm:$0xff]  }
 0x161   : > { %3040 = vmatprep.subr.bf16.mxu1 %v4425_v4  ;;  %v4512_v4 = vld [vmem:[%s5440_s18 + $0x3a4] ss:$8 sps:$4 sm:$0xff]  }
 0x163   : > { %2998 = vmatpush2.bf16.msra.mxu0 %v4427_v5  ;;  %v4507_v5 = vld [vmem:[%s5440_s18 + $0x2a0] ss:$8 sps:$4 sm:$0xff]  }
 0x164   : > { %3041 = vmatpush2.bf16.msra.mxu1 %v4428_v6  ;;  %3053 = vmatprep.subr.bf16.mxu0 %v4431_v7  ;;  %v4510_v6 = vld [vmem:[%s5440_s18 + $0x3a0] ss:$8 sps:$4 sm:$0xff]   ;;  %v4515_v7 = vld [vmem:[%s5440_s18 + $0x294] ss:$8 sps:$4 sm:$0xff]  }
 0x165   : > { %3096 = vmatprep.subr.bf16.mxu1 %v4434_v8  ;;  %v4518_v8 = vld [vmem:[%s5440_s18 + $0x394] ss:$8 sps:$4 sm:$0xff]  }
 0x166   : > { %3000 = vmatmul.mubr.bf16.vlgmr.msra.gmra.mxu0 %v3967_v9  ;;  %v4513_v9 = vld [vmem:[%s5440_s18 + $0x290] ss:$8 sps:$4 sm:$0xff]  }
 0x167   : > { %3043 = vmatmul.mubr.bf16.vlgmr.msra.gmra.mxu1 %v3969_v10  ;;  %3054 = vmatpush1.bf16.msra.mxu0 %v4429_v11  ;;  %v4516_v10 = vld [vmem:[%s5440_s18 + $0x390] ss:$8 sps:$4 sm:$0xff]   ;;  %v4521_v11 = vld [vmem:[%s5440_s18 + $0x284] ss:$8 sps:$4 sm:$0xff]  }
 0x168   : > { %3097 = vmatpush1.bf16.msra.mxu1 %v4432_v12  ;;  %3055 = vmatprep.subr.bf16.mxu0 %v4437_v13  ;;  %v4524_v12 = vld [vmem:[%s5440_s18 + $0x384] ss:$8 sps:$4 sm:$0xff]   ;;  %v4519_v13 = vld [vmem:[%s5440_s18 + $0x280] ss:$8 sps:$4 sm:$0xff]  }
 0x169   : > { %3098 = vmatprep.subr.bf16.mxu1 %v4440_v14  ;;  %3085 = vmatprep.mubr.bf16.mxu0 %v3972_v42  ;;  %v4522_v14 = vld [vmem:[%s5440_s18 + $0x380] ss:$8 sps:$4 sm:$0xff]   ;;  %v4552_v42 = vld [vmem:[%s5440_s18 + $0x530] ss:$8 sps:$4 sm:$0xff]  }
 0x16a   : > { %3128 = vmatprep.mubr.bf16.mxu1 %v3974_v44  ;;  %v4560_v44 = vld [vmem:[%s5440_s18 + $0x524] ss:$8 sps:$4 sm:$0xff]  }
 0x16b   : > { %3056 = vmatpush1.bf16.msra.mxu0 %v4435_v15  ;;  %v4527_v15 = vld [vmem:[%s5440_s18 + $0x474] ss:$8 sps:$4 sm:$0xff]  }
 0x16c   : > { %3099 = vmatpush1.bf16.msra.mxu1 %v4438_v16  ;;  %3057 = vmatprep.subr.bf16.mxu0 %v4443_v17  ;;  %v4530_v16 = vld [vmem:[%s5440_s18 + $0x574] ss:$8 sps:$4 sm:$0xff]   ;;  %v3971_v17 = vcombine.low %v5574_v37, %v5579_v38  ;;  %v4543_v37 = vld [vmem:[%s5440_s18 + $0x440] ss:$8 sps:$4 sm:$0xff]  }
 0x16d   : > { %3100 = vmatprep.subr.bf16.mxu1 %v4446_v18  ;;  %v3973_v18 = vcombine.low %v5584_v39, %v5589_v40  ;;  %v4546_v38 = vld [vmem:[%s5440_s18 + $0x540] ss:$8 sps:$4 sm:$0xff]   ;;  %v4551_v39 = vld [vmem:[%s5440_s18 + $0x434] ss:$8 sps:$4 sm:$0xff]  }
 0x16e   : > { %v4554_v40 = vld [vmem:[%s5440_s18 + $0x534] ss:$8 sps:$4 sm:$0xff]  }
 0x16f   : > { %3058 = vmatpush1.bf16.msra.mxu0 %v4441_v19  ;;  %v4525_v19 = vld [vmem:[%s5440_s18 + $0x470] ss:$8 sps:$4 sm:$0xff]  }
 0x170   : > { %3101 = vmatpush1.bf16.msra.mxu1 %v4444_v20  ;;  %3059 = vmatprep.subr.bf16.mxu0 %v4449_v21  ;;  %v4528_v20 = vld [vmem:[%s5440_s18 + $0x570] ss:$8 sps:$4 sm:$0xff]   ;;  %v4533_v21 = vld [vmem:[%s5440_s18 + $0x464] ss:$8 sps:$4 sm:$0xff]  }
 0x171   : > { %3102 = vmatprep.subr.bf16.mxu1 %v4452_v22  ;;  %v4536_v22 = vld [vmem:[%s5440_s18 + $0x564] ss:$8 sps:$4 sm:$0xff]  }
 0x173   : > { %3060 = vmatpush1.bf16.msra.mxu0 %v4447_v23  ;;  %v4531_v23 = vld [vmem:[%s5440_s18 + $0x460] ss:$8 sps:$4 sm:$0xff]  }
 0x174   : > { %3103 = vmatpush1.bf16.msra.mxu1 %v4450_v24  ;;  %3061 = vmatprep.subr.bf16.mxu0 %v4455_v25  ;;  %v4534_v24 = vld [vmem:[%s5440_s18 + $0x560] ss:$8 sps:$4 sm:$0xff]  }
 0x175   : > { %3104 = vmatprep.subr.bf16.mxu1 %v4458_v26  ;;  %v5646_v25 = vld [vmem:[%s6012_s0 + $0x20] sm:$0xff] }
 0x176   : > { %v5651_v26 = vld [vmem:[%s6012_s0 + $0x60] sm:$0xff] }
 0x177   : > { %3062 = vmatpush1.bf16.msra.mxu0 %v4453_v27  ;;  %v5656_v27 = vld [vmem:[%s6012_s0 + $0x28] sm:$0xff] }
 0x178   : > { %3105 = vmatpush1.bf16.msra.mxu1 %v4456_v28  ;;  %3063 = vmatprep.subr.bf16.mxu0 %v4461_v29  ;;  %v5661_v28 = vld [vmem:[%s6012_s0 + $0x68] sm:$0xff]  ;;  %v4539_v29 = vld [vmem:[%s5440_s18 + $0x454] ss:$8 sps:$4 sm:$0xff]  }
 0x179   : > { %3106 = vmatprep.subr.bf16.mxu1 %v4464_v30  ;;  %v3976_v30 = vcombine.high %v5646_v25, %v5651_v26 }
 0x17b   : > { %3064 = vmatpush1.bf16.msra.mxu0 %v4459_v31  ;;  %v4542_v31 = vld [vmem:[%s5440_s18 + $0x554] ss:$8 sps:$4 sm:$0xff]  }
 0x17c   : > { %3107 = vmatpush1.bf16.msra.mxu1 %v4462_v32  ;;  %3065 = vmatprep.subr.bf16.mxu0 %v4467_v33  ;;  %v3978_v32 = vcombine.high %v5656_v27, %v5661_v28  ;;  %v4537_v33 = vld [vmem:[%s5440_s18 + $0x450] ss:$8 sps:$4 sm:$0xff]  }
 0x17d   : > { %3108 = vmatprep.subr.bf16.mxu1 %v4470_v34  ;;  %v4540_v34 = vld [vmem:[%s5440_s18 + $0x550] ss:$8 sps:$4 sm:$0xff]  }
 0x17f   : > { %3066 = vmatpush1.bf16.msra.mxu0 %v4465_v35  ;;  %v4545_v35 = vld [vmem:[%s5440_s18 + $0x444] ss:$8 sps:$4 sm:$0xff]  }
 0x180   : > { %3109 = vmatpush1.bf16.msra.mxu1 %v4468_v36  ;;  %3067 = vmatprep.subr.bf16.mxu0 %v4473_v41  ;;  %v4548_v36 = vld [vmem:[%s5440_s18 + $0x544] ss:$8 sps:$4 sm:$0xff]   ;;  %v4549_v41 = vld [vmem:[%s5440_s18 + $0x430] ss:$8 sps:$4 sm:$0xff]  }
 0x181   : > { %3110 = vmatprep.subr.bf16.mxu1 %v4476_v43  ;;  %v4557_v43 = vld [vmem:[%s5440_s18 + $0x424] ss:$8 sps:$4 sm:$0xff]  }
 0x183   : > { %3068 = vmatpush1.bf16.msra.mxu0 %v4471_v45  ;;  %v4555_v45 = vld [vmem:[%s5440_s18 + $0x420] ss:$8 sps:$4 sm:$0xff]  }
 0x184   : > { %3111 = vmatpush1.bf16.msra.mxu1 %v4474_v46  ;;  %3069 = vmatprep.subr.bf16.mxu0 %v4479_v47  ;;  %v4558_v46 = vld [vmem:[%s5440_s18 + $0x520] ss:$8 sps:$4 sm:$0xff]   ;;  %v4563_v47 = vld [vmem:[%s5440_s18 + $0x414] ss:$8 sps:$4 sm:$0xff]  }
 0x185   : > { %3112 = vmatprep.subr.bf16.mxu1 %v4482_v48  ;;  %v4566_v48 = vld [vmem:[%s5440_s18 + $0x514] ss:$8 sps:$4 sm:$0xff]  }
 0x187   : > { %3070 = vmatpush2.bf16.msra.mxu0 %v4477_v49  ;;  %v4561_v49 = vld [vmem:[%s5440_s18 + $0x410] ss:$8 sps:$4 sm:$0xff]  }
 0x188   : > { %3113 = vmatpush2.bf16.msra.mxu1 %v4480_v50  ;;  %3071 = vmatprep.subr.bf16.mxu0 %v4485_v51  ;;  %v4564_v50 = vld [vmem:[%s5440_s18 + $0x510] ss:$8 sps:$4 sm:$0xff]   ;;  %v4569_v51 = vld [vmem:[%s5440_s18 + $0x404] ss:$8 sps:$4 sm:$0xff]  }
 0x189   : > { %3114 = vmatprep.subr.bf16.mxu1 %v4488_v52  ;;  %v4572_v52 = vld [vmem:[%s5440_s18 + $0x504] ss:$8 sps:$4 sm:$0xff]  }
 0x18b   : > { %3072 = vmatpush2.bf16.msra.mxu0 %v4483_v53  ;;  %v4567_v53 = vld [vmem:[%s5440_s18 + $0x400] ss:$8 sps:$4 sm:$0xff]  }
 0x18c   : > { %3115 = vmatpush2.bf16.msra.mxu1 %v4486_v54  ;;  %3073 = vmatprep.subr.bf16.mxu0 %v4491_v55  ;;  %v4570_v54 = vld [vmem:[%s5440_s18 + $0x500] ss:$8 sps:$4 sm:$0xff]   ;;  %v4575_v55 = vld [vmem:[%s5440_s18 + $0x4f4] ss:$8 sps:$4 sm:$0xff]  }
 0x18d   : > { %3116 = vmatprep.subr.bf16.mxu1 %v4494_v56  ;;  %v4578_v56 = vld [vmem:[%s5440_s18 + $0x5f4] ss:$8 sps:$4 sm:$0xff]  }
 0x18f   : > { %3074 = vmatpush2.bf16.msra.mxu0 %v4489_v57  ;;  %v4573_v57 = vld [vmem:[%s5440_s18 + $0x4f0] ss:$8 sps:$4 sm:$0xff]  }
 0x190   : > { %3117 = vmatpush2.bf16.msra.mxu1 %v4492_v58  ;;  %3075 = vmatprep.subr.bf16.mxu0 %v4497_v59  ;;  %v4576_v58 = vld [vmem:[%s5440_s18 + $0x5f0] ss:$8 sps:$4 sm:$0xff]   ;;  %v4581_v59 = vld [vmem:[%s5440_s18 + $0x4e4] ss:$8 sps:$4 sm:$0xff]  }
 0x191   : > { %3118 = vmatprep.subr.bf16.mxu1 %v4500_v60  ;;  %v4584_v60 = vld [vmem:[%s5440_s18 + $0x5e4] ss:$8 sps:$4 sm:$0xff]  }
 0x193   : > { %3076 = vmatpush2.bf16.msra.mxu0 %v4495_v61  ;;  %v4579_v61 = vld [vmem:[%s5440_s18 + $0x4e0] ss:$8 sps:$4 sm:$0xff]  }
 0x194   : > { %3119 = vmatpush2.bf16.msra.mxu1 %v4498_v62  ;;  %3077 = vmatprep.subr.bf16.mxu0 %v4503_v63  ;;  %v4582_v62 = vld [vmem:[%s5440_s18 + $0x5e0] ss:$8 sps:$4 sm:$0xff]   ;;  %v4587_v63 = vld [vmem:[%s5440_s18 + $0x4d4] ss:$8 sps:$4 sm:$0xff]  }
 0x195   : > { %3120 = vmatprep.subr.bf16.mxu1 %v4506_v0  ;;  %v4590_v0 = vld [vmem:[%s5440_s18 + $0x5d4] ss:$8 sps:$4 sm:$0xff]  }
 0x197   : > { %3078 = vmatpush2.bf16.msra.mxu0 %v4501_v1  ;;  %v4585_v1 = vld [vmem:[%s5440_s18 + $0x4d0] ss:$8 sps:$4 sm:$0xff]  }
 0x198   : > { %3121 = vmatpush2.bf16.msra.mxu1 %v4504_v2  ;;  %3079 = vmatprep.subr.bf16.mxu0 %v4509_v3  ;;  %v4588_v2 = vld [vmem:[%s5440_s18 + $0x5d0] ss:$8 sps:$4 sm:$0xff]   ;;  %v4593_v3 = vld [vmem:[%s5440_s18 + $0x4c4] ss:$8 sps:$4 sm:$0xff]  }
 0x199   : > { %3122 = vmatprep.subr.bf16.mxu1 %v4512_v4  ;;  %v4596_v4 = vld [vmem:[%s5440_s18 + $0x5c4] ss:$8 sps:$4 sm:$0xff]  }
 0x19b   : > { %3080 = vmatpush2.bf16.msra.mxu0 %v4507_v5  ;;  %v4591_v5 = vld [vmem:[%s5440_s18 + $0x4c0] ss:$8 sps:$4 sm:$0xff]  }
 0x19c   : > { %3123 = vmatpush2.bf16.msra.mxu1 %v4510_v6  ;;  %3081 = vmatprep.subr.bf16.mxu0 %v4515_v7  ;;  %v4594_v6 = vld [vmem:[%s5440_s18 + $0x5c0] ss:$8 sps:$4 sm:$0xff]   ;;  %v4599_v7 = vld [vmem:[%s5440_s18 + $0x4b4] ss:$8 sps:$4 sm:$0xff]  }
 0x19d   : > { %3124 = vmatprep.subr.bf16.mxu1 %v4518_v8  ;;  %v4602_v8 = vld [vmem:[%s5440_s18 + $0x5b4] ss:$8 sps:$4 sm:$0xff]  }
 0x19f   : > { %3082 = vmatpush2.bf16.msra.mxu0 %v4513_v9  ;;  %v4597_v9 = vld [vmem:[%s5440_s18 + $0x4b0] ss:$8 sps:$4 sm:$0xff]  }
 0x1a0   : > { %3125 = vmatpush2.bf16.msra.mxu1 %v4516_v10  ;;  %3083 = vmatprep.subr.bf16.mxu0 %v4521_v11  ;;  %v4600_v10 = vld [vmem:[%s5440_s18 + $0x5b0] ss:$8 sps:$4 sm:$0xff]   ;;  %v4605_v11 = vld [vmem:[%s5440_s18 + $0x4a4] ss:$8 sps:$4 sm:$0xff]  }
 0x1a1   : > { %3126 = vmatprep.subr.bf16.mxu1 %v4524_v12  ;;  %v4608_v12 = vld [vmem:[%s5440_s18 + $0x5a4] ss:$8 sps:$4 sm:$0xff]  }
 0x1a3   : > { %3084 = vmatpush2.bf16.msra.mxu0 %v4519_v13  ;;  %v4603_v13 = vld [vmem:[%s5440_s18 + $0x4a0] ss:$8 sps:$4 sm:$0xff]  }
 0x1a4   : > { %3127 = vmatpush2.bf16.msra.mxu1 %v4522_v14  ;;  %3139 = vmatprep.subr.bf16.mxu0 %v4527_v15  ;;  %v4606_v14 = vld [vmem:[%s5440_s18 + $0x5a0] ss:$8 sps:$4 sm:$0xff]   ;;  %v4611_v15 = vld [vmem:[%s5440_s18 + $0x494] ss:$8 sps:$4 sm:$0xff]  }
 0x1a5   : > { %3182 = vmatprep.subr.bf16.mxu1 %v4530_v16  ;;  %v4614_v16 = vld [vmem:[%s5440_s18 + $0x594] ss:$8 sps:$4 sm:$0xff]  }
 0x1a6   : > { %3086 = vmatmul.mubr.bf16.vlgmr.msra.gmra.mxu0 %v3971_v17  ;;  %v4609_v17 = vld [vmem:[%s5440_s18 + $0x490] ss:$8 sps:$4 sm:$0xff]  }
 0x1a7   : > { %3129 = vmatmul.mubr.bf16.vlgmr.msra.gmra.mxu1 %v3973_v18  ;;  %3140 = vmatpush1.bf16.msra.mxu0 %v4525_v19  ;;  %v4612_v18 = vld [vmem:[%s5440_s18 + $0x590] ss:$8 sps:$4 sm:$0xff]   ;;  %v4617_v19 = vld [vmem:[%s5440_s18 + $0x484] ss:$8 sps:$4 sm:$0xff]  }
 0x1a8   : > { %3183 = vmatpush1.bf16.msra.mxu1 %v4528_v20  ;;  %3141 = vmatprep.subr.bf16.mxu0 %v4533_v21  ;;  %v4620_v20 = vld [vmem:[%s5440_s18 + $0x584] ss:$8 sps:$4 sm:$0xff]   ;;  %v4615_v21 = vld [vmem:[%s5440_s18 + $0x480] ss:$8 sps:$4 sm:$0xff]  }
 0x1a9   : > { %3184 = vmatprep.subr.bf16.mxu1 %v4536_v22  ;;  %3171 = vmatprep.mubr.bf16.mxu0 %v3976_v30  ;;  %v4618_v22 = vld [vmem:[%s5440_s18 + $0x580] ss:$8 sps:$4 sm:$0xff]   ;;  %v5733_v30 = vld [vmem:[%s6012_s0 + $0x70] sm:$0xff] }
 0x1aa   : > { %3214 = vmatprep.mubr.bf16.mxu1 %v3978_v32  ;;  %v5743_v32 = vld [vmem:[%s6012_s0 + $0x78] sm:$0xff] }
 0x1ab   : > { %3142 = vmatpush1.bf16.msra.mxu0 %v4531_v23  ;;  %v4623_v23 = vld [vmem:[%s5440_s18 + $0x674] ss:$8 sps:$4 sm:$0xff]  }
 0x1ac   : > { %3185 = vmatpush1.bf16.msra.mxu1 %v4534_v24  ;;  %3143 = vmatprep.subr.bf16.mxu0 %v4539_v29  ;;  %v4626_v24 = vld [vmem:[%s5440_s18 + $0x774] ss:$8 sps:$4 sm:$0xff]  }
 0x1ad   : > { %3186 = vmatprep.subr.bf16.mxu1 %v4542_v31  ;;  %v5728_v29 = vld [vmem:[%s6012_s0 + $0x30] sm:$0xff]  ;;  %v5738_v31 = vld [vmem:[%s6012_s0 + $0x38] sm:$0xff] }
 0x1af   : > { %3144 = vmatpush1.bf16.msra.mxu0 %v4537_v33  ;;  %v4621_v33 = vld [vmem:[%s5440_s18 + $0x670] ss:$8 sps:$4 sm:$0xff]  }
 0x1b0   : > { %3187 = vmatpush1.bf16.msra.mxu1 %v4540_v34  ;;  %3145 = vmatprep.subr.bf16.mxu0 %v4545_v35  ;;  %v4624_v34 = vld [vmem:[%s5440_s18 + $0x770] ss:$8 sps:$4 sm:$0xff]   ;;  %v3975_v35 = vcombine.low %v5646_v25, %v5651_v26  ;;  %v3982_v25 = vcombine.high %v5738_v31, %v5743_v32  ;;  %v4635_v26 = vld [vmem:[%s5440_s18 + $0x654] ss:$8 sps:$4 sm:$0xff]  }
 0x1b1   : > { %3188 = vmatprep.subr.bf16.mxu1 %v4548_v36  ;;  %v3977_v36 = vcombine.low %v5656_v27, %v5661_v28  ;;  %v4638_v27 = vld [vmem:[%s5440_s18 + $0x754] ss:$8 sps:$4 sm:$0xff]   ;;  %v4633_v28 = vld [vmem:[%s5440_s18 + $0x650] ss:$8 sps:$4 sm:$0xff]  }
 0x1b3   : > { %3146 = vmatpush1.bf16.msra.mxu0 %v4543_v37  ;;  %v4629_v37 = vld [vmem:[%s5440_s18 + $0x664] ss:$8 sps:$4 sm:$0xff]  }
 0x1b4   : > { %3189 = vmatpush1.bf16.msra.mxu1 %v4546_v38  ;;  %3147 = vmatprep.subr.bf16.mxu0 %v4551_v39  ;;  %v4632_v38 = vld [vmem:[%s5440_s18 + $0x764] ss:$8 sps:$4 sm:$0xff]   ;;  %v4627_v39 = vld [vmem:[%s5440_s18 + $0x660] ss:$8 sps:$4 sm:$0xff]  }
 0x1b5   : > { %3190 = vmatprep.subr.bf16.mxu1 %v4554_v40  ;;  %v4630_v40 = vld [vmem:[%s5440_s18 + $0x760] ss:$8 sps:$4 sm:$0xff]  }
 0x1b7   : > { %3148 = vmatpush1.bf16.msra.mxu0 %v4549_v41  ;;  %v3980_v41 = vcombine.high %v5728_v29, %v5733_v30 }
 0x1b8   : > { %3191 = vmatpush1.bf16.msra.mxu1 %v4552_v42  ;;  %3149 = vmatprep.subr.bf16.mxu0 %v4557_v43  ;;  %v4636_v42 = vld [vmem:[%s5440_s18 + $0x750] ss:$8 sps:$4 sm:$0xff]   ;;  %v4641_v43 = vld [vmem:[%s5440_s18 + $0x644] ss:$8 sps:$4 sm:$0xff]  }
 0x1b9   : > { %3192 = vmatprep.subr.bf16.mxu1 %v4560_v44  ;;  %v4644_v44 = vld [vmem:[%s5440_s18 + $0x744] ss:$8 sps:$4 sm:$0xff]  }
 0x1bb   : > { %3150 = vmatpush1.bf16.msra.mxu0 %v4555_v45  ;;  %v4639_v45 = vld [vmem:[%s5440_s18 + $0x640] ss:$8 sps:$4 sm:$0xff]  }
 0x1bc   : > { %3193 = vmatpush1.bf16.msra.mxu1 %v4558_v46  ;;  %3151 = vmatprep.subr.bf16.mxu0 %v4563_v47  ;;  %v4642_v46 = vld [vmem:[%s5440_s18 + $0x740] ss:$8 sps:$4 sm:$0xff]   ;;  %v4647_v47 = vld [vmem:[%s5440_s18 + $0x634] ss:$8 sps:$4 sm:$0xff]  }
 0x1bd   : > { %3194 = vmatprep.subr.bf16.mxu1 %v4566_v48  ;;  %v4650_v48 = vld [vmem:[%s5440_s18 + $0x734] ss:$8 sps:$4 sm:$0xff]  }
 0x1bf   : > { %3152 = vmatpush1.bf16.msra.mxu0 %v4561_v49  ;;  %v4645_v49 = vld [vmem:[%s5440_s18 + $0x630] ss:$8 sps:$4 sm:$0xff]  }
 0x1c0   : > { %3195 = vmatpush1.bf16.msra.mxu1 %v4564_v50  ;;  %3153 = vmatprep.subr.bf16.mxu0 %v4569_v51  ;;  %v4648_v50 = vld [vmem:[%s5440_s18 + $0x730] ss:$8 sps:$4 sm:$0xff]   ;;  %v4653_v51 = vld [vmem:[%s5440_s18 + $0x624] ss:$8 sps:$4 sm:$0xff]  }
 0x1c1   : > { %3196 = vmatprep.subr.bf16.mxu1 %v4572_v52  ;;  %v4656_v52 = vld [vmem:[%s5440_s18 + $0x724] ss:$8 sps:$4 sm:$0xff]  }
 0x1c3   : > { %3154 = vmatpush1.bf16.msra.mxu0 %v4567_v53  ;;  %v4651_v53 = vld [vmem:[%s5440_s18 + $0x620] ss:$8 sps:$4 sm:$0xff]  }
 0x1c4   : > { %3197 = vmatpush1.bf16.msra.mxu1 %v4570_v54  ;;  %3155 = vmatprep.subr.bf16.mxu0 %v4575_v55  ;;  %v4654_v54 = vld [vmem:[%s5440_s18 + $0x720] ss:$8 sps:$4 sm:$0xff]   ;;  %v4659_v55 = vld [vmem:[%s5440_s18 + $0x614] ss:$8 sps:$4 sm:$0xff]  }
 0x1c5   : > { %3198 = vmatprep.subr.bf16.mxu1 %v4578_v56  ;;  %v4662_v56 = vld [vmem:[%s5440_s18 + $0x714] ss:$8 sps:$4 sm:$0xff]  }
 0x1c7   : > { %3156 = vmatpush2.bf16.msra.mxu0 %v4573_v57  ;;  %v4657_v57 = vld [vmem:[%s5440_s18 + $0x610] ss:$8 sps:$4 sm:$0xff]  }
 0x1c8   : > { %3199 = vmatpush2.bf16.msra.mxu1 %v4576_v58  ;;  %3157 = vmatprep.subr.bf16.mxu0 %v4581_v59  ;;  %v4660_v58 = vld [vmem:[%s5440_s18 + $0x710] ss:$8 sps:$4 sm:$0xff]   ;;  %v4665_v59 = vld [vmem:[%s5440_s18 + $0x604] ss:$8 sps:$4 sm:$0xff]  }
 0x1c9   : > { %3200 = vmatprep.subr.bf16.mxu1 %v4584_v60  ;;  %v4668_v60 = vld [vmem:[%s5440_s18 + $0x704] ss:$8 sps:$4 sm:$0xff]  }
 0x1cb   : > { %3158 = vmatpush2.bf16.msra.mxu0 %v4579_v61  ;;  %v4663_v61 = vld [vmem:[%s5440_s18 + $0x600] ss:$8 sps:$4 sm:$0xff]  }
 0x1cc   : > { %3201 = vmatpush2.bf16.msra.mxu1 %v4582_v62  ;;  %3159 = vmatprep.subr.bf16.mxu0 %v4587_v63  ;;  %v4666_v62 = vld [vmem:[%s5440_s18 + $0x700] ss:$8 sps:$4 sm:$0xff]   ;;  %v4671_v63 = vld [vmem:[%s5440_s18 + $0x6f4] ss:$8 sps:$4 sm:$0xff]  }
 0x1cd   : > { %3202 = vmatprep.subr.bf16.mxu1 %v4590_v0  ;;  %v4674_v0 = vld [vmem:[%s5440_s18 + $0x7f4] ss:$8 sps:$4 sm:$0xff]  }
 0x1cf   : > { %3160 = vmatpush2.bf16.msra.mxu0 %v4585_v1  ;;  %v4669_v1 = vld [vmem:[%s5440_s18 + $0x6f0] ss:$8 sps:$4 sm:$0xff]  }
 0x1d0   : > { %3203 = vmatpush2.bf16.msra.mxu1 %v4588_v2  ;;  %3161 = vmatprep.subr.bf16.mxu0 %v4593_v3  ;;  %v4672_v2 = vld [vmem:[%s5440_s18 + $0x7f0] ss:$8 sps:$4 sm:$0xff]   ;;  %v4677_v3 = vld [vmem:[%s5440_s18 + $0x6e4] ss:$8 sps:$4 sm:$0xff]  }
 0x1d1   : > { %3204 = vmatprep.subr.bf16.mxu1 %v4596_v4  ;;  %v4680_v4 = vld [vmem:[%s5440_s18 + $0x7e4] ss:$8 sps:$4 sm:$0xff]  }
 0x1d3   : > { %3162 = vmatpush2.bf16.msra.mxu0 %v4591_v5  ;;  %v4675_v5 = vld [vmem:[%s5440_s18 + $0x6e0] ss:$8 sps:$4 sm:$0xff]  }
 0x1d4   : > { %3205 = vmatpush2.bf16.msra.mxu1 %v4594_v6  ;;  %3163 = vmatprep.subr.bf16.mxu0 %v4599_v7  ;;  %v4678_v6 = vld [vmem:[%s5440_s18 + $0x7e0] ss:$8 sps:$4 sm:$0xff]   ;;  %v4683_v7 = vld [vmem:[%s5440_s18 + $0x6d4] ss:$8 sps:$4 sm:$0xff]  }
 0x1d5   : > { %3206 = vmatprep.subr.bf16.mxu1 %v4602_v8  ;;  %v4686_v8 = vld [vmem:[%s5440_s18 + $0x7d4] ss:$8 sps:$4 sm:$0xff]  }
 0x1d7   : > { %3164 = vmatpush2.bf16.msra.mxu0 %v4597_v9  ;;  %v4681_v9 = vld [vmem:[%s5440_s18 + $0x6d0] ss:$8 sps:$4 sm:$0xff]  }
 0x1d8   : > { %3207 = vmatpush2.bf16.msra.mxu1 %v4600_v10  ;;  %3165 = vmatprep.subr.bf16.mxu0 %v4605_v11  ;;  %v4684_v10 = vld [vmem:[%s5440_s18 + $0x7d0] ss:$8 sps:$4 sm:$0xff]   ;;  %v4689_v11 = vld [vmem:[%s5440_s18 + $0x6c4] ss:$8 sps:$4 sm:$0xff]  }
 0x1d9   : > { %3208 = vmatprep.subr.bf16.mxu1 %v4608_v12  ;;  %v4692_v12 = vld [vmem:[%s5440_s18 + $0x7c4] ss:$8 sps:$4 sm:$0xff]  }
 0x1db   : > { %3166 = vmatpush2.bf16.msra.mxu0 %v4603_v13  ;;  %v4687_v13 = vld [vmem:[%s5440_s18 + $0x6c0] ss:$8 sps:$4 sm:$0xff]  }
 0x1dc   : > { %3209 = vmatpush2.bf16.msra.mxu1 %v4606_v14  ;;  %3167 = vmatprep.subr.bf16.mxu0 %v4611_v15  ;;  %v4690_v14 = vld [vmem:[%s5440_s18 + $0x7c0] ss:$8 sps:$4 sm:$0xff]   ;;  %v4695_v15 = vld [vmem:[%s5440_s18 + $0x6b4] ss:$8 sps:$4 sm:$0xff]  }
 0x1dd   : > { %3210 = vmatprep.subr.bf16.mxu1 %v4614_v16  ;;  %v4698_v16 = vld [vmem:[%s5440_s18 + $0x7b4] ss:$8 sps:$4 sm:$0xff]  }
 0x1df   : > { %3168 = vmatpush2.bf16.msra.mxu0 %v4609_v17  ;;  %v4693_v17 = vld [vmem:[%s5440_s18 + $0x6b0] ss:$8 sps:$4 sm:$0xff]  }
 0x1e0   : > { %3211 = vmatpush2.bf16.msra.mxu1 %v4612_v18  ;;  %3169 = vmatprep.subr.bf16.mxu0 %v4617_v19  ;;  %v4696_v18 = vld [vmem:[%s5440_s18 + $0x7b0] ss:$8 sps:$4 sm:$0xff]   ;;  %v4701_v19 = vld [vmem:[%s5440_s18 + $0x6a4] ss:$8 sps:$4 sm:$0xff]  }
 0x1e1   : > { %3212 = vmatprep.subr.bf16.mxu1 %v4620_v20  ;;  %v4704_v20 = vld [vmem:[%s5440_s18 + $0x7a4] ss:$8 sps:$4 sm:$0xff]  }
 0x1e3   : > { %3170 = vmatpush2.bf16.msra.mxu0 %v4615_v21  ;;  %v4699_v21 = vld [vmem:[%s5440_s18 + $0x6a0] ss:$8 sps:$4 sm:$0xff]  }
 0x1e4   : > { %3213 = vmatpush2.bf16.msra.mxu1 %v4618_v22  ;;  %3225 = vmatprep.subr.bf16.mxu0 %v4623_v23  ;;  %v4702_v22 = vld [vmem:[%s5440_s18 + $0x7a0] ss:$8 sps:$4 sm:$0xff]   ;;  %v4707_v23 = vld [vmem:[%s5440_s18 + $0x694] ss:$8 sps:$4 sm:$0xff]  }
 0x1e5   : > { %3268 = vmatprep.subr.bf16.mxu1 %v4626_v24  ;;  %v4710_v24 = vld [vmem:[%s5440_s18 + $0x794] ss:$8 sps:$4 sm:$0xff]  }
 0x1e6   : > { %3172 = vmatmul.mubr.bf16.vlgmr.msra.gmra.mxu0 %v3975_v35  ;;  %v4713_v35 = vld [vmem:[%s5440_s18 + $0x684] ss:$8 sps:$4 sm:$0xff]  }
 0x1e7   : > { %3215 = vmatmul.mubr.bf16.vlgmr.msra.gmra.mxu1 %v3977_v36  ;;  %3226 = vmatpush1.bf16.msra.mxu0 %v4621_v33  ;;  %v4705_v33 = vld [vmem:[%s5440_s18 + $0x690] ss:$8 sps:$4 sm:$0xff]   ;;  %v4716_v36 = vld [vmem:[%s5440_s18 + $0x784] ss:$8 sps:$4 sm:$0xff]  }
 0x1e8   : > { %3269 = vmatpush1.bf16.msra.mxu1 %v4624_v34  ;;  %3227 = vmatprep.subr.bf16.mxu0 %v4629_v37  ;;  %v4708_v34 = vld [vmem:[%s5440_s18 + $0x790] ss:$8 sps:$4 sm:$0xff]   ;;  %v4711_v37 = vld [vmem:[%s5440_s18 + $0x680] ss:$8 sps:$4 sm:$0xff]  }
 0x1e9   : > { %3270 = vmatprep.subr.bf16.mxu1 %v4632_v38  ;;  %3257 = vmatprep.mubr.bf16.mxu0 %v3980_v41  ;;  %v4714_v38 = vld [vmem:[%s5440_s18 + $0x780] ss:$8 sps:$4 sm:$0xff]  }
 0x1ea   : > { %3300 = vmatprep.mubr.bf16.mxu1 %v3982_v25  ;;  %v4717_v41 = vld [vmem:[%s5438_s20 + $0xe0] ss:$16 sps:$4 sm:$0xff]   ;;  %v4719_v25 = vld [vmem:[%s5438_s20 + $0xe4] ss:$16 sps:$4 sm:$0xff]  }
 0x1eb   : > { %3228 = vmatpush1.bf16.msra.mxu0 %v4627_v39  ;;  %v3979_v39 = vcombine.low %v5728_v29, %v5733_v30  ;;  %v4728_v29 = vld [vmem:[%s5438_s20 + $0xcc] ss:$16 sps:$4 sm:$0xff]   ;;  %v4723_v30 = vld [vmem:[%s5438_s20 + $0xc0] ss:$16 sps:$4 sm:$0xff]  }
 0x1ec   : > { %3271 = vmatpush1.bf16.msra.mxu1 %v4630_v40  ;;  %3229 = vmatprep.subr.bf16.mxu0 %v4635_v26  ;;  %v3981_v40 = vcombine.low %v5738_v31, %v5743_v32  ;;  %v4720_v26 = vld [vmem:[%s5438_s20 + $0xe8] ss:$16 sps:$4 sm:$0xff]   ;;  %v4731_v32 = vld [vmem:[%s5438_s20 + $0xa4] ss:$16 sps:$4 sm:$0xff]  }
 0x1ed   : > { %3272 = vmatprep.subr.bf16.mxu1 %v4638_v27  ;;  %v4722_v27 = vld [vmem:[%s5438_s20 + $0xec] ss:$16 sps:$4 sm:$0xff]   ;;  %v4726_v31 = vld [vmem:[%s5438_s20 + $0xc8] ss:$16 sps:$4 sm:$0xff]  }
 0x1ef   : > { %3230 = vmatpush1.bf16.msra.mxu0 %v4633_v28  ;;  %v4725_v28 = vld [vmem:[%s5438_s20 + $0xc4] ss:$16 sps:$4 sm:$0xff]  }
 0x1f0   : > { %3273 = vmatpush1.bf16.msra.mxu1 %v4636_v42  ;;  %3231 = vmatprep.subr.bf16.mxu0 %v4641_v43  ;;  %v4734_v42 = vld [vmem:[%s5438_s20 + $0xac] ss:$16 sps:$4 sm:$0xff]   ;;  %v4729_v43 = vld [vmem:[%s5438_s20 + $0xa0] ss:$16 sps:$4 sm:$0xff]  }
 0x1f1   : > { %3274 = vmatprep.subr.bf16.mxu1 %v4644_v44  ;;  %v4732_v44 = vld [vmem:[%s5438_s20 + $0xa8] ss:$16 sps:$4 sm:$0xff]  }
 0x1f3   : > { %3232 = vmatpush1.bf16.msra.mxu0 %v4639_v45  ;;  %v4737_v45 = vld [vmem:[%s5438_s20 + $0x84] ss:$16 sps:$4 sm:$0xff]  }
 0x1f4   : > { %3275 = vmatpush1.bf16.msra.mxu1 %v4642_v46  ;;  %3233 = vmatprep.subr.bf16.mxu0 %v4647_v47  ;;  %v4740_v46 = vld [vmem:[%s5438_s20 + $0x8c] ss:$16 sps:$4 sm:$0xff]   ;;  %v4735_v47 = vld [vmem:[%s5438_s20 + $0x80] ss:$16 sps:$4 sm:$0xff]  }
 0x1f5   : > { %3276 = vmatprep.subr.bf16.mxu1 %v4650_v48  ;;  %v4738_v48 = vld [vmem:[%s5438_s20 + $0x88] ss:$16 sps:$4 sm:$0xff]  }
 0x1f7   : > { %3234 = vmatpush1.bf16.msra.mxu0 %v4645_v49  ;;  %v4743_v49 = vld [vmem:[%s5438_s20 + $0x64] ss:$16 sps:$4 sm:$0xff]  }
 0x1f8   : > { %3277 = vmatpush1.bf16.msra.mxu1 %v4648_v50  ;;  %3235 = vmatprep.subr.bf16.mxu0 %v4653_v51  ;;  %v4746_v50 = vld [vmem:[%s5438_s20 + $0x6c] ss:$16 sps:$4 sm:$0xff]   ;;  %v4741_v51 = vld [vmem:[%s5438_s20 + $0x60] ss:$16 sps:$4 sm:$0xff]  }
 0x1f9   : > { %3278 = vmatprep.subr.bf16.mxu1 %v4656_v52  ;;  %v4744_v52 = vld [vmem:[%s5438_s20 + $0x68] ss:$16 sps:$4 sm:$0xff]  }
 0x1fb   : > { %3236 = vmatpush1.bf16.msra.mxu0 %v4651_v53  ;;  %v4749_v53 = vld [vmem:[%s5438_s20 + $0x44] ss:$16 sps:$4 sm:$0xff]  }
 0x1fc   : > { %3279 = vmatpush1.bf16.msra.mxu1 %v4654_v54  ;;  %3237 = vmatprep.subr.bf16.mxu0 %v4659_v55  ;;  %v4752_v54 = vld [vmem:[%s5438_s20 + $0x4c] ss:$16 sps:$4 sm:$0xff]   ;;  %v4747_v55 = vld [vmem:[%s5438_s20 + $0x40] ss:$16 sps:$4 sm:$0xff]  }
 0x1fd   : > { %3280 = vmatprep.subr.bf16.mxu1 %v4662_v56  ;;  %v4750_v56 = vld [vmem:[%s5438_s20 + $0x48] ss:$16 sps:$4 sm:$0xff]  }
 0x1ff   : > { %3238 = vmatpush1.bf16.msra.mxu0 %v4657_v57  ;;  %v4755_v57 = vld [vmem:[%s5438_s20 + $0x24] ss:$16 sps:$4 sm:$0xff]  }
 0x200   : > { %3281 = vmatpush1.bf16.msra.mxu1 %v4660_v58  ;;  %3239 = vmatprep.subr.bf16.mxu0 %v4665_v59  ;;  %v4758_v58 = vld [vmem:[%s5438_s20 + $0x2c] ss:$16 sps:$4 sm:$0xff]   ;;  %v4753_v59 = vld [vmem:[%s5438_s20 + $0x20] ss:$16 sps:$4 sm:$0xff]  }
 0x201   : > { %3282 = vmatprep.subr.bf16.mxu1 %v4668_v60  ;;  %v4756_v60 = vld [vmem:[%s5438_s20 + $0x28] ss:$16 sps:$4 sm:$0xff]  }
 0x203   : > { %3240 = vmatpush1.bf16.msra.mxu0 %v4663_v61  ;;  %v4761_v61 = vld [vmem:[%s5438_s20 + $0x4] ss:$16 sps:$4 sm:$0xff]  }
 0x204   : > { %3283 = vmatpush1.bf16.msra.mxu1 %v4666_v62  ;;  %3241 = vmatprep.subr.bf16.mxu0 %v4671_v63  ;;  %v4764_v62 = vld [vmem:[%s5438_s20 + $0xc] ss:$16 sps:$4 sm:$0xff]   ;;  %v4759_v63 = vld [vmem:[%s5438_s20] ss:$16 sps:$4 sm:$0xff]  }
 0x205   : > { %3284 = vmatprep.subr.bf16.mxu1 %v4674_v0  ;;  %v4762_v0 = vld [vmem:[%s5438_s20 + $0x8] ss:$16 sps:$4 sm:$0xff]  }
 0x207   : > { %3242 = vmatpush2.bf16.msra.mxu0 %v4669_v1  ;;  %v4767_v1 = vld [vmem:[%s5438_s20 + $0x1e4] ss:$16 sps:$4 sm:$0xff]  }
 0x208   : > { %3285 = vmatpush2.bf16.msra.mxu1 %v4672_v2  ;;  %3243 = vmatprep.subr.bf16.mxu0 %v4677_v3  ;;  %v4770_v2 = vld [vmem:[%s5438_s20 + $0x1ec] ss:$16 sps:$4 sm:$0xff]   ;;  %v4765_v3 = vld [vmem:[%s5438_s20 + $0x1e0] ss:$16 sps:$4 sm:$0xff]  }
 0x209   : > { %3286 = vmatprep.subr.bf16.mxu1 %v4680_v4  ;;  %v4768_v4 = vld [vmem:[%s5438_s20 + $0x1e8] ss:$16 sps:$4 sm:$0xff]  }
 0x20b   : > { %3244 = vmatpush2.bf16.msra.mxu0 %v4675_v5  ;;  %v4773_v5 = vld [vmem:[%s5438_s20 + $0x1c4] ss:$16 sps:$4 sm:$0xff]  }
 0x20c   : > { %3287 = vmatpush2.bf16.msra.mxu1 %v4678_v6  ;;  %3245 = vmatprep.subr.bf16.mxu0 %v4683_v7  ;;  %v4776_v6 = vld [vmem:[%s5438_s20 + $0x1cc] ss:$16 sps:$4 sm:$0xff]   ;;  %v4771_v7 = vld [vmem:[%s5438_s20 + $0x1c0] ss:$16 sps:$4 sm:$0xff]  }
 0x20d   : > { %3288 = vmatprep.subr.bf16.mxu1 %v4686_v8  ;;  %v4774_v8 = vld [vmem:[%s5438_s20 + $0x1c8] ss:$16 sps:$4 sm:$0xff]  }
 0x20f   : > { %3246 = vmatpush2.bf16.msra.mxu0 %v4681_v9  ;;  %v4779_v9 = vld [vmem:[%s5438_s20 + $0x1a4] ss:$16 sps:$4 sm:$0xff]  }
 0x210   : > { %3289 = vmatpush2.bf16.msra.mxu1 %v4684_v10  ;;  %3247 = vmatprep.subr.bf16.mxu0 %v4689_v11  ;;  %v4782_v10 = vld [vmem:[%s5438_s20 + $0x1ac] ss:$16 sps:$4 sm:$0xff]   ;;  %v4777_v11 = vld [vmem:[%s5438_s20 + $0x1a0] ss:$16 sps:$4 sm:$0xff]  }
 0x211   : > { %3290 = vmatprep.subr.bf16.mxu1 %v4692_v12  ;;  %v4780_v12 = vld [vmem:[%s5438_s20 + $0x1a8] ss:$16 sps:$4 sm:$0xff]  }
 0x213   : > { %3248 = vmatpush2.bf16.msra.mxu0 %v4687_v13  ;;  %v4785_v13 = vld [vmem:[%s5438_s20 + $0x184] ss:$16 sps:$4 sm:$0xff]  }
 0x214   : > { %3291 = vmatpush2.bf16.msra.mxu1 %v4690_v14  ;;  %3249 = vmatprep.subr.bf16.mxu0 %v4695_v15  ;;  %v4788_v14 = vld [vmem:[%s5438_s20 + $0x18c] ss:$16 sps:$4 sm:$0xff]   ;;  %v4783_v15 = vld [vmem:[%s5438_s20 + $0x180] ss:$16 sps:$4 sm:$0xff]  }
 0x215   : > { %3292 = vmatprep.subr.bf16.mxu1 %v4698_v16  ;;  %v4786_v16 = vld [vmem:[%s5438_s20 + $0x188] ss:$16 sps:$4 sm:$0xff]  }
 0x217   : > { %3250 = vmatpush2.bf16.msra.mxu0 %v4693_v17  ;;  %v4791_v17 = vld [vmem:[%s5438_s20 + $0x164] ss:$16 sps:$4 sm:$0xff]  }
 0x218   : > { %3293 = vmatpush2.bf16.msra.mxu1 %v4696_v18  ;;  %3251 = vmatprep.subr.bf16.mxu0 %v4701_v19  ;;  %v4794_v18 = vld [vmem:[%s5438_s20 + $0x16c] ss:$16 sps:$4 sm:$0xff]   ;;  %v4789_v19 = vld [vmem:[%s5438_s20 + $0x160] ss:$16 sps:$4 sm:$0xff]  }
 0x219   : > { %3294 = vmatprep.subr.bf16.mxu1 %v4704_v20  ;;  %v4792_v20 = vld [vmem:[%s5438_s20 + $0x168] ss:$16 sps:$4 sm:$0xff]  }
 0x21b   : > { %3252 = vmatpush2.bf16.msra.mxu0 %v4699_v21  ;;  %v4797_v21 = vld [vmem:[%s5438_s20 + $0x144] ss:$16 sps:$4 sm:$0xff]  }
 0x21c   : > { %3295 = vmatpush2.bf16.msra.mxu1 %v4702_v22  ;;  %3253 = vmatprep.subr.bf16.mxu0 %v4707_v23  ;;  %v4800_v22 = vld [vmem:[%s5438_s20 + $0x14c] ss:$16 sps:$4 sm:$0xff]   ;;  %v4795_v23 = vld [vmem:[%s5438_s20 + $0x140] ss:$16 sps:$4 sm:$0xff]  }
 0x21d   : > { %3296 = vmatprep.subr.bf16.mxu1 %v4710_v24  ;;  %v4798_v24 = vld [vmem:[%s5438_s20 + $0x148] ss:$16 sps:$4 sm:$0xff]  }
 0x21f   : > { %3254 = vmatpush2.bf16.msra.mxu0 %v4705_v33  ;;  %v4803_v33 = vld [vmem:[%s5438_s20 + $0x124] ss:$16 sps:$4 sm:$0xff]  }
 0x220   : > { %3297 = vmatpush2.bf16.msra.mxu1 %v4708_v34  ;;  %3255 = vmatprep.subr.bf16.mxu0 %v4713_v35  ;;  %v4806_v34 = vld [vmem:[%s5438_s20 + $0x12c] ss:$16 sps:$4 sm:$0xff]   ;;  %v4801_v35 = vld [vmem:[%s5438_s20 + $0x120] ss:$16 sps:$4 sm:$0xff]  }
 0x221   : > { %3298 = vmatprep.subr.bf16.mxu1 %v4716_v36  ;;  %v4804_v36 = vld [vmem:[%s5438_s20 + $0x128] ss:$16 sps:$4 sm:$0xff]  }
 0x223   : > { %3256 = vmatpush2.bf16.msra.mxu0 %v4711_v37  ;;  %v4809_v37 = vld [vmem:[%s5438_s20 + $0x104] ss:$16 sps:$4 sm:$0xff]  }
 0x224   : > { %3299 = vmatpush2.bf16.msra.mxu1 %v4714_v38  ;;  %3709 = vmatprep.subr.bf16.mxu0 %v4719_v25  ;;  %v4812_v38 = vld [vmem:[%s5438_s20 + $0x10c] ss:$16 sps:$4 sm:$0xff]  }
 0x225   : > { %3752 = vmatprep.subr.bf16.mxu1 %v4722_v27 }
 0x226   : > { %3258 = vmatmul.mubr.bf16.vlgmr.msra.gmra.mxu0 %v3979_v39  ;;  %v4807_v39 = vld [vmem:[%s5438_s20 + $0x100] ss:$16 sps:$4 sm:$0xff]  }
 0x227   : > { %3301 = vmatmul.mubr.bf16.vlgmr.msra.gmra.mxu1 %v3981_v40  ;;  %3710 = vmatpush1.bf16.msra.mxu0 %v4717_v41  ;;  %v4810_v40 = vld [vmem:[%s5438_s20 + $0x108] ss:$16 sps:$4 sm:$0xff]   ;;  %v3001_v41 = vpop.f32.mrf.mxu0  ;;  %v3044_v25 = vpop.f32.mrf.mxu1 }
 0x228   : > { %3753 = vmatpush1.bf16.msra.mxu1 %v4720_v26  ;;  %3711 = vmatprep.subr.bf16.mxu0 %v4725_v28 }
 0x229   : > { %3754 = vmatprep.subr.bf16.mxu1 %v4728_v29  ;;  %v3003_v26 = vpop.f32.mrf.mxu0  ;;  %v3046_v27 = vpop.f32.mrf.mxu1 }
 0x22b   : > { %3712 = vmatpush1.bf16.msra.mxu0 %v4723_v30  ;;  %v3005_v28 = vpop.f32.mrf.mxu0  ;;  %v3048_v29 = vpop.f32.mrf.mxu1  ;;  %v1597_v30 = vlaneseq }
 0x22c   : > { %3755 = vmatpush1.bf16.msra.mxu1 %v4726_v31  ;;  %3713 = vmatprep.subr.bf16.mxu0 %v4731_v32 }
 0x22d   : > { %3756 = vmatprep.subr.bf16.mxu1 %v4734_v42  ;;  %v3007_v31 = vpop.f32.mrf.mxu0  ;;  %v3050_v32 = vpop.f32.mrf.mxu1 }
 0x22f   : > { %3714 = vmatpush1.bf16.msra.mxu0 %v4729_v43 }
 0x230   : > { %3757 = vmatpush1.bf16.msra.mxu1 %v4732_v44  ;;  %3715 = vmatprep.subr.bf16.mxu0 %v4737_v45  ;;  %v5883_v44 = vshrl.u32 %v1597_v30, 7 }
 0x231   : > { %3758 = vmatprep.subr.bf16.mxu1 %v4740_v46 }
 0x233   : > { %3716 = vmatpush1.bf16.msra.mxu0 %v4735_v47  ;;  %v1603_v47 = vsub.s32 1, %v5883_v44 }
 0x234   : > { %3759 = vmatpush1.bf16.msra.mxu1 %v4738_v48  ;;  %3717 = vmatprep.subr.bf16.mxu0 %v4743_v49  ;;  %v1595_v48 = vld [vmem:[%s1302_s14] sm:$0x3]  ;;  %v1599_v49 = vsub.s32 0, %v5883_v44 }
 0x235   : > { %3760 = vmatprep.subr.bf16.mxu1 %v4746_v50 }
 0x237   : > { %3718 = vmatpush1.bf16.msra.mxu0 %v4741_v51 }
 0x238   : > { %3761 = vmatpush1.bf16.msra.mxu1 %v4744_v52  ;;  %3719 = vmatprep.subr.bf16.mxu0 %v4749_v53  ;;  %v1604_v52 = vrot.slane %v1595_v48, %v1603_v47  ;;  %v1600_v53 = vrot.slane %v1595_v48, %v1599_v49  ;;  %v3315_v48 = vld [vmem:[%s6017_s5] sm:$0xff] }
 0x239   : > { %3762 = vmatprep.subr.bf16.mxu1 %v4752_v54 }
 0x23b   : > { %3720 = vmatpush1.bf16.msra.mxu0 %v4747_v55 }
 0x23c   : > { %3763 = vmatpush1.bf16.msra.mxu1 %v4750_v56  ;;  %3721 = vmatprep.subr.bf16.mxu0 %v4755_v57  ;;  %v3004_v56 = vadd.f32 %v3003_v26, %v1604_v52  ;;  %v3002_v57 = vadd.f32 %v3001_v41, %v1600_v53 }
 0x23d   : > { %3764 = vmatprep.subr.bf16.mxu1 %v4758_v58 }
 0x23f   : > { %3722 = vmatpush1.bf16.msra.mxu0 %v4753_v59 }
 0x240   : > { %3765 = vmatpush1.bf16.msra.mxu1 %v4756_v60  ;;  %3723 = vmatprep.subr.bf16.mxu0 %v4761_v61  ;;  %v3006_v60 = vadd.f32 %v3005_v28, %v1600_v53  ;;  %v3047_v61 = vadd.f32 %v3046_v27, %v3004_v56  ;;  %v3316_v53 = vld [vmem:[%s6017_s5 + $0x8] sm:$0xff] }
 0x241   : > { %3766 = vmatprep.subr.bf16.mxu1 %v4764_v62  ;;  %v3008_v62 = vadd.f32 %v3007_v31, %v1604_v52 }
 0x243   : > { %3724 = vmatpush1.bf16.msra.mxu0 %v4759_v63  ;;  %v3045_v63 = vadd.f32 %v3044_v25, %v3002_v57 }
 0x244   : > { %3767 = vmatpush1.bf16.msra.mxu1 %v4762_v0  ;;  %3725 = vmatprep.subr.bf16.mxu0 %v4767_v1 }
 0x245   : > { %3768 = vmatprep.subr.bf16.mxu1 %v4770_v2  ;;  %v3049_v2 = vadd.f32 %v3048_v29, %v3006_v60  ;;  %v3321_v60 = vld [vmem:[%s6017_s5 + $0x30] sm:$0xff] }
 0x247   : > { %3726 = vmatpush2.bf16.msra.mxu0 %v4765_v3 }
 0x248   : > { %3769 = vmatpush2.bf16.msra.mxu1 %v4768_v4  ;;  %3727 = vmatprep.subr.bf16.mxu0 %v4773_v5  ;;  %v3051_v5 = vadd.f32 %v3050_v32, %v3008_v62 }
 0x249   : > { %3770 = vmatprep.subr.bf16.mxu1 %v4776_v6 }
 0x24b   : > { %3728 = vmatpush2.bf16.msra.mxu0 %v4771_v7 }
 0x24c   : > { %3771 = vmatpush2.bf16.msra.mxu1 %v4774_v8  ;;  %3729 = vmatprep.subr.bf16.mxu0 %v4779_v9 }
 0x24d   : > { %3772 = vmatprep.subr.bf16.mxu1 %v4782_v10 }
 0x24f   : > { %3730 = vmatpush2.bf16.msra.mxu0 %v4777_v11 }
 0x250   : > { %3773 = vmatpush2.bf16.msra.mxu1 %v4780_v12  ;;  %3731 = vmatprep.subr.bf16.mxu0 %v4785_v13 }
 0x251   : > { %3774 = vmatprep.subr.bf16.mxu1 %v4788_v14 }
 0x253   : > { %3732 = vmatpush2.bf16.msra.mxu0 %v4783_v15 }
 0x254   : > { %3775 = vmatpush2.bf16.msra.mxu1 %v4786_v16  ;;  %3733 = vmatprep.subr.bf16.mxu0 %v4791_v17 }
 0x255   : > { %3776 = vmatprep.subr.bf16.mxu1 %v4794_v18 }
 0x257   : > { %3734 = vmatpush2.bf16.msra.mxu0 %v4789_v19 }
 0x258   : > { %3777 = vmatpush2.bf16.msra.mxu1 %v4792_v20  ;;  %3735 = vmatprep.subr.bf16.mxu0 %v4797_v21 }
 0x259   : > { %3778 = vmatprep.subr.bf16.mxu1 %v4800_v22 }
 0x25b   : > { %3736 = vmatpush2.bf16.msra.mxu0 %v4795_v23 }
 0x25c   : > { %3779 = vmatpush2.bf16.msra.mxu1 %v4798_v24  ;;  %3737 = vmatprep.subr.bf16.mxu0 %v4803_v33 }
 0x25d   : > { %3780 = vmatprep.subr.bf16.mxu1 %v4806_v34 }
 0x25f   : > { %3738 = vmatpush2.bf16.msra.mxu0 %v4801_v35 }
 0x260   : > { %3781 = vmatpush2.bf16.msra.mxu1 %v4804_v36  ;;  %3739 = vmatprep.subr.bf16.mxu0 %v4809_v37 }
 0x261   : > { %3782 = vmatprep.subr.bf16.mxu1 %v4812_v38 }
 0x263   : > { %3740 = vmatpush2.bf16.msra.mxu0 %v4807_v39 }
 0x264   : > { %3783 = vmatpush2.bf16.msra.mxu1 %v4810_v40 }
 0x266   : > { %v3087_v42 = vpop.f32.mrf.mxu0 }
 0x267   : > { %v3130_v43 = vpop.f32.mrf.mxu1  ;;  %v3088_v4 = vadd.f32 %v3087_v42, %v3045_v63 }
 0x268   : > { %v3089_v45 = vpop.f32.mrf.mxu0 }
 0x269   : > { %v3132_v46 = vpop.f32.mrf.mxu1  ;;  %v3090_v3 = vadd.f32 %v3089_v45, %v3047_v61  ;;  %v3131_v11 = vadd.f32 %v3130_v43, %v3088_v4 }
 0x26a   : > { %v3091_v50 = vpop.f32.mrf.mxu0 }
 0x26b   : > { %v3134_v51 = vpop.f32.mrf.mxu1  ;;  %v3092_v6 = vadd.f32 %v3091_v50, %v3049_v2  ;;  %v3133_v9 = vadd.f32 %v3132_v46, %v3090_v3  ;;  %v3317_v50 = vld [vmem:[%s6017_s5 + $0x10] sm:$0xff]  ;;  %v3322_v2 = vld [vmem:[%s6017_s5 + $0x38] sm:$0xff] }
 0x26c   : > { %v3093_v54 = vpop.f32.mrf.mxu0 }
 0x26d   : > { %v3136_v55 = vpop.f32.mrf.mxu1  ;;  %v3094_v10 = vadd.f32 %v3093_v54, %v3051_v5  ;;  %v3135_v12 = vadd.f32 %v3134_v51, %v3092_v6  ;;  %v3318_v54 = vld [vmem:[%s6017_s5 + $0x18] sm:$0xff] }
 0x26f   : > { %v3137_v17 = vadd.f32 %v3136_v55, %v3094_v10 }
 0x2a6   : > { %v3173_v58 = vpop.f32.mrf.mxu0 }
 0x2a7   : > { %v3216_v59 = vpop.f32.mrf.mxu1  ;;  %v3174_v14 = vadd.f32 %v3173_v58, %v3131_v11 }
 0x2a8   : > { %v3175_v0 = vpop.f32.mrf.mxu0 }
 0x2a9   : > { %v3218_v1 = vpop.f32.mrf.mxu1  ;;  %v3176_v13 = vadd.f32 %v3175_v0, %v3133_v9  ;;  %v3217_v23 = vadd.f32 %v3216_v59, %v3174_v14  ;;  %v3319_v59 = vld [vmem:[%s6017_s5 + $0x20] sm:$0xff] }
 0x2aa   : > { %v3177_v7 = vpop.f32.mrf.mxu0 }
 0x2ab   : > { %v3220_v8 = vpop.f32.mrf.mxu1  ;;  %v3178_v18 = vadd.f32 %v3177_v7, %v3135_v12  ;;  %v3219_v21 = vadd.f32 %v3218_v1, %v3176_v13  ;;  %v3320_v1 = vld [vmem:[%s6017_s5 + $0x28] sm:$0xff] }
 0x2ac   : > { %v3179_v15 = vpop.f32.mrf.mxu0 }
 0x2ad   : > { %v3222_v16 = vpop.f32.mrf.mxu1  ;;  %v3180_v22 = vadd.f32 %v3179_v15, %v3137_v17  ;;  %v3221_v34 = vadd.f32 %v3220_v8, %v3178_v18 }
 0x2af   : > { %v3223_v39 = vadd.f32 %v3222_v16, %v3180_v22 }
 0x2e6   : > { %v3259_v19 = vpop.f32.mrf.mxu0 }
 0x2e7   : > { %v3302_v20 = vpop.f32.mrf.mxu1  ;;  %v3260_v36 = vadd.f32 %v3259_v19, %v3217_v23 }
 0x2e8   : > { %v3261_v24 = vpop.f32.mrf.mxu0 }
 0x2e9   : > { %v3304_v33 = vpop.f32.mrf.mxu1  ;;  %v3262_v35 = vadd.f32 %v3261_v24, %v3219_v21  ;;  %v3303_v28 = vadd.f32 %v3302_v20, %v3260_v36 }
 0x2ea   : > { %v3263_v37 = vpop.f32.mrf.mxu0 }
 0x2eb   : > { %v3306_v38 = vpop.f32.mrf.mxu1  ;;  %v3264_v40 = vadd.f32 %v3263_v37, %v3221_v34  ;;  %v3305_v25 = vadd.f32 %v3304_v33, %v3262_v35  ;;  %v3311_v43 = vmax.f32 %v3303_v28, 0.0 }
 0x2ec   : > { %v3265_v41 = vpop.f32.mrf.mxu0 }
 0x2ed   : > { %v3307_v26 = vadd.f32 %v3306_v38, %v3264_v40  ;;  %v3266_v27 = vadd.f32 %v3265_v41, %v3223_v39  ;;  %v3308_v29 = vpop.f32.mrf.mxu1  ;;  %v3312_v32 = vmax.f32 %v3305_v25, 0.0 }
 0x2ef   : > { %v3309_v30 = vadd.f32 %v3308_v29, %v3266_v27  ;;  %v3313_v31 = vmax.f32 %v3307_v26, 0.0 }
 0x2f1   : > { %v3314_v42 = vmax.f32 %v3309_v30, 0.0  ;;  %v3323_v46 = vpack.c.bf16 %v3313_v31, %v3311_v43 }
 0x2f3   : > { %v3324_v45 = vpack.c.bf16 %v3314_v42, %v3312_v32 }
 0x2f5   : > { %3741 = vmatprep.mubr.bf16.mxu0 %v3324_v45  ;;  %3784 = vmatprep.mubr.bf16.mxu1 %v3324_v45 }
 0x2f6   : > { %3742 = vmatmul.mubr.bf16.vlgmr.msra.gmra.mxu0 %v3323_v46  ;;  %3785 = vmatmul.mubr.bf16.vlgmr.msra.gmra.mxu1 %v3323_v46 }
 0x3b6   : > { %v3743_v51 = vpop.f32.mrf.mxu0  ;;  %v3786_v52 = vpop.f32.mrf.mxu1 }
 0x3b7   : > { %v3795_v55 = vadd.f32 %v3743_v51, %v3315_v48  ;;  %v3797_v56 = vadd.f32 %v3786_v52, %v3317_v50 }
 0x3b8   : > { %v3745_v57 = vpop.f32.mrf.mxu0  ;;  %v3788_v58 = vpop.f32.mrf.mxu1 }
 0x3b9   : > { %3803 = vst [vmem:[%s6017_s5] sm:$0xff] %v3795_v55  ;;  %3805 = vst [vmem:[%s6017_s5 + $0x10] sm:$0xff] %v3797_v56  ;;  %v3796_v61 = vadd.f32 %v3745_v57, %v3316_v53  ;;  %v3798_v62 = vadd.f32 %v3788_v58, %v3318_v54 }
 0x3ba   : > { %v3747_v63 = vpop.f32.mrf.mxu0  ;;  %v3790_v0 = vpop.f32.mrf.mxu1 }
 0x3bb   : > { %3804 = vst [vmem:[%s6017_s5 + $0x8] sm:$0xff] %v3796_v61  ;;  %3806 = vst [vmem:[%s6017_s5 + $0x18] sm:$0xff] %v3798_v62  ;;  %v3799_v3 = vadd.f32 %v3747_v63, %v3319_v59  ;;  %v3801_v4 = vadd.f32 %v3790_v0, %v3321_v60  ;;  %3814 = sbr.rel (%p4303_p11) target bundleno = 1138 (0x472), region = 86 }
 0x3bc   : > { %v3749_v5 = vpop.f32.mrf.mxu0  ;;  %v3792_v6 = vpop.f32.mrf.mxu1 }
 0x3bd   : > { %3807 = vst [vmem:[%s6017_s5 + $0x20] sm:$0xff] %v3799_v3  ;;  %3809 = vst [vmem:[%s6017_s5 + $0x30] sm:$0xff] %v3801_v4  ;;  %v3800_v7 = vadd.f32 %v3749_v5, %v3320_v1  ;;  %v3802_v8 = vadd.f32 %v3792_v6, %v3322_v2 }
 0x3bf   : > { %3808 = vst [vmem:[%s6017_s5 + $0x28] sm:$0xff] %v3800_v7  ;;  %3810 = vst [vmem:[%s6017_s5 + $0x38] sm:$0xff] %v3802_v8 }
 0x3c0   : > { %v3815_v9 = vld [vmem:[%s6017_s5] sm:$0xff]  ;;  %v3817_v11 = vld [vmem:[%s6017_s5 + $0x10] sm:$0xff]  ;;  %v3835_v12 = vsub.s32 2, %v5883_v44  ;;  %v3839_v13 = vsub.s32 3, %v5883_v44 }
 0x3c1   : > { %v3823_v15 = vld [vmem:[%s6016_s4] sm:$0xf] }
 0x3c2   : > { %v3816_v10 = vld [vmem:[%s6017_s5 + $0x8] sm:$0xff]  ;;  %v3818_v14 = vld [vmem:[%s6017_s5 + $0x18] sm:$0xff]  ;;  %v3828_v17 = vrot.slane %v3823_v15, %v1599_v49  ;;  %v3832_v18 = vrot.slane %v3823_v15, %v1603_v47  ;;  %v3836_v19 = vrot.slane %v3823_v15, %v3835_v12  ;;  %v3840_v20 = vrot.slane %v3823_v15, %v3839_v13 }
 0x3c4   : > { %v3819_v16 = vld [vmem:[%s6017_s5 + $0x20] sm:$0xff]  ;;  %v3821_v22 = vld [vmem:[%s6017_s5 + $0x30] sm:$0xff]  ;;  %v3845_v24 = vadd.f32 %v3828_v17, %v3815_v9  ;;  %v3846_v33 = vadd.f32 %v3832_v18, %v3816_v10  ;;  %v3847_v49 = vadd.f32 %v3836_v19, %v3817_v11  ;;  %v3848_v34 = vadd.f32 %v3840_v20, %v3818_v14 }
 0x3c5   : > { %v3849_v44 = vadd.f32 %v3828_v17, %v3819_v16  ;;  %v3851_v35 = vadd.f32 %v3836_v19, %v3821_v22 }
 0x3c6   : > { %v3820_v21 = vld [vmem:[%s6017_s5 + $0x28] sm:$0xff]  ;;  %v3822_v23 = vld [vmem:[%s6017_s5 + $0x38] sm:$0xff]  ;;  %v3853_v37 = vmax.f32 %v3845_v24, 0.0  ;;  %v3854_v38 = vmax.f32 %v3846_v33, 0.0  ;;  %v3855_v39 = vmax.f32 %v3847_v49, 0.0  ;;  %v3856_v40 = vmax.f32 %v3848_v34, 0.0 }
 0x3c7   : > { %v3850_v47 = vadd.f32 %v3832_v18, %v3820_v21  ;;  %v3852_v36 = vadd.f32 %v3840_v20, %v3822_v23  ;;  %v3857_v41 = vmax.f32 %v3849_v44, 0.0  ;;  %v3859_v26 = vmax.f32 %v3851_v35, 0.0 }
 0x3c8   : > { %v3861_v27 = vmul.f32 %v3853_v37, %v3853_v37  ;;  %v3862_v28 = vmul.f32 %v3854_v38, %v3854_v38  ;;  %v3863_v29 = vmul.f32 %v3855_v39, %v3855_v39  ;;  %v3864_v43 = vmul.f32 %v3856_v40, %v3856_v40 }
 0x3c9   : > { %v3858_v25 = vmax.f32 %v3850_v47, 0.0  ;;  %v3860_v30 = vmax.f32 %v3852_v36, 0.0  ;;  %v3865_v31 = vmul.f32 %v3857_v41, %v3857_v41  ;;  %v3867_v42 = vmul.f32 %v3859_v26, %v3859_v26 }
 0x3ca   : > { %v3869_v45 = vadd.f32 %v3862_v28, %v3861_v27 }
 0x3cb   : > { %v3866_v32 = vmul.f32 %v3858_v25, %v3858_v25  ;;  %v3868_v50 = vmul.f32 %v3860_v30, %v3860_v30 }
 0x3cc   : > { %v3870_v48 = vadd.f32 %v3869_v45, %v3863_v29 }
 0x3cd   : > { %v3874_v46 = vadd.f32 %v3866_v32, %v3865_v31 }
 0x3ce   : > { %v3871_v52 = vadd.f32 %v3870_v48, %v3864_v43 }
 0x3cf   : > { %v3875_v51 = vadd.f32 %v3874_v46, %v3867_v42 }
 0x3d0   : > { %3872 = vadd.xlane.f32.xlu0 %v3871_v52 }
 0x3d1   : > { %v3876_v53 = vadd.f32 %v3875_v51, %v3868_v50 }
 0x3d4   : > { %3877 = vadd.xlane.f32.xlu0 %v3876_v53 }
 0x459   : > { %v3873_v54 = vpop.xlane.xlu0 %3872 }
 0x45a   : > { %v3879_v55 = vmax.f32 %v3873_v54, 1e-24 }
 0x45c   : > { %4813 = vrsqrt.f32 %v3879_v55 }
 0x45d   : > { %v3878_v56 = vpop.xlane.xlu0 %3877 }
 0x45e   : > { %v3880_v57 = vmax.f32 %v3878_v56, 1e-24 }
 0x460   : > { %4815 = vrsqrt.f32 %v3880_v57 }
 0x469   : > { %v4814_v58 = vpop.eup %4813 }
 0x46a   : > { %v3883_v59 = vmul.f32 %v4814_v58, %v3853_v37  ;;  %v3884_v60 = vmul.f32 %v4814_v58, %v3854_v38  ;;  %v3885_v61 = vmul.f32 %v4814_v58, %v3855_v39  ;;  %v3886_v62 = vmul.f32 %v4814_v58, %v3856_v40 }
 0x46c   : > { %3891 = vst [vmem:[%s6017_s5] sm:$0xff] %v3883_v59  ;;  %3892 = vst [vmem:[%s6017_s5 + $0x8] sm:$0xff] %v3884_v60 }
 0x46d   : > { %3893 = vst [vmem:[%s6017_s5 + $0x10] sm:$0xff] %v3885_v61  ;;  %3894 = vst [vmem:[%s6017_s5 + $0x18] sm:$0xff] %v3886_v62  ;;  %v4816_v63 = vpop.eup %4815 }
 0x46e   : > { %v3887_v0 = vmul.f32 %v4816_v63, %v3857_v41  ;;  %v3888_v1 = vmul.f32 %v4816_v63, %v3858_v25  ;;  %v3889_v2 = vmul.f32 %v4816_v63, %v3859_v26  ;;  %v3890_v3 = vmul.f32 %v4816_v63, %v3860_v30 }
 0x470   : > { %3895 = vst [vmem:[%s6017_s5 + $0x20] sm:$0xff] %v3887_v0  ;;  %3896 = vst [vmem:[%s6017_s5 + $0x28] sm:$0xff] %v3888_v1 }
 0x471   : > { %3897 = vst [vmem:[%s6017_s5 + $0x30] sm:$0xff] %v3889_v2  ;;  %3898 = vst [vmem:[%s6017_s5 + $0x38] sm:$0xff] %v3890_v3 }
 0x472 PF: > { %p12_p12 = scmp.ge.s32.totalorder %s4891_s22, 6   ;;  %s6018_s18 = smov %s4835_s19 }
 0x473   : > { %s6019_s19 = smov %s4900_s25  ;;  %s6020_s20 = smov %s4891_s22 }
 0x474   :  { %14 = sbr.rel (!%p12_p12) target bundleno = 2 (0x2), region = 123 }

</bundles_post_ra>
